<compile_context>
chip_gen: v5e
topology: v5e:2x2
jax: 0.10.0
libtpu: 0.0.40
codegen_flags: <defaults>
</compile_context>

<pallas_src>
import functools
import math

import jax
import jax.numpy as jnp
from jax.experimental import pallas as pl
from jax.experimental.pallas import tpu as pltpu

MATMUL_DTYPE = jnp.bfloat16   # flip to jnp.float32 for bit-closer matmuls

# per-block packed-vector row order (each row is 128 lanes wide, data in [:D] or [:hidden])
#   +0 ln1_w  +1 ln1_b  +2 bq(scaled)  +3 bk  +4 bv  +5 proj_b  +6 gamma1
#   +7 ln2_w  +8 ln2_b  +9 fc1_b(full) +10 fc2_b  +11 gamma2
_ROWS_PER_BLOCK = 12


# ----------------------------- in-kernel helpers -----------------------------

def _layernorm(x, w, b, eps=1e-6):
    mu = jnp.mean(x, axis=-1, keepdims=True)
    xc = x - mu
    var = jnp.mean(xc * xc, axis=-1, keepdims=True)
    return xc * jax.lax.rsqrt(var + eps) * w + b


def _erf(z):
    # Abramowitz & Stegun 7.1.26, |err| < 1.5e-7 -> fp32-level surrogate for erf
    a1, a2, a3, a4, a5 = 0.254829592, -0.284496736, 1.421413741, -1.453152027, 1.061405429
    p = 0.3275911
    sgn = jnp.where(z >= 0.0, 1.0, -1.0)
    az = jnp.abs(z)
    # divide moved off the VPU (exact reciprocal keeps ~1e-7 GELU accuracy)
    t = pl.reciprocal(1.0 + p * az, approx=False)
    poly = ((((a5 * t + a4) * t + a3) * t + a2) * t + a1) * t
    return sgn * (1.0 - poly * jnp.exp(-az * az))


def _gelu_exact(x):
    # matches torch.nn.GELU() (erf form) to fp32 tolerance
    return 0.5 * x * (1.0 + _erf(x * (1.0 / math.sqrt(2.0))))


# ----------------------------- fused ViT kernel -------------------------------

def _vit_kernel(patches_ref, patch_w_ref, qkv_w_ref, proj_w_ref,
                fc1_w_ref, fc2_w_ref, vecs_ref, o_ref, *,
                depth, num_heads, seq, embed_dim, hidden):
    S, D, H = seq, embed_dim, num_heads
    hd = D // H
    mm = MATMUL_DTYPE

    def vec(r, n=D):
        return vecs_ref[r:r + 1, :n]           # (1, n) f32, static slice

    # rows [0:S] of the packed vecs hold the per-row token bias:
    #   row 0 = cls token, rows 1..S-1 = patch_embed bias
    token_bias = vecs_ref[0:S, :D]              # (S, D)

    # ---- patch embed (stride-P conv == per-patch linear); row 0 is a zero
    #      pseudo-patch, so adding token_bias makes it exactly the cls token ----
    pp = patches_ref[0].astype(mm)                                   # (S, Pd)
    x = jnp.dot(pp, patch_w_ref[...],
                preferred_element_type=jnp.float32) + token_bias      # (S, D) f32 residual

    base = S + 2
    for l in range(depth):
        r0 = base + _ROWS_PER_BLOCK * l
        ln1_w, ln1_b = vec(r0 + 0), vec(r0 + 1)
        bq, bk, bv = vec(r0 + 2), vec(r0 + 3), vec(r0 + 4)
        proj_b, g1 = vec(r0 + 5), vec(r0 + 6)
        ln2_w, ln2_b = vec(r0 + 7), vec(r0 + 8)
        fc1_b = vec(r0 + 9, hidden)
        fc2_b, g2 = vec(r0 + 10), vec(r0 + 11)

        # --- attention branch: x + gamma1 * proj(MHSA(LN1(x))) ---
        h_bf = _layernorm(x, ln1_w, ln1_b).astype(mm)                  # cast once
        qkv = jnp.dot(h_bf, qkv_w_ref[l],
                      preferred_element_type=jnp.float32)             # (S, 3D), fused QKV
        q = qkv[:, 0:D] + bq          # 1/sqrt(hd) already folded into W_q / b_q
        k = qkv[:, D:2 * D] + bk
        v = qkv[:, 2 * D:3 * D] + bv

        # split heads by lane slices, then batch BOTH attention matmuls over H
        q_h = jnp.stack([q[:, h * hd:(h + 1) * hd] for h in range(H)], axis=0).astype(mm)
        k_h = jnp.stack([k[:, h * hd:(h + 1) * hd] for h in range(H)], axis=0).astype(mm)
        v_h = jnp.stack([v[:, h * hd:(h + 1) * hd] for h in range(H)], axis=0).astype(mm)

        s = jax.lax.dot_general(q_h, k_h, (((2,), (2,)), ((0,), (0,))),
                                preferred_element_type=jnp.float32)   # (H, S, S)
        s = s - jnp.max(s, axis=-1, keepdims=True)
        e = jnp.exp(s)
        p = e * pl.reciprocal(jnp.sum(e, axis=-1, keepdims=True), approx=True)
        ctx_h = jax.lax.dot_general(p.astype(mm), v_h, (((2,), (1,)), ((0,), (0,))),
                                    preferred_element_type=jnp.float32)  # (H, S, hd)

        # reassemble heads on the lane axis, ONE output projection
        ctx = jnp.concatenate([ctx_h[h] for h in range(H)], axis=-1).astype(mm)  # (S, D)
        attn = jnp.dot(ctx, proj_w_ref[l],
                       preferred_element_type=jnp.float32) + proj_b
        x = x + g1 * attn

        # --- MLP branch: x + gamma2 * fc2(GELU(fc1(LN2(x)))) ---
        h_bf = _layernorm(x, ln2_w, ln2_b).astype(mm)
        hmid = jnp.dot(h_bf, fc1_w_ref[l],
                       preferred_element_type=jnp.float32) + fc1_b
        hmid = _gelu_exact(hmid).astype(mm)
        out = jnp.dot(hmid, fc2_w_ref[l],
                      preferred_element_type=jnp.float32) + fc2_b
        x = x + g2 * out

    # ---- final LayerNorm ----
    norm_w, norm_b = vec(S), vec(S + 1)
    o_ref[0] = _layernorm(x, norm_w, norm_b).astype(o_ref.dtype)


def vit_forward_fused(patches_pad, flat, *, batch, seq, num_heads, depth,
                      embed_dim, hidden):
    B, S, D = batch, seq, embed_dim
    Pd = patches_pad.shape[-1]
    patch_w, qkv_w, proj_w, fc1_w, fc2_w, vecs = flat
    n_rows, vw = vecs.shape

    kernel = functools.partial(_vit_kernel, depth=depth, num_heads=num_heads,
                               seq=S, embed_dim=D, hidden=hidden)
    return pl.pallas_call(
        kernel,
        out_shape=jax.ShapeDtypeStruct((B, S, D), jnp.float32),
        grid=(B,),
        in_specs=[
            pl.BlockSpec((1, S, Pd), lambda b: (b, 0, 0)),            # per-batch patches
            pl.BlockSpec((Pd, D), lambda b: (0, 0)),                  # patch-embed weight
            pl.BlockSpec((depth, D, 3 * D), lambda b: (0, 0, 0)),     # fused QKV weights
            pl.BlockSpec((depth, D, D), lambda b: (0, 0, 0)),         # output-proj weights
            pl.BlockSpec((depth, D, hidden), lambda b: (0, 0, 0)),    # MLP fc1 weights
            pl.BlockSpec((depth, hidden, D), lambda b: (0, 0, 0)),    # MLP fc2 weights
            pl.BlockSpec((n_rows, vw), lambda b: (0, 0)),             # packed small params
        ],
        out_specs=pl.BlockSpec((1, S, D), lambda b: (b, 0, 0)),
        compiler_params=pltpu.CompilerParams(
            dimension_semantics=("parallel",)),   # v7x: one batch element per TensorCore
    )(patches_pad, patch_w, qkv_w, proj_w, fc1_w, fc2_w, vecs)


# ----------------------------- parameter handling -----------------------------

def init_params(key, *, img_size=64, patch_size=16, in_chans=3,
                embed_dim=32, depth=2, num_heads=4, mlp_ratio=4,
                init_values=1e-6):
    hidden = embed_dim * mlp_ratio
    patch_dim = in_chans * patch_size * patch_size
    keys = jax.random.split(key, 2 + 4 * depth)
    ki = iter(keys)

    def w(k, shape, std=0.02):
        return (std * jax.random.normal(k, shape)).astype(jnp.float32)

    params = {
        "patch_size": patch_size,
        "embed_dim": embed_dim,
        "num_heads": num_heads,
        # patch_embed conv weight (D, C, P, P) flattened & transposed -> (patch_dim, D)
        "patch_w": w(next(ki), (patch_dim, embed_dim)),
        "patch_b": jnp.zeros((1, embed_dim), jnp.float32),
        "cls_token": w(next(ki), (1, 1, embed_dim)),
        "norm_w": jnp.ones((1, embed_dim), jnp.float32),
        "norm_b": jnp.zeros((1, embed_dim), jnp.float32),
        "blocks": [],
    }
    for _ in range(depth):
        params["blocks"].append({
            "ln1_w": jnp.ones((1, embed_dim), jnp.float32),
            "ln1_b": jnp.zeros((1, embed_dim), jnp.float32),
            "qkv_w": w(next(ki), (embed_dim, 3 * embed_dim)),
            "qkv_b": jnp.zeros((1, 3 * embed_dim), jnp.float32),
            "proj_w": w(next(ki), (embed_dim, embed_dim)),
            "proj_b": jnp.zeros((1, embed_dim), jnp.float32),
            "gamma1": jnp.full((1, embed_dim), init_values, jnp.float32),
            "ln2_w": jnp.ones((1, embed_dim), jnp.float32),
            "ln2_b": jnp.zeros((1, embed_dim), jnp.float32),
            "fc1_w": w(next(ki), (embed_dim, hidden)),
            "fc1_b": jnp.zeros((1, hidden), jnp.float32),
            "fc2_w": w(next(ki), (hidden, embed_dim)),
            "fc2_b": jnp.zeros((1, embed_dim), jnp.float32),
            "gamma2": jnp.full((1, embed_dim), init_values, jnp.float32),
        })
    return params


def _prep_kernel_params(params, *, seq):
    """Trace-time re-layout:
       * big weights stacked over depth and cast to MATMUL_DTYPE,
       * 1/sqrt(head_dim) folded into the Q columns of the fused QKV weight/bias,
       * every small 1-D parameter packed into ONE (rows, 128) f32 array
         (rows [0:S] = per-row token bias: cls row + patch_embed bias)."""
    D = params["embed_dim"]
    H = params["num_heads"]
    hd = D // H
    scale = hd ** -0.5
    hidden = params["blocks"][0]["fc1_w"].shape[1]
    vw = max(hidden, 128)
    assert hidden <= vw
    S = seq

    def pad_row(v):
        v = jnp.asarray(v, jnp.float32).reshape(1, -1)
        return jnp.pad(v, ((0, 0), (0, vw - v.shape[1])))

    # token bias: row 0 = cls token, rows 1..S-1 = patch_embed bias
    cls = params["cls_token"].reshape(1, D)
    patch_b = params["patch_b"].reshape(1, D)
    token_bias = jnp.concatenate([cls, jnp.broadcast_to(patch_b, (S - 1, D))], axis=0)
    vec_rows = [jnp.pad(token_bias.astype(jnp.float32), ((0, 0), (0, vw - D))),
                pad_row(params["norm_w"]), pad_row(params["norm_b"])]

    qkv_ws, proj_ws, fc1_ws, fc2_ws = [], [], [], []
    for blk in params["blocks"]:
        qkv_w = blk["qkv_w"]                                  # (D, 3D)
        qkv_b = blk["qkv_b"].reshape(3 * D)
        qkv_w_scaled = jnp.concatenate([qkv_w[:, :D] * scale, qkv_w[:, D:]], axis=1)
        bq = qkv_b[:D] * scale
        bk = qkv_b[D:2 * D]
        bv = qkv_b[2 * D:]

        qkv_ws.append(qkv_w_scaled.astype(MATMUL_DTYPE))
        proj_ws.append(blk["proj_w"].astype(MATMUL_DTYPE))
        fc1_ws.append(blk["fc1_w"].astype(MATMUL_DTYPE))
        fc2_ws.append(blk["fc2_w"].astype(MATMUL_DTYPE))

        for v in (blk["ln1_w"], blk["ln1_b"], bq, bk, bv, blk["proj_b"],
                  blk["gamma1"], blk["ln2_w"], blk["ln2_b"], blk["fc1_b"],
                  blk["fc2_b"], blk["gamma2"]):
            vec_rows.append(pad_row(v))

    vecs = jnp.concatenate(vec_rows, axis=0)                  # (S + 2 + 12*depth, vw) f32
    return (params["patch_w"].astype(MATMUL_DTYPE),
            jnp.stack(qkv_ws), jnp.stack(proj_ws),
            jnp.stack(fc1_ws), jnp.stack(fc2_ws), vecs)


# ------------------------------- forward pass ---------------------------------

def model_forward(params, x, noise_key, mask_ratio=0.0):
    B, C, Himg, Wimg = x.shape
    P = params["patch_size"]
    D = params["embed_dim"]
    gh, gw = Himg // P, Wimg // P
    L = gh * gw

    # extract patches; each P x P patch flattened in (C, ph, pw) order (conv-weight layout)
    patches = (x.reshape(B, C, gh, P, gw, P)
                .transpose(0, 2, 4, 1, 3, 5)
                .reshape(B, L, C * P * P)).astype(jnp.float32)

    # random_masking (mask_ratio=0 -> keep all tokens in a random per-sample permutation)
    # TODO(synk): argsort/gather have no clean Pallas TPU equivalent; done in plain JAX.
    len_keep = int(L * (1 - mask_ratio))
    noise = jax.random.uniform(noise_key, (B, L))
    ids_keep = jnp.argsort(noise, axis=1)[:, :len_keep]
    # patch_embed is per-token linear, so gathering patches BEFORE the embed equals
    # gathering tokens AFTER it -> the embed matmul lives inside the fused kernel.
    patches_kept = jnp.take_along_axis(patches, ids_keep[:, :, None], axis=1)

    # prepend a zero pseudo-patch row for the cls position: the embed matmul then
    # emits all S rows and the kernel only adds a per-row token bias (no concat).
    S = len_keep + 1
    patches_pad = jnp.concatenate(
        [jnp.zeros((B, 1, C * P * P), patches.dtype), patches_kept], axis=1
    ).astype(MATMUL_DTYPE)

    flat = _prep_kernel_params(params, seq=S)
    hidden = params["blocks"][0]["fc1_w"].shape[1]
    seq_out = vit_forward_fused(patches_pad, flat,
                                batch=B, seq=S,
                                num_heads=params["num_heads"],
                                depth=len(params["blocks"]),
                                embed_dim=D, hidden=hidden)

    # original model: x.reshape(-1, 24*24) where 576 == (img/patch)**2; scaled here
    return seq_out.reshape(-1, gh * gw), ids_keep.reshape(-1)


# ----------------------------------- main --------------------------------------

if __name__ == "__main__":
    root = jax.random.PRNGKey(0)
    k_params, k_input, k_noise = jax.random.split(root, 3)

    params = init_params(k_params, img_size=64, patch_size=16, in_chans=3,
                         embed_dim=32, depth=2, num_heads=4, mlp_ratio=4)

    x = jax.random.normal(k_input, (2, 3, 64, 64), dtype=jnp.float32)  # NCHW

    out, target = model_forward(params, x, k_noise, mask_ratio=0.0)
    jax.block_until_ready((out, target))

    assert out.shape == (2 * 17 * 32 // 16, 16), out.shape   # reshape(-1, (H/P)*(W/P))
    assert target.shape == (2 * 16,), target.shape
    print("KERNEL_OK")
</pallas_src>

<mosaic_0001>
module attributes {stable_mosaic.version = 11 : i64} {
  func.func @_vit_kernel(%arg0: i32, %arg1: memref<1x17x768xbf16, #tpu.memory_space<vmem>>, %arg2: memref<768x32xbf16, #tpu.memory_space<vmem>>, %arg3: memref<2x32x96xbf16, #tpu.memory_space<vmem>>, %arg4: memref<2x32x32xbf16, #tpu.memory_space<vmem>>, %arg5: memref<2x32x128xbf16, #tpu.memory_space<vmem>>, %arg6: memref<2x128x32xbf16, #tpu.memory_space<vmem>>, %arg7: memref<43x128xf32, #tpu.memory_space<vmem>>, %arg8: memref<1x17x32xf32, #tpu.memory_space<vmem>>) attributes {dimension_semantics = [#tpu.dimension_semantics<parallel>], iteration_bounds = array<i64: 2>, scalar_prefetch = 0 : i64, scratch_operands = 0 : i64, tpu.core_type = #tpu.core_type<tc>, window_params = [{transform_indices = @transform_0, window_bounds = array<i64: 1, 17, 768>}, {pipeline_mode = #tpu.pipeline_mode<synchronous>, transform_indices = @transform_1, window_bounds = array<i64: 768, 32>}, {pipeline_mode = #tpu.pipeline_mode<synchronous>, transform_indices = @transform_2, window_bounds = array<i64: 2, 32, 96>}, {pipeline_mode = #tpu.pipeline_mode<synchronous>, transform_indices = @transform_3, window_bounds = array<i64: 2, 32, 32>}, {pipeline_mode = #tpu.pipeline_mode<synchronous>, transform_indices = @transform_4, window_bounds = array<i64: 2, 32, 128>}, {pipeline_mode = #tpu.pipeline_mode<synchronous>, transform_indices = @transform_5, window_bounds = array<i64: 2, 128, 32>}, {pipeline_mode = #tpu.pipeline_mode<synchronous>, transform_indices = @transform_6, window_bounds = array<i64: 43, 128>}, {transform_indices = @transform_7, window_bounds = array<i64: 1, 17, 32>}]} {
    %c0 = arith.constant 0 : index
    %c0_0 = arith.constant 0 : index
    %0 = vector.load %arg7[%c0, %c0_0] : memref<43x128xf32, #tpu.memory_space<vmem>>, vector<17x32xf32>
    %c0_1 = arith.constant 0 : index
    %c0_2 = arith.constant 0 : index
    %c0_3 = arith.constant 0 : index
    %1 = vector.load %arg1[%c0_1, %c0_2, %c0_3] : memref<1x17x768xbf16, #tpu.memory_space<vmem>>, vector<1x17x768xbf16>
    %2 = vector.shape_cast %1 : vector<1x17x768xbf16> to vector<17x768xbf16>
    %c0_4 = arith.constant 0 : index
    %c0_5 = arith.constant 0 : index
    %3 = vector.load %arg2[%c0_4, %c0_5] : memref<768x32xbf16, #tpu.memory_space<vmem>>, vector<768x32xbf16>
    %cst = arith.constant dense<0.000000e+00> : vector<17x32xf32>
    %4 = tpu.matmul %2, %3, %cst {dimension_numbers = #tpu.dot_dimension_numbers<[1], [0], [0], [1], [0, 0, 1, 1], [], []>} : vector<17x768xbf16>, vector<768x32xbf16>, vector<17x32xf32> -> vector<17x32xf32>
    %5 = arith.addf %4, %0 : vector<17x32xf32>
    %c19 = arith.constant 19 : index
    %c0_6 = arith.constant 0 : index
    %6 = vector.load %arg7[%c19, %c0_6] : memref<43x128xf32, #tpu.memory_space<vmem>>, vector<1x32xf32>
    %c20 = arith.constant 20 : index
    %c0_7 = arith.constant 0 : index
    %7 = vector.load %arg7[%c20, %c0_7] : memref<43x128xf32, #tpu.memory_space<vmem>>, vector<1x32xf32>
    %c21 = arith.constant 21 : index
    %c0_8 = arith.constant 0 : index
    %8 = vector.load %arg7[%c21, %c0_8] : memref<43x128xf32, #tpu.memory_space<vmem>>, vector<1x32xf32>
    %c22 = arith.constant 22 : index
    %c0_9 = arith.constant 0 : index
    %9 = vector.load %arg7[%c22, %c0_9] : memref<43x128xf32, #tpu.memory_space<vmem>>, vector<1x32xf32>
    %c23 = arith.constant 23 : index
    %c0_10 = arith.constant 0 : index
    %10 = vector.load %arg7[%c23, %c0_10] : memref<43x128xf32, #tpu.memory_space<vmem>>, vector<1x32xf32>
    %c24 = arith.constant 24 : index
    %c0_11 = arith.constant 0 : index
    %11 = vector.load %arg7[%c24, %c0_11] : memref<43x128xf32, #tpu.memory_space<vmem>>, vector<1x32xf32>
    %c25 = arith.constant 25 : index
    %c0_12 = arith.constant 0 : index
    %12 = vector.load %arg7[%c25, %c0_12] : memref<43x128xf32, #tpu.memory_space<vmem>>, vector<1x32xf32>
    %c26 = arith.constant 26 : index
    %c0_13 = arith.constant 0 : index
    %13 = vector.load %arg7[%c26, %c0_13] : memref<43x128xf32, #tpu.memory_space<vmem>>, vector<1x32xf32>
    %c27 = arith.constant 27 : index
    %c0_14 = arith.constant 0 : index
    %14 = vector.load %arg7[%c27, %c0_14] : memref<43x128xf32, #tpu.memory_space<vmem>>, vector<1x32xf32>
    %c28 = arith.constant 28 : index
    %c0_15 = arith.constant 0 : index
    %15 = vector.load %arg7[%c28, %c0_15] : memref<43x128xf32, #tpu.memory_space<vmem>>, vector<1x128xf32>
    %c29 = arith.constant 29 : index
    %c0_16 = arith.constant 0 : index
    %16 = vector.load %arg7[%c29, %c0_16] : memref<43x128xf32, #tpu.memory_space<vmem>>, vector<1x32xf32>
    %c30 = arith.constant 30 : index
    %c0_17 = arith.constant 0 : index
    %17 = vector.load %arg7[%c30, %c0_17] : memref<43x128xf32, #tpu.memory_space<vmem>>, vector<1x32xf32>
    %cst_18 = arith.constant dense<0.000000e+00> : vector<17xf32>
    %18 = vector.multi_reduction <add>, %5, %cst_18 [1] : vector<17x32xf32> to vector<17xf32>
    %19 = vector.shape_cast %18 : vector<17xf32> to vector<17x1xf32>
    %cst_19 = arith.constant 3.200000e+01 : f32
    %20 = vector.broadcast %cst_19 : f32 to vector<17x1xf32>
    %21 = arith.divf %19, %20 : vector<17x1xf32>
    %22 = vector.broadcast %21 : vector<17x1xf32> to vector<17x32xf32>
    %23 = arith.subf %5, %22 : vector<17x32xf32>
    %24 = arith.mulf %23, %23 : vector<17x32xf32>
    %cst_20 = arith.constant dense<0.000000e+00> : vector<17xf32>
    %25 = vector.multi_reduction <add>, %24, %cst_20 [1] : vector<17x32xf32> to vector<17xf32>
    %26 = vector.shape_cast %25 : vector<17xf32> to vector<17x1xf32>
    %cst_21 = arith.constant 3.200000e+01 : f32
    %27 = vector.broadcast %cst_21 : f32 to vector<17x1xf32>
    %28 = arith.divf %26, %27 : vector<17x1xf32>
    %cst_22 = arith.constant 9.99999997E-7 : f32
    %29 = vector.broadcast %cst_22 : f32 to vector<17x1xf32>
    %30 = arith.addf %28, %29 : vector<17x1xf32>
    %31 = math.rsqrt %30 : vector<17x1xf32>
    %32 = vector.broadcast %31 : vector<17x1xf32> to vector<17x32xf32>
    %33 = arith.mulf %23, %32 : vector<17x32xf32>
    %34 = vector.broadcast %6 : vector<1x32xf32> to vector<17x32xf32>
    %35 = arith.mulf %33, %34 : vector<17x32xf32>
    %36 = vector.broadcast %7 : vector<1x32xf32> to vector<17x32xf32>
    %37 = arith.addf %35, %36 : vector<17x32xf32>
    %38 = arith.truncf %37 : vector<17x32xf32> to vector<17x32xbf16>
    %c0_23 = arith.constant 0 : index
    %c0_24 = arith.constant 0 : index
    %c0_25 = arith.constant 0 : index
    %39 = vector.load %arg3[%c0_23, %c0_24, %c0_25] : memref<2x32x96xbf16, #tpu.memory_space<vmem>>, vector<1x32x96xbf16>
    %40 = vector.shape_cast %39 : vector<1x32x96xbf16> to vector<32x96xbf16>
    %cst_26 = arith.constant dense<0.000000e+00> : vector<17x96xf32>
    %41 = tpu.matmul %38, %40, %cst_26 {dimension_numbers = #tpu.dot_dimension_numbers<[1], [0], [0], [1], [0, 0, 1, 1], [], []>} : vector<17x32xbf16>, vector<32x96xbf16>, vector<17x96xf32> -> vector<17x96xf32>
    %42 = vector.extract_strided_slice %41 {offsets = [0, 0], sizes = [17, 32], strides = [1, 1]} : vector<17x96xf32> to vector<17x32xf32>
    %43 = vector.broadcast %8 : vector<1x32xf32> to vector<17x32xf32>
    %44 = arith.addf %42, %43 : vector<17x32xf32>
    %45 = vector.extract_strided_slice %41 {offsets = [0, 32], sizes = [17, 32], strides = [1, 1]} : vector<17x96xf32> to vector<17x32xf32>
    %46 = vector.broadcast %9 : vector<1x32xf32> to vector<17x32xf32>
    %47 = arith.addf %45, %46 : vector<17x32xf32>
    %48 = vector.extract_strided_slice %41 {offsets = [0, 64], sizes = [17, 32], strides = [1, 1]} : vector<17x96xf32> to vector<17x32xf32>
    %49 = vector.broadcast %10 : vector<1x32xf32> to vector<17x32xf32>
    %50 = arith.addf %48, %49 : vector<17x32xf32>
    %51 = vector.extract_strided_slice %44 {offsets = [0, 0], sizes = [17, 8], strides = [1, 1]} : vector<17x32xf32> to vector<17x8xf32>
    %52 = vector.extract_strided_slice %44 {offsets = [0, 8], sizes = [17, 8], strides = [1, 1]} : vector<17x32xf32> to vector<17x8xf32>
    %53 = vector.extract_strided_slice %44 {offsets = [0, 16], sizes = [17, 8], strides = [1, 1]} : vector<17x32xf32> to vector<17x8xf32>
    %54 = vector.extract_strided_slice %44 {offsets = [0, 24], sizes = [17, 8], strides = [1, 1]} : vector<17x32xf32> to vector<17x8xf32>
    %55 = vector.shape_cast %51 : vector<17x8xf32> to vector<1x17x8xf32>
    %56 = vector.shape_cast %52 : vector<17x8xf32> to vector<1x17x8xf32>
    %57 = vector.shape_cast %53 : vector<17x8xf32> to vector<1x17x8xf32>
    %58 = vector.shape_cast %54 : vector<17x8xf32> to vector<1x17x8xf32>
    %59 = tpu.concatenate %55, %56, %57, %58 in 0 : vector<1x17x8xf32>, vector<1x17x8xf32>, vector<1x17x8xf32>, vector<1x17x8xf32> -> vector<4x17x8xf32>
    %60 = arith.truncf %59 : vector<4x17x8xf32> to vector<4x17x8xbf16>
    %61 = vector.extract_strided_slice %47 {offsets = [0, 0], sizes = [17, 8], strides = [1, 1]} : vector<17x32xf32> to vector<17x8xf32>
    %62 = vector.extract_strided_slice %47 {offsets = [0, 8], sizes = [17, 8], strides = [1, 1]} : vector<17x32xf32> to vector<17x8xf32>
    %63 = vector.extract_strided_slice %47 {offsets = [0, 16], sizes = [17, 8], strides = [1, 1]} : vector<17x32xf32> to vector<17x8xf32>
    %64 = vector.extract_strided_slice %47 {offsets = [0, 24], sizes = [17, 8], strides = [1, 1]} : vector<17x32xf32> to vector<17x8xf32>
    %65 = vector.shape_cast %61 : vector<17x8xf32> to vector<1x17x8xf32>
    %66 = vector.shape_cast %62 : vector<17x8xf32> to vector<1x17x8xf32>
    %67 = vector.shape_cast %63 : vector<17x8xf32> to vector<1x17x8xf32>
    %68 = vector.shape_cast %64 : vector<17x8xf32> to vector<1x17x8xf32>
    %69 = tpu.concatenate %65, %66, %67, %68 in 0 : vector<1x17x8xf32>, vector<1x17x8xf32>, vector<1x17x8xf32>, vector<1x17x8xf32> -> vector<4x17x8xf32>
    %70 = arith.truncf %69 : vector<4x17x8xf32> to vector<4x17x8xbf16>
    %71 = vector.extract_strided_slice %50 {offsets = [0, 0], sizes = [17, 8], strides = [1, 1]} : vector<17x32xf32> to vector<17x8xf32>
    %72 = vector.extract_strided_slice %50 {offsets = [0, 8], sizes = [17, 8], strides = [1, 1]} : vector<17x32xf32> to vector<17x8xf32>
    %73 = vector.extract_strided_slice %50 {offsets = [0, 16], sizes = [17, 8], strides = [1, 1]} : vector<17x32xf32> to vector<17x8xf32>
    %74 = vector.extract_strided_slice %50 {offsets = [0, 24], sizes = [17, 8], strides = [1, 1]} : vector<17x32xf32> to vector<17x8xf32>
    %75 = vector.shape_cast %71 : vector<17x8xf32> to vector<1x17x8xf32>
    %76 = vector.shape_cast %72 : vector<17x8xf32> to vector<1x17x8xf32>
    %77 = vector.shape_cast %73 : vector<17x8xf32> to vector<1x17x8xf32>
    %78 = vector.shape_cast %74 : vector<17x8xf32> to vector<1x17x8xf32>
    %79 = tpu.concatenate %75, %76, %77, %78 in 0 : vector<1x17x8xf32>, vector<1x17x8xf32>, vector<1x17x8xf32>, vector<1x17x8xf32> -> vector<4x17x8xf32>
    %80 = arith.truncf %79 : vector<4x17x8xf32> to vector<4x17x8xbf16>
    %cst_27 = arith.constant dense<0.000000e+00> : vector<4x17x17xf32>
    %81 = tpu.matmul %60, %70, %cst_27 {dimension_numbers = #tpu.dot_dimension_numbers<[2], [2], [1], [1], [0, 0, 0, 1, 1, 1], [0], [0]>} : vector<4x17x8xbf16>, vector<4x17x8xbf16>, vector<4x17x17xf32> -> vector<4x17x17xf32>
    %cst_28 = arith.constant dense<0xFF800000> : vector<4x17xf32>
    %82 = vector.multi_reduction <maximumf>, %81, %cst_28 [2] : vector<4x17x17xf32> to vector<4x17xf32>
    %83 = vector.shape_cast %82 : vector<4x17xf32> to vector<4x17x1xf32>
    %84 = vector.broadcast %83 : vector<4x17x1xf32> to vector<4x17x17xf32>
    %85 = arith.subf %81, %84 : vector<4x17x17xf32>
    %86 = math.exp %85 : vector<4x17x17xf32>
    %cst_29 = arith.constant dense<0.000000e+00> : vector<4x17xf32>
    %87 = vector.multi_reduction <add>, %86, %cst_29 [2] : vector<4x17x17xf32> to vector<4x17xf32>
    %88 = vector.shape_cast %87 : vector<4x17xf32> to vector<4x17x1xf32>
    %89 = tpu.reciprocal %88 {approx = true} : vector<4x17x1xf32> -> vector<4x17x1xf32>
    %90 = vector.broadcast %89 : vector<4x17x1xf32> to vector<4x17x17xf32>
    %91 = arith.mulf %86, %90 : vector<4x17x17xf32>
    %92 = arith.truncf %91 : vector<4x17x17xf32> to vector<4x17x17xbf16>
    %cst_30 = arith.constant dense<0.000000e+00> : vector<4x17x8xf32>
    %93 = tpu.matmul %92, %80, %cst_30 {dimension_numbers = #tpu.dot_dimension_numbers<[2], [1], [1], [2], [0, 0, 0, 1, 1, 2], [0], [0]>} : vector<4x17x17xbf16>, vector<4x17x8xbf16>, vector<4x17x8xf32> -> vector<4x17x8xf32>
    %94 = vector.extract_strided_slice %93 {offsets = [0, 0, 0], sizes = [1, 17, 8], strides = [1, 1, 1]} : vector<4x17x8xf32> to vector<1x17x8xf32>
    %95 = vector.shape_cast %94 : vector<1x17x8xf32> to vector<17x8xf32>
    %96 = vector.extract_strided_slice %93 {offsets = [1, 0, 0], sizes = [1, 17, 8], strides = [1, 1, 1]} : vector<4x17x8xf32> to vector<1x17x8xf32>
    %97 = vector.shape_cast %96 : vector<1x17x8xf32> to vector<17x8xf32>
    %98 = vector.extract_strided_slice %93 {offsets = [2, 0, 0], sizes = [1, 17, 8], strides = [1, 1, 1]} : vector<4x17x8xf32> to vector<1x17x8xf32>
    %99 = vector.shape_cast %98 : vector<1x17x8xf32> to vector<17x8xf32>
    %100 = vector.extract_strided_slice %93 {offsets = [3, 0, 0], sizes = [1, 17, 8], strides = [1, 1, 1]} : vector<4x17x8xf32> to vector<1x17x8xf32>
    %101 = vector.shape_cast %100 : vector<1x17x8xf32> to vector<17x8xf32>
    %102 = tpu.concatenate %95, %97, %99, %101 in 1 : vector<17x8xf32>, vector<17x8xf32>, vector<17x8xf32>, vector<17x8xf32> -> vector<17x32xf32>
    %103 = arith.truncf %102 : vector<17x32xf32> to vector<17x32xbf16>
    %c0_31 = arith.constant 0 : index
    %c0_32 = arith.constant 0 : index
    %c0_33 = arith.constant 0 : index
    %104 = vector.load %arg4[%c0_31, %c0_32, %c0_33] : memref<2x32x32xbf16, #tpu.memory_space<vmem>>, vector<1x32x32xbf16>
    %105 = vector.shape_cast %104 : vector<1x32x32xbf16> to vector<32x32xbf16>
    %cst_34 = arith.constant dense<0.000000e+00> : vector<17x32xf32>
    %106 = tpu.matmul %103, %105, %cst_34 {dimension_numbers = #tpu.dot_dimension_numbers<[1], [0], [0], [1], [0, 0, 1, 1], [], []>} : vector<17x32xbf16>, vector<32x32xbf16>, vector<17x32xf32> -> vector<17x32xf32>
    %107 = vector.broadcast %11 : vector<1x32xf32> to vector<17x32xf32>
    %108 = arith.addf %106, %107 : vector<17x32xf32>
    %109 = vector.broadcast %12 : vector<1x32xf32> to vector<17x32xf32>
    %110 = arith.mulf %109, %108 : vector<17x32xf32>
    %111 = arith.addf %5, %110 : vector<17x32xf32>
    %cst_35 = arith.constant dense<0.000000e+00> : vector<17xf32>
    %112 = vector.multi_reduction <add>, %111, %cst_35 [1] : vector<17x32xf32> to vector<17xf32>
    %113 = vector.shape_cast %112 : vector<17xf32> to vector<17x1xf32>
    %cst_36 = arith.constant 3.200000e+01 : f32
    %114 = vector.broadcast %cst_36 : f32 to vector<17x1xf32>
    %115 = arith.divf %113, %114 : vector<17x1xf32>
    %116 = vector.broadcast %115 : vector<17x1xf32> to vector<17x32xf32>
    %117 = arith.subf %111, %116 : vector<17x32xf32>
    %118 = arith.mulf %117, %117 : vector<17x32xf32>
    %cst_37 = arith.constant dense<0.000000e+00> : vector<17xf32>
    %119 = vector.multi_reduction <add>, %118, %cst_37 [1] : vector<17x32xf32> to vector<17xf32>
    %120 = vector.shape_cast %119 : vector<17xf32> to vector<17x1xf32>
    %cst_38 = arith.constant 3.200000e+01 : f32
    %121 = vector.broadcast %cst_38 : f32 to vector<17x1xf32>
    %122 = arith.divf %120, %121 : vector<17x1xf32>
    %cst_39 = arith.constant 9.99999997E-7 : f32
    %123 = vector.broadcast %cst_39 : f32 to vector<17x1xf32>
    %124 = arith.addf %122, %123 : vector<17x1xf32>
    %125 = math.rsqrt %124 : vector<17x1xf32>
    %126 = vector.broadcast %125 : vector<17x1xf32> to vector<17x32xf32>
    %127 = arith.mulf %117, %126 : vector<17x32xf32>
    %128 = vector.broadcast %13 : vector<1x32xf32> to vector<17x32xf32>
    %129 = arith.mulf %127, %128 : vector<17x32xf32>
    %130 = vector.broadcast %14 : vector<1x32xf32> to vector<17x32xf32>
    %131 = arith.addf %129, %130 : vector<17x32xf32>
    %132 = arith.truncf %131 : vector<17x32xf32> to vector<17x32xbf16>
    %c0_40 = arith.constant 0 : index
    %c0_41 = arith.constant 0 : index
    %c0_42 = arith.constant 0 : index
    %133 = vector.load %arg5[%c0_40, %c0_41, %c0_42] : memref<2x32x128xbf16, #tpu.memory_space<vmem>>, vector<1x32x128xbf16>
    %134 = vector.shape_cast %133 : vector<1x32x128xbf16> to vector<32x128xbf16>
    %cst_43 = arith.constant dense<0.000000e+00> : vector<17x128xf32>
    %135 = tpu.matmul %132, %134, %cst_43 {dimension_numbers = #tpu.dot_dimension_numbers<[1], [0], [0], [1], [0, 0, 1, 1], [], []>} : vector<17x32xbf16>, vector<32x128xbf16>, vector<17x128xf32> -> vector<17x128xf32>
    %136 = vector.broadcast %15 : vector<1x128xf32> to vector<17x128xf32>
    %137 = arith.addf %135, %136 : vector<17x128xf32>
    %cst_44 = arith.constant 5.000000e-01 : f32
    %138 = vector.broadcast %cst_44 : f32 to vector<17x128xf32>
    %139 = arith.mulf %138, %137 : vector<17x128xf32>
    %cst_45 = arith.constant 0.707106769 : f32
    %140 = vector.broadcast %cst_45 : f32 to vector<17x128xf32>
    %141 = arith.mulf %137, %140 : vector<17x128xf32>
    %cst_46 = arith.constant 0.000000e+00 : f32
    %142 = vector.broadcast %cst_46 : f32 to vector<17x128xf32>
    %143 = arith.cmpf oge, %141, %142 : vector<17x128xf32>
    %cst_47 = arith.constant 1.000000e+00 : f32
    %cst_48 = arith.constant -1.000000e+00 : f32
    %144 = vector.broadcast %cst_47 : f32 to vector<17x128xf32>
    %145 = vector.broadcast %cst_48 : f32 to vector<17x128xf32>
    %146 = arith.select %143, %144, %145 : vector<17x128xi1>, vector<17x128xf32>
    %147 = math.absf %141 : vector<17x128xf32>
    %cst_49 = arith.constant 0.327591091 : f32
    %148 = vector.broadcast %cst_49 : f32 to vector<17x128xf32>
    %149 = arith.mulf %148, %147 : vector<17x128xf32>
    %cst_50 = arith.constant 1.000000e+00 : f32
    %150 = vector.broadcast %cst_50 : f32 to vector<17x128xf32>
    %151 = arith.addf %150, %149 : vector<17x128xf32>
    %152 = tpu.reciprocal %151 : vector<17x128xf32> -> vector<17x128xf32>
    %cst_51 = arith.constant 1.06140542 : f32
    %153 = vector.broadcast %cst_51 : f32 to vector<17x128xf32>
    %154 = arith.mulf %153, %152 : vector<17x128xf32>
    %cst_52 = arith.constant -1.45315206 : f32
    %155 = vector.broadcast %cst_52 : f32 to vector<17x128xf32>
    %156 = arith.addf %154, %155 : vector<17x128xf32>
    %157 = arith.mulf %156, %152 : vector<17x128xf32>
    %cst_53 = arith.constant 1.42141378 : f32
    %158 = vector.broadcast %cst_53 : f32 to vector<17x128xf32>
    %159 = arith.addf %157, %158 : vector<17x128xf32>
    %160 = arith.mulf %159, %152 : vector<17x128xf32>
    %cst_54 = arith.constant -0.284496725 : f32
    %161 = vector.broadcast %cst_54 : f32 to vector<17x128xf32>
    %162 = arith.addf %160, %161 : vector<17x128xf32>
    %163 = arith.mulf %162, %152 : vector<17x128xf32>
    %cst_55 = arith.constant 0.254829586 : f32
    %164 = vector.broadcast %cst_55 : f32 to vector<17x128xf32>
    %165 = arith.addf %163, %164 : vector<17x128xf32>
    %166 = arith.mulf %165, %152 : vector<17x128xf32>
    %cst_56 = arith.constant 0.000000e+00 : f32
    %167 = vector.broadcast %cst_56 : f32 to vector<17x128xf32>
    %168 = arith.subf %167, %147 : vector<17x128xf32>
    %169 = arith.mulf %168, %147 : vector<17x128xf32>
    %170 = math.exp %169 : vector<17x128xf32>
    %171 = arith.mulf %166, %170 : vector<17x128xf32>
    %cst_57 = arith.constant 1.000000e+00 : f32
    %172 = vector.broadcast %cst_57 : f32 to vector<17x128xf32>
    %173 = arith.subf %172, %171 : vector<17x128xf32>
    %174 = arith.mulf %146, %173 : vector<17x128xf32>
    %cst_58 = arith.constant 1.000000e+00 : f32
    %175 = vector.broadcast %cst_58 : f32 to vector<17x128xf32>
    %176 = arith.addf %175, %174 : vector<17x128xf32>
    %177 = arith.mulf %139, %176 : vector<17x128xf32>
    %178 = arith.truncf %177 : vector<17x128xf32> to vector<17x128xbf16>
    %c0_59 = arith.constant 0 : index
    %c0_60 = arith.constant 0 : index
    %c0_61 = arith.constant 0 : index
    %179 = vector.load %arg6[%c0_59, %c0_60, %c0_61] : memref<2x128x32xbf16, #tpu.memory_space<vmem>>, vector<1x128x32xbf16>
    %180 = vector.shape_cast %179 : vector<1x128x32xbf16> to vector<128x32xbf16>
    %cst_62 = arith.constant dense<0.000000e+00> : vector<17x32xf32>
    %181 = tpu.matmul %178, %180, %cst_62 {dimension_numbers = #tpu.dot_dimension_numbers<[1], [0], [0], [1], [0, 0, 1, 1], [], []>} : vector<17x128xbf16>, vector<128x32xbf16>, vector<17x32xf32> -> vector<17x32xf32>
    %182 = vector.broadcast %16 : vector<1x32xf32> to vector<17x32xf32>
    %183 = arith.addf %181, %182 : vector<17x32xf32>
    %184 = vector.broadcast %17 : vector<1x32xf32> to vector<17x32xf32>
    %185 = arith.mulf %184, %183 : vector<17x32xf32>
    %186 = arith.addf %111, %185 : vector<17x32xf32>
    %c31 = arith.constant 31 : index
    %c0_63 = arith.constant 0 : index
    %187 = vector.load %arg7[%c31, %c0_63] : memref<43x128xf32, #tpu.memory_space<vmem>>, vector<1x32xf32>
    %c32 = arith.constant 32 : index
    %c0_64 = arith.constant 0 : index
    %188 = vector.load %arg7[%c32, %c0_64] : memref<43x128xf32, #tpu.memory_space<vmem>>, vector<1x32xf32>
    %c33 = arith.constant 33 : index
    %c0_65 = arith.constant 0 : index
    %189 = vector.load %arg7[%c33, %c0_65] : memref<43x128xf32, #tpu.memory_space<vmem>>, vector<1x32xf32>
    %c34 = arith.constant 34 : index
    %c0_66 = arith.constant 0 : index
    %190 = vector.load %arg7[%c34, %c0_66] : memref<43x128xf32, #tpu.memory_space<vmem>>, vector<1x32xf32>
    %c35 = arith.constant 35 : index
    %c0_67 = arith.constant 0 : index
    %191 = vector.load %arg7[%c35, %c0_67] : memref<43x128xf32, #tpu.memory_space<vmem>>, vector<1x32xf32>
    %c36 = arith.constant 36 : index
    %c0_68 = arith.constant 0 : index
    %192 = vector.load %arg7[%c36, %c0_68] : memref<43x128xf32, #tpu.memory_space<vmem>>, vector<1x32xf32>
    %c37 = arith.constant 37 : index
    %c0_69 = arith.constant 0 : index
    %193 = vector.load %arg7[%c37, %c0_69] : memref<43x128xf32, #tpu.memory_space<vmem>>, vector<1x32xf32>
    %c38 = arith.constant 38 : index
    %c0_70 = arith.constant 0 : index
    %194 = vector.load %arg7[%c38, %c0_70] : memref<43x128xf32, #tpu.memory_space<vmem>>, vector<1x32xf32>
    %c39 = arith.constant 39 : index
    %c0_71 = arith.constant 0 : index
    %195 = vector.load %arg7[%c39, %c0_71] : memref<43x128xf32, #tpu.memory_space<vmem>>, vector<1x32xf32>
    %c40 = arith.constant 40 : index
    %c0_72 = arith.constant 0 : index
    %196 = vector.load %arg7[%c40, %c0_72] : memref<43x128xf32, #tpu.memory_space<vmem>>, vector<1x128xf32>
    %c41 = arith.constant 41 : index
    %c0_73 = arith.constant 0 : index
    %197 = vector.load %arg7[%c41, %c0_73] : memref<43x128xf32, #tpu.memory_space<vmem>>, vector<1x32xf32>
    %c42 = arith.constant 42 : index
    %c0_74 = arith.constant 0 : index
    %198 = vector.load %arg7[%c42, %c0_74] : memref<43x128xf32, #tpu.memory_space<vmem>>, vector<1x32xf32>
    %cst_75 = arith.constant dense<0.000000e+00> : vector<17xf32>
    %199 = vector.multi_reduction <add>, %186, %cst_75 [1] : vector<17x32xf32> to vector<17xf32>
    %200 = vector.shape_cast %199 : vector<17xf32> to vector<17x1xf32>
    %cst_76 = arith.constant 3.200000e+01 : f32
    %201 = vector.broadcast %cst_76 : f32 to vector<17x1xf32>
    %202 = arith.divf %200, %201 : vector<17x1xf32>
    %203 = vector.broadcast %202 : vector<17x1xf32> to vector<17x32xf32>
    %204 = arith.subf %186, %203 : vector<17x32xf32>
    %205 = arith.mulf %204, %204 : vector<17x32xf32>
    %cst_77 = arith.constant dense<0.000000e+00> : vector<17xf32>
    %206 = vector.multi_reduction <add>, %205, %cst_77 [1] : vector<17x32xf32> to vector<17xf32>
    %207 = vector.shape_cast %206 : vector<17xf32> to vector<17x1xf32>
    %cst_78 = arith.constant 3.200000e+01 : f32
    %208 = vector.broadcast %cst_78 : f32 to vector<17x1xf32>
    %209 = arith.divf %207, %208 : vector<17x1xf32>
    %cst_79 = arith.constant 9.99999997E-7 : f32
    %210 = vector.broadcast %cst_79 : f32 to vector<17x1xf32>
    %211 = arith.addf %209, %210 : vector<17x1xf32>
    %212 = math.rsqrt %211 : vector<17x1xf32>
    %213 = vector.broadcast %212 : vector<17x1xf32> to vector<17x32xf32>
    %214 = arith.mulf %204, %213 : vector<17x32xf32>
    %215 = vector.broadcast %187 : vector<1x32xf32> to vector<17x32xf32>
    %216 = arith.mulf %214, %215 : vector<17x32xf32>
    %217 = vector.broadcast %188 : vector<1x32xf32> to vector<17x32xf32>
    %218 = arith.addf %216, %217 : vector<17x32xf32>
    %219 = arith.truncf %218 : vector<17x32xf32> to vector<17x32xbf16>
    %c1 = arith.constant 1 : index
    %c0_80 = arith.constant 0 : index
    %c0_81 = arith.constant 0 : index
    %220 = vector.load %arg3[%c1, %c0_80, %c0_81] : memref<2x32x96xbf16, #tpu.memory_space<vmem>>, vector<1x32x96xbf16>
    %221 = vector.shape_cast %220 : vector<1x32x96xbf16> to vector<32x96xbf16>
    %cst_82 = arith.constant dense<0.000000e+00> : vector<17x96xf32>
    %222 = tpu.matmul %219, %221, %cst_82 {dimension_numbers = #tpu.dot_dimension_numbers<[1], [0], [0], [1], [0, 0, 1, 1], [], []>} : vector<17x32xbf16>, vector<32x96xbf16>, vector<17x96xf32> -> vector<17x96xf32>
    %223 = vector.extract_strided_slice %222 {offsets = [0, 0], sizes = [17, 32], strides = [1, 1]} : vector<17x96xf32> to vector<17x32xf32>
    %224 = vector.broadcast %189 : vector<1x32xf32> to vector<17x32xf32>
    %225 = arith.addf %223, %224 : vector<17x32xf32>
    %226 = vector.extract_strided_slice %222 {offsets = [0, 32], sizes = [17, 32], strides = [1, 1]} : vector<17x96xf32> to vector<17x32xf32>
    %227 = vector.broadcast %190 : vector<1x32xf32> to vector<17x32xf32>
    %228 = arith.addf %226, %227 : vector<17x32xf32>
    %229 = vector.extract_strided_slice %222 {offsets = [0, 64], sizes = [17, 32], strides = [1, 1]} : vector<17x96xf32> to vector<17x32xf32>
    %230 = vector.broadcast %191 : vector<1x32xf32> to vector<17x32xf32>
    %231 = arith.addf %229, %230 : vector<17x32xf32>
    %232 = vector.extract_strided_slice %225 {offsets = [0, 0], sizes = [17, 8], strides = [1, 1]} : vector<17x32xf32> to vector<17x8xf32>
    %233 = vector.extract_strided_slice %225 {offsets = [0, 8], sizes = [17, 8], strides = [1, 1]} : vector<17x32xf32> to vector<17x8xf32>
    %234 = vector.extract_strided_slice %225 {offsets = [0, 16], sizes = [17, 8], strides = [1, 1]} : vector<17x32xf32> to vector<17x8xf32>
    %235 = vector.extract_strided_slice %225 {offsets = [0, 24], sizes = [17, 8], strides = [1, 1]} : vector<17x32xf32> to vector<17x8xf32>
    %236 = vector.shape_cast %232 : vector<17x8xf32> to vector<1x17x8xf32>
    %237 = vector.shape_cast %233 : vector<17x8xf32> to vector<1x17x8xf32>
    %238 = vector.shape_cast %234 : vector<17x8xf32> to vector<1x17x8xf32>
    %239 = vector.shape_cast %235 : vector<17x8xf32> to vector<1x17x8xf32>
    %240 = tpu.concatenate %236, %237, %238, %239 in 0 : vector<1x17x8xf32>, vector<1x17x8xf32>, vector<1x17x8xf32>, vector<1x17x8xf32> -> vector<4x17x8xf32>
    %241 = arith.truncf %240 : vector<4x17x8xf32> to vector<4x17x8xbf16>
    %242 = vector.extract_strided_slice %228 {offsets = [0, 0], sizes = [17, 8], strides = [1, 1]} : vector<17x32xf32> to vector<17x8xf32>
    %243 = vector.extract_strided_slice %228 {offsets = [0, 8], sizes = [17, 8], strides = [1, 1]} : vector<17x32xf32> to vector<17x8xf32>
    %244 = vector.extract_strided_slice %228 {offsets = [0, 16], sizes = [17, 8], strides = [1, 1]} : vector<17x32xf32> to vector<17x8xf32>
    %245 = vector.extract_strided_slice %228 {offsets = [0, 24], sizes = [17, 8], strides = [1, 1]} : vector<17x32xf32> to vector<17x8xf32>
    %246 = vector.shape_cast %242 : vector<17x8xf32> to vector<1x17x8xf32>
    %247 = vector.shape_cast %243 : vector<17x8xf32> to vector<1x17x8xf32>
    %248 = vector.shape_cast %244 : vector<17x8xf32> to vector<1x17x8xf32>
    %249 = vector.shape_cast %245 : vector<17x8xf32> to vector<1x17x8xf32>
    %250 = tpu.concatenate %246, %247, %248, %249 in 0 : vector<1x17x8xf32>, vector<1x17x8xf32>, vector<1x17x8xf32>, vector<1x17x8xf32> -> vector<4x17x8xf32>
    %251 = arith.truncf %250 : vector<4x17x8xf32> to vector<4x17x8xbf16>
    %252 = vector.extract_strided_slice %231 {offsets = [0, 0], sizes = [17, 8], strides = [1, 1]} : vector<17x32xf32> to vector<17x8xf32>
    %253 = vector.extract_strided_slice %231 {offsets = [0, 8], sizes = [17, 8], strides = [1, 1]} : vector<17x32xf32> to vector<17x8xf32>
    %254 = vector.extract_strided_slice %231 {offsets = [0, 16], sizes = [17, 8], strides = [1, 1]} : vector<17x32xf32> to vector<17x8xf32>
    %255 = vector.extract_strided_slice %231 {offsets = [0, 24], sizes = [17, 8], strides = [1, 1]} : vector<17x32xf32> to vector<17x8xf32>
    %256 = vector.shape_cast %252 : vector<17x8xf32> to vector<1x17x8xf32>
    %257 = vector.shape_cast %253 : vector<17x8xf32> to vector<1x17x8xf32>
    %258 = vector.shape_cast %254 : vector<17x8xf32> to vector<1x17x8xf32>
    %259 = vector.shape_cast %255 : vector<17x8xf32> to vector<1x17x8xf32>
    %260 = tpu.concatenate %256, %257, %258, %259 in 0 : vector<1x17x8xf32>, vector<1x17x8xf32>, vector<1x17x8xf32>, vector<1x17x8xf32> -> vector<4x17x8xf32>
    %261 = arith.truncf %260 : vector<4x17x8xf32> to vector<4x17x8xbf16>
    %cst_83 = arith.constant dense<0.000000e+00> : vector<4x17x17xf32>
    %262 = tpu.matmul %241, %251, %cst_83 {dimension_numbers = #tpu.dot_dimension_numbers<[2], [2], [1], [1], [0, 0, 0, 1, 1, 1], [0], [0]>} : vector<4x17x8xbf16>, vector<4x17x8xbf16>, vector<4x17x17xf32> -> vector<4x17x17xf32>
    %cst_84 = arith.constant dense<0xFF800000> : vector<4x17xf32>
    %263 = vector.multi_reduction <maximumf>, %262, %cst_84 [2] : vector<4x17x17xf32> to vector<4x17xf32>
    %264 = vector.shape_cast %263 : vector<4x17xf32> to vector<4x17x1xf32>
    %265 = vector.broadcast %264 : vector<4x17x1xf32> to vector<4x17x17xf32>
    %266 = arith.subf %262, %265 : vector<4x17x17xf32>
    %267 = math.exp %266 : vector<4x17x17xf32>
    %cst_85 = arith.constant dense<0.000000e+00> : vector<4x17xf32>
    %268 = vector.multi_reduction <add>, %267, %cst_85 [2] : vector<4x17x17xf32> to vector<4x17xf32>
    %269 = vector.shape_cast %268 : vector<4x17xf32> to vector<4x17x1xf32>
    %270 = tpu.reciprocal %269 {approx = true} : vector<4x17x1xf32> -> vector<4x17x1xf32>
    %271 = vector.broadcast %270 : vector<4x17x1xf32> to vector<4x17x17xf32>
    %272 = arith.mulf %267, %271 : vector<4x17x17xf32>
    %273 = arith.truncf %272 : vector<4x17x17xf32> to vector<4x17x17xbf16>
    %cst_86 = arith.constant dense<0.000000e+00> : vector<4x17x8xf32>
    %274 = tpu.matmul %273, %261, %cst_86 {dimension_numbers = #tpu.dot_dimension_numbers<[2], [1], [1], [2], [0, 0, 0, 1, 1, 2], [0], [0]>} : vector<4x17x17xbf16>, vector<4x17x8xbf16>, vector<4x17x8xf32> -> vector<4x17x8xf32>
    %275 = vector.extract_strided_slice %274 {offsets = [0, 0, 0], sizes = [1, 17, 8], strides = [1, 1, 1]} : vector<4x17x8xf32> to vector<1x17x8xf32>
    %276 = vector.shape_cast %275 : vector<1x17x8xf32> to vector<17x8xf32>
    %277 = vector.extract_strided_slice %274 {offsets = [1, 0, 0], sizes = [1, 17, 8], strides = [1, 1, 1]} : vector<4x17x8xf32> to vector<1x17x8xf32>
    %278 = vector.shape_cast %277 : vector<1x17x8xf32> to vector<17x8xf32>
    %279 = vector.extract_strided_slice %274 {offsets = [2, 0, 0], sizes = [1, 17, 8], strides = [1, 1, 1]} : vector<4x17x8xf32> to vector<1x17x8xf32>
    %280 = vector.shape_cast %279 : vector<1x17x8xf32> to vector<17x8xf32>
    %281 = vector.extract_strided_slice %274 {offsets = [3, 0, 0], sizes = [1, 17, 8], strides = [1, 1, 1]} : vector<4x17x8xf32> to vector<1x17x8xf32>
    %282 = vector.shape_cast %281 : vector<1x17x8xf32> to vector<17x8xf32>
    %283 = tpu.concatenate %276, %278, %280, %282 in 1 : vector<17x8xf32>, vector<17x8xf32>, vector<17x8xf32>, vector<17x8xf32> -> vector<17x32xf32>
    %284 = arith.truncf %283 : vector<17x32xf32> to vector<17x32xbf16>
    %c1_87 = arith.constant 1 : index
    %c0_88 = arith.constant 0 : index
    %c0_89 = arith.constant 0 : index
    %285 = vector.load %arg4[%c1_87, %c0_88, %c0_89] : memref<2x32x32xbf16, #tpu.memory_space<vmem>>, vector<1x32x32xbf16>
    %286 = vector.shape_cast %285 : vector<1x32x32xbf16> to vector<32x32xbf16>
    %cst_90 = arith.constant dense<0.000000e+00> : vector<17x32xf32>
    %287 = tpu.matmul %284, %286, %cst_90 {dimension_numbers = #tpu.dot_dimension_numbers<[1], [0], [0], [1], [0, 0, 1, 1], [], []>} : vector<17x32xbf16>, vector<32x32xbf16>, vector<17x32xf32> -> vector<17x32xf32>
    %288 = vector.broadcast %192 : vector<1x32xf32> to vector<17x32xf32>
    %289 = arith.addf %287, %288 : vector<17x32xf32>
    %290 = vector.broadcast %193 : vector<1x32xf32> to vector<17x32xf32>
    %291 = arith.mulf %290, %289 : vector<17x32xf32>
    %292 = arith.addf %186, %291 : vector<17x32xf32>
    %cst_91 = arith.constant dense<0.000000e+00> : vector<17xf32>
    %293 = vector.multi_reduction <add>, %292, %cst_91 [1] : vector<17x32xf32> to vector<17xf32>
    %294 = vector.shape_cast %293 : vector<17xf32> to vector<17x1xf32>
    %cst_92 = arith.constant 3.200000e+01 : f32
    %295 = vector.broadcast %cst_92 : f32 to vector<17x1xf32>
    %296 = arith.divf %294, %295 : vector<17x1xf32>
    %297 = vector.broadcast %296 : vector<17x1xf32> to vector<17x32xf32>
    %298 = arith.subf %292, %297 : vector<17x32xf32>
    %299 = arith.mulf %298, %298 : vector<17x32xf32>
    %cst_93 = arith.constant dense<0.000000e+00> : vector<17xf32>
    %300 = vector.multi_reduction <add>, %299, %cst_93 [1] : vector<17x32xf32> to vector<17xf32>
    %301 = vector.shape_cast %300 : vector<17xf32> to vector<17x1xf32>
    %cst_94 = arith.constant 3.200000e+01 : f32
    %302 = vector.broadcast %cst_94 : f32 to vector<17x1xf32>
    %303 = arith.divf %301, %302 : vector<17x1xf32>
    %cst_95 = arith.constant 9.99999997E-7 : f32
    %304 = vector.broadcast %cst_95 : f32 to vector<17x1xf32>
    %305 = arith.addf %303, %304 : vector<17x1xf32>
    %306 = math.rsqrt %305 : vector<17x1xf32>
    %307 = vector.broadcast %306 : vector<17x1xf32> to vector<17x32xf32>
    %308 = arith.mulf %298, %307 : vector<17x32xf32>
    %309 = vector.broadcast %194 : vector<1x32xf32> to vector<17x32xf32>
    %310 = arith.mulf %308, %309 : vector<17x32xf32>
    %311 = vector.broadcast %195 : vector<1x32xf32> to vector<17x32xf32>
    %312 = arith.addf %310, %311 : vector<17x32xf32>
    %313 = arith.truncf %312 : vector<17x32xf32> to vector<17x32xbf16>
    %c1_96 = arith.constant 1 : index
    %c0_97 = arith.constant 0 : index
    %c0_98 = arith.constant 0 : index
    %314 = vector.load %arg5[%c1_96, %c0_97, %c0_98] : memref<2x32x128xbf16, #tpu.memory_space<vmem>>, vector<1x32x128xbf16>
    %315 = vector.shape_cast %314 : vector<1x32x128xbf16> to vector<32x128xbf16>
    %cst_99 = arith.constant dense<0.000000e+00> : vector<17x128xf32>
    %316 = tpu.matmul %313, %315, %cst_99 {dimension_numbers = #tpu.dot_dimension_numbers<[1], [0], [0], [1], [0, 0, 1, 1], [], []>} : vector<17x32xbf16>, vector<32x128xbf16>, vector<17x128xf32> -> vector<17x128xf32>
    %317 = vector.broadcast %196 : vector<1x128xf32> to vector<17x128xf32>
    %318 = arith.addf %316, %317 : vector<17x128xf32>
    %cst_100 = arith.constant 5.000000e-01 : f32
    %319 = vector.broadcast %cst_100 : f32 to vector<17x128xf32>
    %320 = arith.mulf %319, %318 : vector<17x128xf32>
    %cst_101 = arith.constant 0.707106769 : f32
    %321 = vector.broadcast %cst_101 : f32 to vector<17x128xf32>
    %322 = arith.mulf %318, %321 : vector<17x128xf32>
    %cst_102 = arith.constant 0.000000e+00 : f32
    %323 = vector.broadcast %cst_102 : f32 to vector<17x128xf32>
    %324 = arith.cmpf oge, %322, %323 : vector<17x128xf32>
    %cst_103 = arith.constant 1.000000e+00 : f32
    %cst_104 = arith.constant -1.000000e+00 : f32
    %325 = vector.broadcast %cst_103 : f32 to vector<17x128xf32>
    %326 = vector.broadcast %cst_104 : f32 to vector<17x128xf32>
    %327 = arith.select %324, %325, %326 : vector<17x128xi1>, vector<17x128xf32>
    %328 = math.absf %322 : vector<17x128xf32>
    %cst_105 = arith.constant 0.327591091 : f32
    %329 = vector.broadcast %cst_105 : f32 to vector<17x128xf32>
    %330 = arith.mulf %329, %328 : vector<17x128xf32>
    %cst_106 = arith.constant 1.000000e+00 : f32
    %331 = vector.broadcast %cst_106 : f32 to vector<17x128xf32>
    %332 = arith.addf %331, %330 : vector<17x128xf32>
    %333 = tpu.reciprocal %332 : vector<17x128xf32> -> vector<17x128xf32>
    %cst_107 = arith.constant 1.06140542 : f32
    %334 = vector.broadcast %cst_107 : f32 to vector<17x128xf32>
    %335 = arith.mulf %334, %333 : vector<17x128xf32>
    %cst_108 = arith.constant -1.45315206 : f32
    %336 = vector.broadcast %cst_108 : f32 to vector<17x128xf32>
    %337 = arith.addf %335, %336 : vector<17x128xf32>
    %338 = arith.mulf %337, %333 : vector<17x128xf32>
    %cst_109 = arith.constant 1.42141378 : f32
    %339 = vector.broadcast %cst_109 : f32 to vector<17x128xf32>
    %340 = arith.addf %338, %339 : vector<17x128xf32>
    %341 = arith.mulf %340, %333 : vector<17x128xf32>
    %cst_110 = arith.constant -0.284496725 : f32
    %342 = vector.broadcast %cst_110 : f32 to vector<17x128xf32>
    %343 = arith.addf %341, %342 : vector<17x128xf32>
    %344 = arith.mulf %343, %333 : vector<17x128xf32>
    %cst_111 = arith.constant 0.254829586 : f32
    %345 = vector.broadcast %cst_111 : f32 to vector<17x128xf32>
    %346 = arith.addf %344, %345 : vector<17x128xf32>
    %347 = arith.mulf %346, %333 : vector<17x128xf32>
    %cst_112 = arith.constant 0.000000e+00 : f32
    %348 = vector.broadcast %cst_112 : f32 to vector<17x128xf32>
    %349 = arith.subf %348, %328 : vector<17x128xf32>
    %350 = arith.mulf %349, %328 : vector<17x128xf32>
    %351 = math.exp %350 : vector<17x128xf32>
    %352 = arith.mulf %347, %351 : vector<17x128xf32>
    %cst_113 = arith.constant 1.000000e+00 : f32
    %353 = vector.broadcast %cst_113 : f32 to vector<17x128xf32>
    %354 = arith.subf %353, %352 : vector<17x128xf32>
    %355 = arith.mulf %327, %354 : vector<17x128xf32>
    %cst_114 = arith.constant 1.000000e+00 : f32
    %356 = vector.broadcast %cst_114 : f32 to vector<17x128xf32>
    %357 = arith.addf %356, %355 : vector<17x128xf32>
    %358 = arith.mulf %320, %357 : vector<17x128xf32>
    %359 = arith.truncf %358 : vector<17x128xf32> to vector<17x128xbf16>
    %c1_115 = arith.constant 1 : index
    %c0_116 = arith.constant 0 : index
    %c0_117 = arith.constant 0 : index
    %360 = vector.load %arg6[%c1_115, %c0_116, %c0_117] : memref<2x128x32xbf16, #tpu.memory_space<vmem>>, vector<1x128x32xbf16>
    %361 = vector.shape_cast %360 : vector<1x128x32xbf16> to vector<128x32xbf16>
    %cst_118 = arith.constant dense<0.000000e+00> : vector<17x32xf32>
    %362 = tpu.matmul %359, %361, %cst_118 {dimension_numbers = #tpu.dot_dimension_numbers<[1], [0], [0], [1], [0, 0, 1, 1], [], []>} : vector<17x128xbf16>, vector<128x32xbf16>, vector<17x32xf32> -> vector<17x32xf32>
    %363 = vector.broadcast %197 : vector<1x32xf32> to vector<17x32xf32>
    %364 = arith.addf %362, %363 : vector<17x32xf32>
    %365 = vector.broadcast %198 : vector<1x32xf32> to vector<17x32xf32>
    %366 = arith.mulf %365, %364 : vector<17x32xf32>
    %367 = arith.addf %292, %366 : vector<17x32xf32>
    %c17 = arith.constant 17 : index
    %c0_119 = arith.constant 0 : index
    %368 = vector.load %arg7[%c17, %c0_119] : memref<43x128xf32, #tpu.memory_space<vmem>>, vector<1x32xf32>
    %c18 = arith.constant 18 : index
    %c0_120 = arith.constant 0 : index
    %369 = vector.load %arg7[%c18, %c0_120] : memref<43x128xf32, #tpu.memory_space<vmem>>, vector<1x32xf32>
    %cst_121 = arith.constant dense<0.000000e+00> : vector<17xf32>
    %370 = vector.multi_reduction <add>, %367, %cst_121 [1] : vector<17x32xf32> to vector<17xf32>
    %371 = vector.shape_cast %370 : vector<17xf32> to vector<17x1xf32>
    %cst_122 = arith.constant 3.200000e+01 : f32
    %372 = vector.broadcast %cst_122 : f32 to vector<17x1xf32>
    %373 = arith.divf %371, %372 : vector<17x1xf32>
    %374 = vector.broadcast %373 : vector<17x1xf32> to vector<17x32xf32>
    %375 = arith.subf %367, %374 : vector<17x32xf32>
    %376 = arith.mulf %375, %375 : vector<17x32xf32>
    %cst_123 = arith.constant dense<0.000000e+00> : vector<17xf32>
    %377 = vector.multi_reduction <add>, %376, %cst_123 [1] : vector<17x32xf32> to vector<17xf32>
    %378 = vector.shape_cast %377 : vector<17xf32> to vector<17x1xf32>
    %cst_124 = arith.constant 3.200000e+01 : f32
    %379 = vector.broadcast %cst_124 : f32 to vector<17x1xf32>
    %380 = arith.divf %378, %379 : vector<17x1xf32>
    %cst_125 = arith.constant 9.99999997E-7 : f32
    %381 = vector.broadcast %cst_125 : f32 to vector<17x1xf32>
    %382 = arith.addf %380, %381 : vector<17x1xf32>
    %383 = math.rsqrt %382 : vector<17x1xf32>
    %384 = vector.broadcast %383 : vector<17x1xf32> to vector<17x32xf32>
    %385 = arith.mulf %375, %384 : vector<17x32xf32>
    %386 = vector.broadcast %368 : vector<1x32xf32> to vector<17x32xf32>
    %387 = arith.mulf %385, %386 : vector<17x32xf32>
    %388 = vector.broadcast %369 : vector<1x32xf32> to vector<17x32xf32>
    %389 = arith.addf %387, %388 : vector<17x32xf32>
    %c0_126 = arith.constant 0 : index
    %c0_127 = arith.constant 0 : index
    %c0_128 = arith.constant 0 : index
    %390 = vector.load %arg8[%c0_126, %c0_127, %c0_128] : memref<1x17x32xf32, #tpu.memory_space<vmem>>, vector<1x17x32xf32>
    %391 = vector.shape_cast %390 : vector<1x17x32xf32> to vector<17x32xf32>
    %392 = vector.shape_cast %389 : vector<17x32xf32> to vector<1x17x32xf32>
    tpu.vector_store %arg8[%c0_126, %c0_127, %c0_128], %392 {strides = array<i32>} : memref<1x17x32xf32, #tpu.memory_space<vmem>>, vector<1x17x32xf32>,
    return
  }
  func.func @transform_0(%arg0: i32) -> (i32, i32, i32) {
    %c0_i32 = arith.constant 0 : i32
    %c0_i32_0 = arith.constant 0 : i32
    %c0_i32_1 = arith.constant 0 : i32
    return %arg0, %c0_i32, %c0_i32_0 : i32, i32, i32
  }
  func.func @transform_1(%arg0: i32) -> (i32, i32) {
    %c0_i32 = arith.constant 0 : i32
    %c0_i32_0 = arith.constant 0 : i32
    %c0_i32_1 = arith.constant 0 : i32
    return %c0_i32, %c0_i32_0 : i32, i32
  }
  func.func @transform_2(%arg0: i32) -> (i32, i32, i32) {
    %c0_i32 = arith.constant 0 : i32
    %c0_i32_0 = arith.constant 0 : i32
    %c0_i32_1 = arith.constant 0 : i32
    %c0_i32_2 = arith.constant 0 : i32
    return %c0_i32, %c0_i32_0, %c0_i32_1 : i32, i32, i32
  }
  func.func @transform_3(%arg0: i32) -> (i32, i32, i32) {
    %c0_i32 = arith.constant 0 : i32
    %c0_i32_0 = arith.constant 0 : i32
    %c0_i32_1 = arith.constant 0 : i32
    %c0_i32_2 = arith.constant 0 : i32
    return %c0_i32, %c0_i32_0, %c0_i32_1 : i32, i32, i32
  }
  func.func @transform_4(%arg0: i32) -> (i32, i32, i32) {
    %c0_i32 = arith.constant 0 : i32
    %c0_i32_0 = arith.constant 0 : i32
    %c0_i32_1 = arith.constant 0 : i32
    %c0_i32_2 = arith.constant 0 : i32
    return %c0_i32, %c0_i32_0, %c0_i32_1 : i32, i32, i32
  }
  func.func @transform_5(%arg0: i32) -> (i32, i32, i32) {
    %c0_i32 = arith.constant 0 : i32
    %c0_i32_0 = arith.constant 0 : i32
    %c0_i32_1 = arith.constant 0 : i32
    %c0_i32_2 = arith.constant 0 : i32
    return %c0_i32, %c0_i32_0, %c0_i32_1 : i32, i32, i32
  }
  func.func @transform_6(%arg0: i32) -> (i32, i32) {
    %c0_i32 = arith.constant 0 : i32
    %c0_i32_0 = arith.constant 0 : i32
    %c0_i32_1 = arith.constant 0 : i32
    return %c0_i32, %c0_i32_0 : i32, i32
  }
  func.func @transform_7(%arg0: i32) -> (i32, i32, i32) {
    %c0_i32 = arith.constant 0 : i32
    %c0_i32_0 = arith.constant 0 : i32
    %c0_i32_1 = arith.constant 0 : i32
    return %arg0, %c0_i32, %c0_i32_0 : i32, i32, i32
  }
}

</mosaic_0001>

<bundles_post_ra>
// kernel: tpu_custom_call.1
= control target key start
LH: loop header
LB: loop body
LE: loop exit
PB: predicated region body
PF: predicated region fallthrough
CT: control target
= control target key end

     0   :  { %s4339_s24 = smov 0   ;;  %s5442_s0 = inlined_call_operand.vmem [shape: bf16[2,17,768], index: 0, kind: input, shape index: {}]   ;;  %s5443_s1 = inlined_call_operand.vmem [shape: bf16[768,32], index: 1, kind: input, shape index: {}]   ;;  %s5444_s2 = inlined_call_operand.vmem [shape: bf16[2,32,96], index: 2, kind: input, shape index: {}]   ;;  %s5445_s3 = inlined_call_operand.vmem [shape: bf16[2,32,32], index: 3, kind: input, shape index: {}]   ;;  %s5446_s4 = inlined_call_operand.vmem [shape: bf16[2,32,128], index: 4, kind: input, shape index: {}]   ;;  %s5447_s5 = inlined_call_operand.vmem [shape: bf16[2,128,32], index: 5, kind: input, shape index: {}]   ;;  %s5448_s6 = inlined_call_operand.vmem [shape: f32[43,128], index: 6, kind: input, shape index: {}]   ;;  %s5449_s7 = inlined_call_operand.vmem [shape: f32[2,17,32], index: 7, kind: output, shape index: {}]  }
   0x1 LB: > { %s3452_s25 = sadd.s32 4294967295, %s4285_s24   ;;  %p3456_p0 = scmp.ge.s32.totalorder %s4285_s24, 1  ;;  %s4285_s24 = sphi %s4339_s24, %s17_s24  }
   0x2   : > { %p237_p1 = scmp.lt.s32.totalorder %s4285_s24, 3 }
   0x4   : > { %p238_p2 = pnand %p3456_p0, %p237_p1 }
   0x5   : > { %p269_p3 = scmp.lt.s32.totalorder (!%p238_p2), %s3452_s25, 1  ;;  %s4288_s11 = smov (!%p238_p2), 32  }
   0x6   : > { %241 = sbr.rel (%p238_p2) target bundleno = 4838 (0x12e6), region = 48  ;;  %s4289_s18 = smov (!%p238_p2), 104  }
   0x7   : > { %s4290_s19 = smov (!%p238_p2), 112   ;;  %s4292_s21 = smov (!%p238_p2), 96  }
   0x8   : > { %s4293_s26 = smov (!%p238_p2), 64   ;;  %s4295_s27 = smov (!%p238_p2), 16  }
   0x9   : > { %s4296_s28 = smov (!%p238_p2), 24   ;;  %s4297_s29 = smov (!%p238_p2), 8  }
   0xb   : > { %v3874_v0 = vld [vmem:[%s5443_s1 + $0x38] sm:$0xff]  ;;  %v3873_v4 = vld [vmem:[%s5443_s1 + $0x30] sm:$0xff]  ;;  %v3872_v8 = vld [vmem:[%s5443_s1 + $0x28] sm:$0xff]  ;;  %s5451_s25 = smov (!%p269_p3, %s3452_s25), 1  ;;  %vm847_vm0 = vcmask 261120   ;;  %vm854_vm1 = vcmask 253952  }
   0xc   : > { %v3882_v1 = vld [vmem:[%s5443_s1 + $0x78] sm:$0xff]  ;;  %727 = vmatpush.bf16.msra.mxu0 %v3874_v0  ;;  %v3881_v5 = vld [vmem:[%s5443_s1 + $0x70] sm:$0xff]  ;;  %v3880_v9 = vld [vmem:[%s5443_s1 + $0x68] sm:$0xff]  ;;  %s3959_s9 = smul.u32 72, %s5451_s25  ;;  %vm1138_vm12 = vcmask 64512   ;;  %vm1319_vm13 = vcmask 138240  }
   0xd   : > { %v3890_v2 = vld [vmem:[%s5443_s1 + $0xb8] sm:$0xff]  ;;  %745 = vmatpush.bf16.msra.mxu1 %v3882_v1  ;;  %v3889_v6 = vld [vmem:[%s5443_s1 + $0xb0] sm:$0xff]  ;;  %v3888_v10 = vld [vmem:[%s5443_s1 + $0xa8] sm:$0xff]  ;;  %vm1326_vm14 = vcmask 131072   ;;  %vm1492_vm15 = vcmask 1040384   ;;  %s3960_s8 = smul.u32 24, %s5451_s25 }
   0xe   : > { %v3898_v3 = vld [vmem:[%s5443_s1 + $0xf8] sm:$0xff]  ;;  %763 = vmatpush.bf16.msra.mxu2 %v3890_v2  ;;  %v3897_v7 = vld [vmem:[%s5443_s1 + $0xf0] sm:$0xff]  ;;  %v3896_v11 = vld [vmem:[%s5443_s1 + $0xe8] sm:$0xff]  ;;  %s4441_s20 = scalar_lea.vmem %s5442_s0, %s3959_s9 }
   0xf   : > { %781 = vmatpush.bf16.msra.mxu3 %v3898_v3  ;;  %v3871_v12 = vld [vmem:[%s5443_s1 + $0x20] sm:$0xff]  ;;  %v3870_v16 = vld [vmem:[%s5443_s1 + $0x18] sm:$0xff]  ;;  %v3869_v20 = vld [vmem:[%s5443_s1 + $0x10] sm:$0xff] }
  0x10   : > { %728 = vmatpush.bf16.msra.mxu0 %v3873_v4  ;;  %v3879_v13 = vld [vmem:[%s5443_s1 + $0x60] sm:$0xff]  ;;  %v3878_v17 = vld [vmem:[%s5443_s1 + $0x58] sm:$0xff]  ;;  %v3877_v21 = vld [vmem:[%s5443_s1 + $0x50] sm:$0xff] }
  0x11   : > { %746 = vmatpush.bf16.msra.mxu1 %v3881_v5  ;;  %v3887_v14 = vld [vmem:[%s5443_s1 + $0xa0] sm:$0xff]  ;;  %v3886_v18 = vld [vmem:[%s5443_s1 + $0x98] sm:$0xff]  ;;  %v3885_v22 = vld [vmem:[%s5443_s1 + $0x90] sm:$0xff] }
  0x12   : > { %764 = vmatpush.bf16.msra.mxu2 %v3889_v6  ;;  %v3895_v15 = vld [vmem:[%s5443_s1 + $0xe0] sm:$0xff]  ;;  %v3894_v19 = vld [vmem:[%s5443_s1 + $0xd8] sm:$0xff]  ;;  %v3893_v23 = vld [vmem:[%s5443_s1 + $0xd0] sm:$0xff] }
  0x13   : > { %782 = vmatpush.bf16.msra.mxu3 %v3897_v7  ;;  %v3868_v24 = vld [vmem:[%s5443_s1 + $0x8] sm:$0xff]  ;;  %v3867_v28 = vld [vmem:[%s5443_s1] sm:$0xff]  ;;  %v3864_v31 = vld [vmem:[%s4441_s20 + $0x14] sm:$0xf0] }
  0x14   : > { %729 = vmatpush.bf16.msra.mxu0 %v3872_v8  ;;  %v3876_v25 = vld [vmem:[%s5443_s1 + $0x48] sm:$0xff]  ;;  %v3875_v29 = vld [vmem:[%s5443_s1 + $0x40] sm:$0xff]  ;;  %v3463_v35 = vld [vmem:[%s4441_s20 + $0x18] sm:$0xf0] }
  0x15   : > { %747 = vmatpush.bf16.msra.mxu1 %v3880_v9  ;;  %v3884_v26 = vld [vmem:[%s5443_s1 + $0x88] sm:$0xff]  ;;  %v3461_v30 = vld [vmem:[%s4441_s20] sm:$0xf]  ;;  %v3861_v32 = vld [vmem:[%s4441_s20 + $0x4] sm:$0xf] }
  0x16   : > { %765 = vmatpush.bf16.msra.mxu2 %v3888_v10  ;;  %v3892_v27 = vld [vmem:[%s5443_s1 + $0xc8] sm:$0xff]  ;;  %v3883_v33 = vld [vmem:[%s5443_s1 + $0x80] sm:$0xff]  ;;  %v3906_v38 = vld [vmem:[%s5443_s1 + $0x138] sm:$0xff]  ;;  %v3462_v41 = vor.u32 %v3864_v31, %v3461_v30  ;;  %v3466_v42 = vor.u32 %v3861_v32, %v3463_v35 }
  0x17   : > { %783 = vmatpush.bf16.msra.mxu3 %v3896_v11  ;;  %v3891_v34 = vld [vmem:[%s5443_s1 + $0xc0] sm:$0xff]  ;;  %v3469_v36 = vld [vmem:[%s4441_s20 + $0x8] sm:$0xf]  ;;  %v3862_v39 = vld [vmem:[%s4441_s20 + $0xc] sm:$0xf] }
  0x18   : > { %730 = vmatpush.bf16.msra.mxu0 %v3871_v12  ;;  %v3865_v37 = vld [vmem:[%s4441_s20 + $0x1c] sm:$0xf0]  ;;  %v3471_v40 = vld [vmem:[%s4441_s20 + $0x20] sm:$0xf0]  ;;  %v3914_v44 = vld [vmem:[%s5443_s1 + $0x178] sm:$0xff] }
  0x19   : > { %748 = vmatpush.bf16.msra.mxu1 %v3879_v13  ;;  %v3470_v43 = vor.u32 %v3865_v37, %v3469_v36  ;;  %v3474_v45 = vor.u32 %v3862_v39, %v3471_v40  ;;  %v3905_v46 = vld [vmem:[%s5443_s1 + $0x130] sm:$0xff]  ;;  %v3904_v48 = vld [vmem:[%s5443_s1 + $0x128] sm:$0xff]  ;;  %v290_v51 = vld [vmem:[%s4441_s20 + $0x38] sm:$0x11] }
  0x1a   : > { %766 = vmatpush.bf16.msra.mxu2 %v3887_v14  ;;  %v3913_v47 = vld [vmem:[%s5443_s1 + $0x170] sm:$0xff]  ;;  %v3912_v49 = vld [vmem:[%s5443_s1 + $0x168] sm:$0xff]  ;;  %v3903_v52 = vld [vmem:[%s5443_s1 + $0x120] sm:$0xff]  ;;  %v411_v56 = vunpack.c.l.b16 %v290_v51  ;;  %v412_v57 = vunpack.c.h.b16 %v290_v51 }
  0x1b   : > { %784 = vmatpush.bf16.msra.mxu3 %v3895_v15  ;;  %v289_v50 = vld [vmem:[%s4441_s20 + $0x30] sm:$0x11]  ;;  %v3911_v55 = vld [vmem:[%s5443_s1 + $0x160] sm:$0xff]  ;;  %v3902_v58 = vld [vmem:[%s5443_s1 + $0x118] sm:$0xff] }
  0x1c   : > { %731 = vmatpush.bf16.msra.mxu0 %v3870_v16  ;;  %v409_v53 = vunpack.c.l.b16 %v289_v50  ;;  %v410_v54 = vunpack.c.h.b16 %v289_v50  ;;  %v423_v61 = vpack.c.b16 %v411_v56, %v411_v56  ;;  %v3910_v62 = vld [vmem:[%s5443_s1 + $0x158] sm:$0xff]  ;;  %v424_v63 = vpack.c.b16 %v412_v57, %v412_v57  ;;  %v3901_v0 = vld [vmem:[%s5443_s1 + $0x110] sm:$0xff]  ;;  %v3900_v2 = vld [vmem:[%s5443_s1 + $0x108] sm:$0xff] }
  0x1d   : > { %749 = vmatpush.bf16.msra.mxu1 %v3878_v17  ;;  %v3909_v1 = vld [vmem:[%s5443_s1 + $0x150] sm:$0xff]  ;;  %v3908_v3 = vld [vmem:[%s5443_s1 + $0x148] sm:$0xff]  ;;  %v291_v4 = vld [vmem:[%s4441_s20 + $0x40] sm:$0x11] }
  0x1e   : > { %767 = vmatpush.bf16.msra.mxu2 %v3886_v18  ;;  %v421_v59 = vpack.c.b16 %v409_v53, %v409_v53  ;;  %v422_v60 = vpack.c.b16 %v410_v54, %v410_v54  ;;  %v3899_v5 = vld [vmem:[%s5443_s1 + $0x100] sm:$0xff]  ;;  %v3477_v7 = vld [vmem:[%s4441_s20 + $0x10] sm:$0xf]  ;;  %v3866_v8 = vld [vmem:[%s4441_s20 + $0x24] sm:$0xf0]  ;;  %v413_v9 = vunpack.c.l.b16 %v291_v4  ;;  %v414_v12 = vunpack.c.h.b16 %v291_v4 }
  0x1f   : > { %785 = vmatpush.bf16.msra.mxu3 %v3894_v19  ;;  %v3907_v6 = vld [vmem:[%s5443_s1 + $0x140] sm:$0xff]  ;;  %v3863_v10 = vld [vmem:[%s4441_s20 + $0x14] sm:$0xf]  ;;  %v3479_v11 = vld [vmem:[%s4441_s20 + $0x28] sm:$0xf0]  ;;  %v3478_v13 = vor.u32 %v3866_v8, %v3477_v7  ;;  %s4291_s20 = smov 120  }
  0x20   : > { %732 = vmatpush.bf16.msra.mxu0 %v3869_v20  ;;  %v3482_v14 = vor.u32 %v3863_v10, %v3479_v11  ;;  %v425_v15 = vpack.c.b16 %v413_v9, %v413_v9  ;;  %v426_v16 = vpack.c.b16 %v414_v12, %v414_v12  ;;  %v281_v35 = vld [vmem:[%s5448_s6 + $0x8] sm:$0xff] }
  0x21   : > { %750 = vmatpush.bf16.msra.mxu1 %v3877_v21 }
  0x22   : > { %768 = vmatpush.bf16.msra.mxu2 %v3885_v22 }
  0x23   : > { %786 = vmatpush.bf16.msra.mxu3 %v3893_v23 }
  0x24   : > { %733 = vmatpush.bf16.msra.mxu0 %v3868_v24 }
  0x25   : > { %751 = vmatpush.bf16.msra.mxu1 %v3876_v25 }
  0x26   : > { %769 = vmatpush.bf16.msra.mxu2 %v3884_v26 }
  0x27   : > { %787 = vmatpush.bf16.msra.mxu3 %v3892_v27  ;;  %v280_v27 = vld [vmem:[%s5448_s6] sm:$0xff] }
  0x28   : > { %734 = vmatpush.bf16.msra.mxu0 %v3867_v28 }
  0x29   : > { %752 = vmatpush.bf16.msra.mxu1 %v3875_v29 }
  0x2a   : > { %770 = vmatpush.bf16.msra.mxu2 %v3883_v33  ;;  %v282_v33 = vld [vmem:[%s5448_s6 + $0x10] sm:$0x1] }
  0x2b   : > { %788 = vmatpush.bf16.msra.mxu3 %v3891_v34  ;;  %735 = vmatmul.bf16.vlgmr.msra.gmra.mxu0 %v3462_v41 }
  0x2c   : > { %799 = vmatpush.bf16.msrb.mxu0 %v3906_v38  ;;  %753 = vmatmul.bf16.vlgmr.msra.gmra.mxu1 %v3466_v42 }
  0x2d   : > { %771 = vmatmul.bf16.vlgmr.msra.gmra.mxu2 %v3470_v43  ;;  %817 = vmatpush.bf16.msrb.mxu1 %v3914_v44 }
  0x2e   : > { %3943 = vmatpush.bf16.msrb.mxu2 %v3906_v38  ;;  %789 = vmatmul.bf16.vlgmr.msra.gmra.mxu3 %v3474_v45 }
  0x2f   : > { %3951 = vmatpush.bf16.msrb.mxu3 %v3914_v44 }
  0x30   : > { %800 = vmatpush.bf16.msrb.mxu0 %v3905_v46 }
  0x31   : > { %818 = vmatpush.bf16.msrb.mxu1 %v3913_v47 }
  0x32   : > { %3944 = vmatpush.bf16.msrb.mxu2 %v3905_v46 }
  0x33   : > { %3952 = vmatpush.bf16.msrb.mxu3 %v3913_v47 }
  0x34   : > { %801 = vmatpush.bf16.msrb.mxu0 %v3904_v48 }
  0x35   : > { %819 = vmatpush.bf16.msrb.mxu1 %v3912_v49 }
  0x36   : > { %3945 = vmatpush.bf16.msrb.mxu2 %v3904_v48 }
  0x37   : > { %3953 = vmatpush.bf16.msrb.mxu3 %v3912_v49 }
  0x38   : > { %802 = vmatpush.bf16.msrb.mxu0 %v3903_v52 }
  0x39   : > { %820 = vmatpush.bf16.msrb.mxu1 %v3911_v55 }
  0x3a   : > { %3946 = vmatpush.bf16.msrb.mxu2 %v3903_v52 }
  0x3b   : > { %3954 = vmatpush.bf16.msrb.mxu3 %v3911_v55  ;;  %740 = vmatmul.bf16.gmra.mxu0 %v421_v59 }
  0x3c   : > { %803 = vmatpush.bf16.msrb.mxu0 %v3902_v58  ;;  %758 = vmatmul.bf16.gmra.mxu1 %v422_v60 }
  0x3d   : > { %776 = vmatmul.bf16.gmra.mxu2 %v423_v61  ;;  %821 = vmatpush.bf16.msrb.mxu1 %v3910_v62 }
  0x3e   : > { %3947 = vmatpush.bf16.msrb.mxu2 %v3902_v58  ;;  %794 = vmatmul.bf16.gmra.mxu3 %v424_v63 }
  0x3f   : > { %3955 = vmatpush.bf16.msrb.mxu3 %v3910_v62 }
  0x40   : > { %804 = vmatpush.bf16.msrb.mxu0 %v3901_v0 }
  0x41   : > { %822 = vmatpush.bf16.msrb.mxu1 %v3909_v1 }
  0x42   : > { %3948 = vmatpush.bf16.msrb.mxu2 %v3901_v0 }
  0x43   : > { %3956 = vmatpush.bf16.msrb.mxu3 %v3909_v1  ;;  %v4287_v1 = vmov 32.0  }
  0x44   : > { %805 = vmatpush.bf16.msrb.mxu0 %v3900_v2  ;;  %4127 = vrcp.f32 %v4287_v1 }
  0x45   : > { %823 = vmatpush.bf16.msrb.mxu1 %v3908_v3 }
  0x46   : > { %3949 = vmatpush.bf16.msrb.mxu2 %v3900_v2 }
  0x47   : > { %3957 = vmatpush.bf16.msrb.mxu3 %v3908_v3 }
  0x48   : > { %806 = vmatpush.bf16.msrb.mxu0 %v3899_v5 }
  0x49   : > { %824 = vmatpush.bf16.msrb.mxu1 %v3907_v6 }
  0x4a   : > { %3950 = vmatpush.bf16.msrb.mxu2 %v3899_v5  ;;  %v4128_v2 = vpop.eup %4127 }
  0x4b   : > { %3958 = vmatpush.bf16.msrb.mxu3 %v3907_v6  ;;  %807 = vmatmul.bf16.vlgmr.msrb.gmra.mxu0 %v3478_v13  ;;  %v859_v3 = vmul.f32 32.0, %v4128_v2  ;;  %vm863_vm2 = vweird.f32 %v4128_v2 }
  0x4c   : > { %825 = vmatmul.bf16.vlgmr.msrb.gmra.mxu1 %v3482_v14 }
  0x4d   : > { %812 = vmatmul.bf16.vlgmr.msrb.gmra.mxu2 %v425_v15  ;;  %v860_v4 = vsub.f32 1.0, %v859_v3 }
  0x4e   : > { %830 = vmatmul.bf16.vlgmr.msrb.gmra.mxu3 %v426_v16 }
  0x4f   : > { %v861_v5 = vmul.f32 %v4128_v2, %v860_v4 }
  0x51   : > { %v862_v6 = vadd.f32 %v4128_v2, %v861_v5 }
  0x53   : > { %v4539_v7 = vsel %vm863_vm2, %v4128_v2, %v862_v6  ;;  %vm1699_vm2 = vcmask 130048  }
  0xa8   : > { %v736_v17 = vpop.f32.mrf.mxu0 }
  0xa9   : > { %v754_v18 = vpop.f32.mrf.mxu1  ;;  %v737_v28 = vadd.f32 %v736_v17, %v280_v27  ;;  %v3915_v27 = vld [vmem:[%s5444_s2] sm:$0xff] }
  0xab   : > { %v755_v32 = vadd.f32 %v754_v18, %v737_v28 }
  0xb0   : > { %v772_v19 = vpop.f32.mrf.mxu2  ;;  %v738_v20 = vpop.f32.mrf.mxu0 }
  0xb1   : > { %v756_v21 = vpop.f32.mrf.mxu1  ;;  %v790_v22 = vpop.f32.mrf.mxu3  ;;  %v773_v36 = vadd.f32 %v772_v19, %v755_v32  ;;  %v739_v38 = vadd.f32 %v738_v20, %v281_v35 }
  0xb3   : > { %v791_v39 = vadd.f32 %v790_v22, %v773_v36  ;;  %v757_v44 = vadd.f32 %v756_v21, %v739_v38 }
  0xb8   : > { %v774_v23 = vpop.f32.mrf.mxu2  ;;  %v741_v24 = vpop.f32.mrf.mxu0 }
  0xb9   : > { %v759_v25 = vpop.f32.mrf.mxu1  ;;  %v792_v26 = vpop.f32.mrf.mxu3  ;;  %v742_v37 = vadd.f32 %v741_v24, %v282_v33  ;;  %v775_v48 = vadd.f32 %v774_v23, %v757_v44  ;;  %v3916_v23 = vld [vmem:[%s5444_s2 + $0x8] sm:$0xff] }
  0xba   : > { %960 = vmatpush.bf16.msra.mxu2 %v3916_v23 }
  0xbb   : > { %v760_v41 = vadd.f32 %v759_v25, %v742_v37  ;;  %v793_v52 = vadd.f32 %v792_v26, %v775_v48  ;;  %v4101_v48 = vld [vmem:[%s5448_s6 + $0x13] ss:$0 sm:$0xff] }
  0xbe   : > { %961 = vmatpush.bf16.msra.mxu2 %v3915_v27 }
  0xc0   : > { %v777_v29 = vpop.f32.mrf.mxu2  ;;  %v743_v30 = vpop.f32.mrf.mxu0 }
  0xc1   : > { %v761_v31 = vpop.f32.mrf.mxu1  ;;  %v795_v34 = vpop.f32.mrf.mxu3  ;;  %v778_v47 = vadd.f32 %v777_v29, %v760_v41 }
  0xc3   : > { %v796_v51 = vadd.f32 %v795_v34, %v778_v47 }
  0xc8   : > { %v779_v40 = vpop.f32.mrf.mxu2  ;;  %v808_v42 = vpop.f32.mrf.mxu0 }
  0xc9   : > { %v826_v43 = vpop.f32.mrf.mxu1  ;;  %v797_v45 = vpop.f32.mrf.mxu3  ;;  %v809_v46 = vadd.f32 %v808_v42, %v791_v39 }
  0xcb   : > { %v4527_v49 = vadd.f32 %v826_v43, %v809_v46  ;;  %v4103_v43 = vld [vmem:[%s5448_s6 + $0x16] ss:$0 sm:$0xff] }
  0xcd   : > { %v848_v50 = vsel %vm847_vm0, %v4527_v49, 0.0 }
  0xce   : > { %849 = vadd.xlane.f32.xlu0 %v848_v50 }
  0xd0   : > { %v813_v53 = vpop.f32.mrf.mxu2  ;;  %v810_v55 = vpop.f32.mrf.mxu0 }
  0xd1   : > { %v814_v54 = vadd.f32 %v813_v53, %v796_v51  ;;  %v811_v56 = vadd.f32 %v810_v55, %v793_v52  ;;  %v831_v57 = vpop.f32.mrf.mxu3  ;;  %v828_v58 = vpop.f32.mrf.mxu1 }
  0xd3   : > { %v4531_v59 = vadd.f32 %v831_v57, %v814_v54  ;;  %v4533_v60 = vadd.f32 %v828_v58, %v811_v56  ;;  %v4102_v57 = vld [vmem:[%s5448_s6 + $0x14] ss:$0 sm:$0xff] }
  0xd5   : > { %v855_v61 = vsel %vm854_vm1, %v4531_v59, 0.0  ;;  %v851_v62 = vsel %vm847_vm0, %v4533_v60, 0.0 }
  0xd6   : > { %856 = vadd.xlane.f32.xlu1 %v855_v61  ;;  %852 = vadd.xlane.f32.xlu0 %v851_v62 }
  0xd8   : > { %v815_v63 = vpop.f32.mrf.mxu2 }
  0xd9   : > { %v833_v0 = vpop.f32.mrf.mxu3 }
  0xea   : > { %978 = vrot.lane.b32.xlu0 %v4103_v43, %s4288_s11 }
 0x141   : > { %v850_v8 = vpop.xlane.xlu0 %849 }
 0x142   : > { %v865_v9 = vmul.f32 %v4539_v7, %v850_v8 }
 0x144   : > { %v868_v10 = vsub.f32 %v4527_v49, %v865_v9 }
 0x146   : > { %v871_v11 = vmul.f32 %v868_v10, %v868_v10 }
 0x148   : > { %v874_v12 = vsel %vm847_vm0, %v871_v11, 0.0 }
 0x149   : > { %v857_v13 = vpop.xlane.xlu1 %856  ;;  %875 = vadd.xlane.f32.xlu1 %v874_v12  ;;  %v853_v14 = vpop.xlane.xlu0 %852 }
 0x14a   : > { %v866_v15 = vmul.f32 %v4539_v7, %v853_v14  ;;  %v867_v16 = vmul.f32 %v4539_v7, %v857_v13 }
 0x14c   : > { %v869_v17 = vsub.f32 %v4533_v60, %v866_v15  ;;  %v4548_v19 = vsub.f32 %v4531_v59, %v867_v16 }
 0x14e   : > { %v872_v18 = vmul.f32 %v869_v17, %v869_v17  ;;  %v873_v21 = vmul.f32 %v4548_v19, %v4548_v19 }
 0x150   : > { %v877_v20 = vsel %vm847_vm0, %v872_v18, 0.0  ;;  %v880_v22 = vsel %vm854_vm1, %v873_v21, 0.0 }
 0x151   : > { %878 = vadd.xlane.f32.xlu2 %v877_v20 }
 0x159   : > { %881 = vadd.xlane.f32.xlu2 %v880_v22 }
 0x15c   : > { %v979_v11 = vpop.permute.xlu0 %978 }
 0x1bc   : > { %v876_v24 = vpop.xlane.xlu1 %875 }
 0x1bd   : > { %v883_v25 = vmul.f32 %v876_v24, %v4539_v7 }
 0x1bf   : > { %v886_v26 = vadd.f32 1e-06, %v883_v25 }
 0x1c1   : > { %4129 = vrsqrt.f32 %v886_v26  ;;  %vm895_vm4 = vweird.f32 %v886_v26 }
 0x1c4   : > { %v879_v28 = vpop.xlane.xlu2 %878 }
 0x1c5   : > { %v884_v29 = vmul.f32 %v879_v28, %v4539_v7 }
 0x1c7   : > { %v4130_v30 = vpop.eup %4129  ;;  %v887_v31 = vadd.f32 1e-06, %v884_v29 }
 0x1c8   : > { %v890_v32 = vmul.f32 %v4130_v30, %v886_v26  ;;  %vm896_vm3 = vweird.f32 %v4130_v30 }
 0x1c9   : > { %4131 = vrsqrt.f32 %v887_v31  ;;  %vm897_vm5 = vmor %vm895_vm4, %vm896_vm3  ;;  %vm905_vm7 = vweird.f32 %v887_v31  ;;  %vm1703_vm3 = vcmask 195584  }
 0x1ca   : > { %v891_v33 = vmul.f32 %v4130_v30, %v890_v32 }
 0x1cc   : > { %v892_v34 = vmul.f32 0.5, %v891_v33  ;;  %v882_v35 = vpop.xlane.xlu2 %881 }
 0x1cd   : > { %v885_v36 = vmul.f32 %v882_v35, %v4539_v7 }
 0x1ce   : > { %v893_v37 = vsub.f32 1.5, %v892_v34 }
 0x1cf   : > { %v4132_v38 = vpop.eup %4131  ;;  %v888_v39 = vadd.f32 1e-06, %v885_v36 }
 0x1d0   : > { %v894_v40 = vmul.f32 %v4130_v30, %v893_v37  ;;  %v900_v41 = vmul.f32 %v4132_v38, %v887_v31  ;;  %vm906_vm6 = vweird.f32 %v4132_v38 }
 0x1d1   : > { %4133 = vrsqrt.f32 %v888_v39  ;;  %vm907_vm8 = vmor %vm905_vm7, %vm906_vm6  ;;  %vm915_vm10 = vweird.f32 %v888_v39 }
 0x1d2   : > { %v901_v42 = vmul.f32 %v4132_v38, %v900_v41  ;;  %v898_v44 = vsel %vm897_vm5, %v4130_v30, %v894_v40 }
 0x1d3   : > { %v919_v50 = vmul.f32 %v898_v44, %v868_v10  ;;  %v4581_v10 = vld [vmem:[%s5448_s6 + $0x15] ss:$0 sm:$0xff] }
 0x1d4   : > { %v902_v45 = vmul.f32 0.5, %v901_v42 }
 0x1d5   : > { %v923_v55 = vmul.f32 %v4101_v48, %v919_v50 }
 0x1d6   : > { %v903_v46 = vsub.f32 1.5, %v902_v45 }
 0x1d7   : > { %v4134_v47 = vpop.eup %4133  ;;  %v927_v63 = vadd.f32 %v4102_v57, %v923_v55 }
 0x1d8   : > { %v904_v51 = vmul.f32 %v4132_v38, %v903_v46  ;;  %v910_v52 = vmul.f32 %v4134_v47, %v888_v39  ;;  %vm916_vm9 = vweird.f32 %v4134_v47 }
 0x1d9   : > { %vm917_vm11 = vmor %vm915_vm10, %vm916_vm9 }
 0x1da   : > { %v908_v53 = vsel %vm907_vm8, %v4132_v38, %v904_v51  ;;  %v911_v54 = vmul.f32 %v4134_v47, %v910_v52 }
 0x1db   : > { %v920_v56 = vmul.f32 %v908_v53, %v869_v17 }
 0x1dc   : > { %v912_v58 = vmul.f32 0.5, %v911_v54 }
 0x1dd   : > { %v924_v61 = vmul.f32 %v4101_v48, %v920_v56 }
 0x1de   : > { %v913_v62 = vsub.f32 1.5, %v912_v58 }
 0x1df   : > { %v928_v0 = vadd.f32 %v4102_v57, %v924_v61 }
 0x1e0   : > { %v914_v1 = vmul.f32 %v4134_v47, %v913_v62 }
 0x1e1   : > { %v930_v2 = vpack.c.bf16 %v928_v0, %v927_v63 }
 0x1e2   : > { %v918_v3 = vsel %vm917_vm11, %v4134_v47, %v914_v1 }
 0x1e3   : > { %3683 = vmatmul.msk.bf16.vlgmr.msra.gmra.mxu2 %vm847_vm0, %v930_v2  ;;  %v921_v4 = vmul.f32 %v918_v3, %v4548_v19 }
 0x1e5   : > { %v925_v5 = vmul.f32 %v4101_v48, %v921_v4 }
 0x1e7   : > { %v929_v6 = vadd.f32 %v4102_v57, %v925_v5 }
 0x1e9   : > { %v931_v8 = vpack.c.bf16 %v929_v6, %v929_v6 }
 0x1f3   : > { %3684 = vmatmul.msk.bf16.gmra.mxu2 %vm847_vm0, %v931_v8 }
 0x266   : > { %v4576_v9 = vpop.f32.mrf.mxu2 }
 0x267   : > { %v973_v12 = vadd.f32 %v4581_v10, %v4576_v9  ;;  %v981_v13 = vadd.f32 %v979_v11, %v4576_v9 }
 0x269   : > { %v1022_v15 = vpack.c.bf16 %v973_v12, %v973_v12  ;;  %v1064_v18 = vpack.c.bf16 %v981_v13, %v981_v13 }
 0x26b   : > { %v4594_v22 = vunpack.c.l.b16 %v1022_v15  ;;  %v4598_v24 = vunpack.c.l.b16 %v1064_v18 }
 0x26e   : > { %v4586_v14 = vpop.f32.mrf.mxu2 }
 0x26f   : > { %v974_v16 = vadd.f32 %v4581_v10, %v4586_v14  ;;  %v982_v17 = vadd.f32 %v979_v11, %v4586_v14 }
 0x271   : > { %v1023_v19 = vpack.c.bf16 %v974_v16, %v974_v16  ;;  %1057 = vrot.lane.b32.xlu2 %v982_v17, %s4289_s18  ;;  %v4592_v20 = vpack.i.bf16 %v974_v16, %v973_v12  ;;  %v1065_v21 = vpack.c.bf16 %v982_v17, %v982_v17  ;;  %v3991_v32 = vpack.i.bf16 %v982_v17, %v981_v13  ;;  %v4105_v16 = vld [vmem:[%s5448_s6 + $0x17] ss:$0 sm:$0xff] }
 0x273   : > { %v4596_v23 = vunpack.c.l.b16 %v1023_v19  ;;  %v4600_v25 = vunpack.c.l.b16 %v1065_v21 }
 0x275   : > { %v1124_v26 = vpack.c.b16 %v4596_v23, %v4594_v22  ;;  %v1132_v28 = vpack.c.b16 %v4600_v25, %v4598_v24 }
 0x276   : > { %v4604_v27 = vpop.f32.mrf.mxu2 }
 0x277   : > { %v983_v29 = vadd.f32 %v979_v11, %v4604_v27 }
 0x279   : > { %1050 = vrot.lane.b32.xlu2 %v983_v29, %s4290_s19  ;;  %v3986_v30 = vpack.i.bf16 %v981_v13, %v983_v29  ;;  %v1066_v11 = vpack.c.bf16 %v983_v29, %v983_v29  ;;  %v4628_v13 = vadd.f32 %v4581_v10, %v4604_v27 }
 0x27b   : > { %3987 = vrot.lane.b32.xlu0 %v3986_v30, %s4291_s20  ;;  %3982 = vrot.lane.b32.xlu1 %v3986_v30, %s4289_s18  ;;  %v1131_v12 = vunpack.c.l.b16 %v1066_v11 }
 0x27d   : > { %v1133_v15 = vpack.c.b16 %v1131_v12, %v1131_v12 }
 0x27e   : > { %v970_v31 = vpop.f32.mrf.mxu2 }
 0x283   : > { %3992 = vrot.lane.b32.xlu0 %v3991_v32, %s4290_s19  ;;  %1039 = vrot.lane.b32.xlu1 %v982_v17, %s4291_s20 }
 0x28b   : > { %3997 = vrot.lane.b32.xlu0 %v4592_v20, %s4289_s18 }
 0x2cb   : > { %v1058_v33 = vpop.permute.xlu2 %1057 }
 0x2cc   : > { %v1074_v36 = vpack.c.bf16 %v1058_v33, %v1058_v33 }
 0x2ce   : > { %v1281_v44 = vunpack.c.l.b16 %v1074_v36 }
 0x2d3   : > { %v1051_v40 = vpop.permute.xlu2 %1050 }
 0x2d4   : > { %v1072_v47 = vpack.c.bf16 %v1051_v40, %v1051_v40 }
 0x2d6   : > { %v1232_v56 = vunpack.c.l.b16 %v1072_v47 }
 0x2d8   : > { %v1234_v1 = vpack.c.b16 %v1232_v56, %v1232_v56 }
 0x2ed   : > { %v3988_v34 = vpop.permute.xlu0 %3987  ;;  %v3983_v35 = vpop.permute.xlu1 %3982 }
 0x2ee   : > { %v3985_v37 = vunpack.i.h.bf16 %v3983_v35  ;;  %v3984_v38 = vunpack.i.l.bf16 %v3983_v35  ;;  %v3990_v39 = vunpack.i.h.bf16 %v3988_v34  ;;  %v3989_v41 = vunpack.i.l.bf16 %v3988_v34 }
 0x2f0   : > { %v1073_v42 = vpack.c.bf16 %v3985_v37, %v3985_v37  ;;  %v1075_v43 = vpack.c.bf16 %v3984_v38, %v3984_v38  ;;  %v1067_v48 = vpack.c.bf16 %v3990_v39, %v3990_v39  ;;  %v1069_v50 = vpack.c.bf16 %v3989_v41, %v3989_v41 }
 0x2f2   : > { %v1280_v45 = vunpack.c.l.b16 %v1073_v42  ;;  %v1282_v46 = vunpack.c.l.b16 %v1075_v43  ;;  %v1180_v57 = vunpack.c.l.b16 %v1067_v48  ;;  %v1182_v63 = vunpack.c.l.b16 %v1069_v50 }
 0x2f4   : > { %v1283_v51 = vpack.c.b16 %v1281_v44, %v1280_v45  ;;  %v1284_v52 = vpack.c.b16 %v1282_v46, %v1282_v46  ;;  %v1184_v4 = vpack.c.b16 %v1182_v63, %v1182_v63 }
 0x2f5   : > { %v3993_v53 = vpop.permute.xlu0 %3992  ;;  %v1040_v54 = vpop.permute.xlu1 %1039 }
 0x2f6   : > { %v1068_v55 = vpack.c.bf16 %v1040_v54, %v1040_v54  ;;  %1285 = vrot.lane.b32.xlu1 %v1283_v51, %s4292_s21  ;;  %1287 = vrot.lane.b32.xlu2 %v1284_v52, %s4292_s21  ;;  %v3995_v58 = vunpack.i.h.bf16 %v3993_v53  ;;  %v3994_v61 = vunpack.i.l.bf16 %v3993_v53 }
 0x2f8   : > { %v1181_v62 = vunpack.c.l.b16 %v1068_v55  ;;  %v1071_v2 = vpack.c.bf16 %v3995_v58, %v3995_v58  ;;  %v1070_v3 = vpack.c.bf16 %v3994_v61, %v3994_v61 }
 0x2fa   : > { %v1183_v0 = vpack.c.b16 %v1181_v62, %v1180_v57  ;;  %v1231_v5 = vunpack.c.l.b16 %v1071_v2  ;;  %v1230_v6 = vunpack.c.l.b16 %v1070_v3 }
 0x2fc   : > { %1185 = vrot.lane.b32.xlu0 %v1183_v0, %s4292_s21  ;;  %v1233_v8 = vpack.c.b16 %v1231_v5, %v1230_v6 }
 0x2fe   : > { %1237 = vrot.lane.b32.xlu1 %v1234_v1, %s4292_s21  ;;  %1187 = vrot.lane.b32.xlu2 %v1184_v4, %s4292_s21 }
 0x304   : > { %4007 = vrot.lane.b32.xlu0 %v4592_v20, %s4290_s19 }
 0x306   : > { %4002 = vrot.lane.b32.xlu1 %v4592_v20, %s4291_s20  ;;  %1235 = vrot.lane.b32.xlu2 %v1233_v8, %s4292_s21  ;;  %v3998_v20 = vpop.permute.xlu0 %3997 }
 0x307   : > { %v4000_v24 = vunpack.i.h.bf16 %v3998_v20  ;;  %v3999_v25 = vunpack.i.l.bf16 %v3998_v20 }
 0x309   : > { %v1031_v29 = vpack.c.bf16 %v3999_v25, %v3999_v25 }
 0x30b   : > { %v1272_v35 = vunpack.c.l.b16 %v1031_v29 }
 0x30c   : > { %1017 = vrot.lane.b32.xlu0 %v4628_v13, %s4289_s18 }
 0x30e   : > { %1136 = vrot.lane.b32.xlu2 %v1133_v15, %s4292_s21  ;;  %1134 = vrot.lane.b32.xlu1 %v1132_v28, %s4292_s21  ;;  %v1032_v28 = vpack.c.bf16 %v4000_v24, %v4000_v24 }
 0x310   : > { %v1273_v34 = vunpack.c.l.b16 %v1032_v28 }
 0x312   : > { %v1275_v37 = vpack.c.b16 %v1273_v34, %v1272_v35 }
 0x314   : > { %986 = vrot.lane.b32.xlu0 %v4105_v16, %s4293_s26 }
 0x316   : > { %999 = vrot.lane.b32.xlu2 %v4628_v13, %s4291_s20  ;;  %1008 = vrot.lane.b32.xlu1 %v4628_v13, %s4290_s19 }
 0x350   : > { %v1288_v10 = vpop.permute.xlu2 %1287 }
 0x351   : > { %v1299_v17 = vsel %vm1138_vm12, %v1288_v10, 0 }
 0x352   : > { %1307 = vmatpush.bf16.xpose.msrb.mxu2 %v1299_v17 }
 0x358   : > { %v1188_v18 = vpop.permute.xlu2 %1187 }
 0x359   : > { %v1199_v19 = vsel %vm1138_vm12, %v1188_v18, 0 }
 0x35a   : > { %1207 = vmatpush.bf16.xpose.msra.mxu0 %v1199_v19 }
 0x360   : > { %v1236_v21 = vpop.permute.xlu2 %1235 }
 0x361   : > { %v1246_v44 = vsel %vm1138_vm12, %v1236_v21, 0 }
 0x368   : > { %v1286_v30 = vpop.permute.xlu1 %1285  ;;  %v1137_v31 = vpop.permute.xlu2 %1136 }
 0x369   : > { %v1296_v32 = vsel %vm1138_vm12, %v1286_v30, 0  ;;  %v1149_v33 = vsel %vm1138_vm12, %v1137_v31, 0 }
 0x36a   : > { %1157 = vmatpush.bf16.xpose.msra.mxu3 %v1149_v33  ;;  %1308 = vmatpush.bf16.xpose.msrb.mxu2 %v1296_v32 }
 0x36e   : > { %v1186_v36 = vpop.permute.xlu0 %1185 }
 0x36f   : > { %v1196_v38 = vsel %vm1138_vm12, %v1186_v36, 0 }
 0x370   : > { %v1238_v39 = vpop.permute.xlu1 %1237  ;;  %1208 = vmatpush.bf16.xpose.msra.mxu0 %v1196_v38  ;;  %v1000_v3 = vpop.permute.xlu2 %999 }
 0x371   : > { %v1249_v40 = vsel %vm1138_vm12, %v1238_v39, 0  ;;  %3691 = vmatmul.msk.bf16.vlgmr.msrb.gmra.mxu2 %vm1138_vm12, %v1275_v37  ;;  %v1027_v5 = vpack.c.bf16 %v1000_v3, %v1000_v3 }
 0x372   : > { %1257 = vmatpush.bf16.xpose.msra.mxu1 %v1249_v40 }
 0x373   : > { %v1174_v18 = vunpack.c.l.b16 %v1027_v5 }
 0x375   : > { %v1176_v23 = vpack.c.b16 %v1174_v18, %v1174_v18  ;;  %v4294_v18 = vmov 0  }
 0x376   : > { %v4008_v41 = vpop.permute.xlu0 %4007 }
 0x377   : > { %v4010_v42 = vunpack.i.h.bf16 %v4008_v41  ;;  %v4009_v43 = vunpack.i.l.bf16 %v4008_v41 }
 0x378   : > { %v4003_v45 = vpop.permute.xlu1 %4002 }
 0x379   : > { %v1029_v46 = vpack.c.bf16 %v4010_v42, %v4010_v42  ;;  %v1028_v47 = vpack.c.bf16 %v4009_v43, %v4009_v43  ;;  %v4005_v48 = vunpack.i.h.bf16 %v4003_v45  ;;  %v4004_v50 = vunpack.i.l.bf16 %v4003_v45 }
 0x37a   : > { %1258 = vmatpush.bf16.xpose.msra.mxu1 %v1246_v44 }
 0x37b   : > { %v1223_v51 = vunpack.c.l.b16 %v1029_v46  ;;  %v1222_v52 = vunpack.c.l.b16 %v1028_v47  ;;  %v1026_v53 = vpack.c.bf16 %v4005_v48, %v4005_v48  ;;  %v1025_v54 = vpack.c.bf16 %v4004_v50, %v4004_v50 }
 0x37d   : > { %v1173_v55 = vunpack.c.l.b16 %v1026_v53  ;;  %v1172_v56 = vunpack.c.l.b16 %v1025_v54  ;;  %v1225_v58 = vpack.c.b16 %v1223_v51, %v1222_v52 }
 0x37e   : > { %v1018_v57 = vpop.permute.xlu0 %1017 }
 0x37f   : > { %v1175_v61 = vpack.c.b16 %v1173_v55, %v1172_v56  ;;  %v1033_v62 = vpack.c.bf16 %v1018_v57, %v1018_v57 }
 0x380   : > { %v1135_v63 = vpop.permute.xlu1 %1134 }
 0x381   : > { %v1274_v0 = vunpack.c.l.b16 %v1033_v62  ;;  %v1146_v1 = vsel %vm1138_vm12, %v1135_v63, 0  ;;  %3687 = vmatmul.msk.bf16.vlgmr.msra.gmra.mxu0 %vm1138_vm12, %v1175_v61  ;;  %3689 = vmatmul.msk.bf16.vlgmr.msra.gmra.mxu1 %vm1138_vm12, %v1225_v58 }
 0x382   : > { %1158 = vmatpush.bf16.xpose.msra.mxu3 %v1146_v1 }
 0x383   : > { %v1276_v2 = vpack.c.b16 %v1274_v0, %v1274_v0 }
 0x385   : > { %3692 = vmatmul.msk.bf16.gmra.mxu2 %vm1138_vm12, %v1276_v2 }
 0x386   : > { %v987_v4 = vpop.permute.xlu0 %986 }
 0x387   : > { %v989_v6 = vadd.f32 %v987_v4, %v4576_v9  ;;  %v990_v8 = vadd.f32 %v987_v4, %v4586_v14  ;;  %v4660_v11 = vadd.f32 %v987_v4, %v4604_v27  ;;  %v1024_v27 = vpack.c.bf16 %v4628_v13, %v4628_v13 }
 0x388   : > { %v1009_v12 = vpop.permute.xlu1 %1008 }
 0x389   : > { %v1030_v15 = vpack.c.bf16 %v1009_v12, %v1009_v12  ;;  %3685 = vmatmul.msk.bf16.vlgmr.msra.gmra.mxu3 %vm1138_vm12, %v1124_v26  ;;  %v4021_v16 = vpack.i.bf16 %v989_v6, %v4660_v11  ;;  %v1106_v10 = vpack.c.bf16 %v989_v6, %v989_v6  ;;  %v1107_v17 = vpack.c.bf16 %v990_v8, %v990_v8 }
 0x38a   : > { %v1123_v20 = vunpack.c.l.b16 %v1024_v27 }
 0x38b   : > { %v1224_v19 = vunpack.c.l.b16 %v1030_v15  ;;  %4022 = vrot.lane.b32.xlu0 %v4021_v16, %s4290_s19  ;;  %4012 = vrot.lane.b32.xlu2 %v4021_v16, %s4289_s18  ;;  %v4670_v9 = vunpack.c.l.b16 %v1106_v10  ;;  %v4672_v14 = vunpack.c.l.b16 %v1107_v17 }
 0x38c   : > { %4017 = vrot.lane.b32.xlu1 %v4021_v16, %s4291_s20  ;;  %v1125_v21 = vpack.c.b16 %v1123_v20, %v1123_v20 }
 0x38d   : > { %v1479_v22 = vpack.c.b16 %v4672_v14, %v4670_v9  ;;  %v1226_v26 = vpack.c.b16 %v1224_v19, %v1224_v19  ;;  %v4738_v19 = vsel %vm1492_vm15, 65535, %v4294_v18 }
 0x391   : > { %3688 = vmatmul.msk.bf16.gmra.mxu0 %vm1138_vm12, %v1176_v23  ;;  %3690 = vmatmul.msk.bf16.gmra.mxu1 %vm1138_vm12, %v1226_v26 }
 0x393   : > { %1081 = vrot.lane.b32.xlu0 %v990_v8, %s4291_s20  ;;  %1099 = vrot.lane.b32.xlu2 %v990_v8, %s4289_s18 }
 0x394   : > { %1090 = vrot.lane.b32.xlu1 %v990_v8, %s4290_s19 }
 0x399   : > { %3686 = vmatmul.msk.bf16.gmra.mxu3 %vm1138_vm12, %v1125_v21 }
 0x3e5   : > { %v4013_v24 = vpop.permute.xlu2 %4012 }
 0x3e6   : > { %v4014_v25 = vunpack.i.l.bf16 %v4013_v24  ;;  %v4015_v62 = vunpack.i.h.bf16 %v4013_v24 }
 0x3e8   : > { %v1117_v28 = vpack.c.bf16 %v4014_v25, %v4014_v25  ;;  %v1115_v2 = vpack.c.bf16 %v4015_v62, %v4015_v62 }
 0x3ea   : > { %v1625_v29 = vunpack.c.l.b16 %v1117_v28  ;;  %v1623_v4 = vunpack.c.l.b16 %v1115_v2 }
 0x3ec   : > { %v1627_v30 = vpack.c.b16 %v1625_v29, %v1625_v29 }
 0x3ed   : > { %v1100_v61 = vpop.permute.xlu2 %1099 }
 0x3ee   : > { %1630 = vrot.lane.b32.xlu1 %v1627_v30, %s4293_s26  ;;  %v1116_v63 = vpack.c.bf16 %v1100_v61, %v1100_v61 }
 0x3f0   : > { %v1624_v3 = vunpack.c.l.b16 %v1116_v63 }
 0x3f2   : > { %v1626_v5 = vpack.c.b16 %v1624_v3, %v1623_v4 }
 0x3f4   : > { %v4685_v13 = vpop.f32.mrf.mxu2 }
 0x3f5   : > { %v1348_v6 = vsel %vm1319_vm13, %v4685_v13, -inf }
 0x3fc   : > { %v4697_v37 = vpop.f32.mrf.mxu2 }
 0x3fd   : > { %v4687_v31 = vpop.permute.xlu0 %4022  ;;  %v1351_v57 = vsel %vm1319_vm13, %v4697_v37, -inf }
 0x3fe   : > { %v4024_v32 = vunpack.i.l.bf16 %v4687_v31  ;;  %v4690_v33 = vpop.permute.xlu1 %4017  ;;  %v4692_v34 = vpop.f32.mrf.mxu0 }
 0x3ff   : > { %v4019_v35 = vunpack.i.l.bf16 %v4690_v33  ;;  %v4695_v36 = vpop.f32.mrf.mxu1  ;;  %v1330_v8 = vsel %vm1319_vm13, %v4692_v34, -inf }
 0x400   : > { %v1114_v38 = vpack.c.bf16 %v4024_v32, %v4024_v32  ;;  %v1339_v55 = vsel %vm1319_vm13, %v4695_v36, -inf }
 0x401   : > { %v1111_v39 = vpack.c.bf16 %v4019_v35, %v4019_v35 }
 0x402   : > { %v1577_v40 = vunpack.c.l.b16 %v1114_v38 }
 0x403   : > { %v1529_v41 = vunpack.c.l.b16 %v1111_v39 }
 0x404   : > { %v1579_v42 = vpack.c.b16 %v1577_v40, %v1577_v40 }
 0x405   : > { %v1531_v43 = vpack.c.b16 %v1529_v41, %v1529_v41  ;;  %v4744_v24 = vpop.permute.xlu0 %1081  ;;  %v4025_v41 = vunpack.i.h.bf16 %v4687_v31 }
 0x406   : > { %1582 = vrot.lane.b32.xlu0 %v1579_v42, %s4293_s26  ;;  %v4700_v44 = vpop.f32.mrf.mxu0  ;;  %v1091_v17 = vpop.permute.xlu1 %1090 }
 0x407   : > { %v4702_v45 = vpop.f32.mrf.mxu1  ;;  %1534 = vrot.lane.b32.xlu2 %v1531_v43, %s4293_s26  ;;  %v1333_v12 = vsel %vm1319_vm13, %v4700_v44, -inf  ;;  %v1113_v43 = vpack.c.bf16 %v1091_v17, %v1091_v17 }
 0x408   : > { %v4705_v46 = vpop.f32.mrf.mxu2  ;;  %v1342_v15 = vsel %vm1319_vm13, %v4702_v45, -inf }
 0x409   : > { %v1354_v21 = vsel %vm1326_vm14, %v4705_v46, -inf }
 0x40c   : > { %v4707_v47 = vpop.f32.mrf.mxu3 }
 0x40d   : > { %v1320_v0 = vsel %vm1319_vm13, %v4707_v47, -inf }
 0x40e   : > { %v4709_v48 = vpop.f32.mrf.mxu0 }
 0x40f   : > { %v4711_v50 = vpop.f32.mrf.mxu1  ;;  %v1336_v16 = vsel %vm1326_vm14, %v4709_v48, -inf }
 0x410   : > { %v1317_v51 = vpop.f32.mrf.mxu2  ;;  %v1345_v10 = vsel %vm1326_vm14, %v4711_v50, -inf }
 0x411   : > { %v1112_v51 = vpack.c.bf16 %v4025_v41, %v4025_v41 }
 0x414   : > { %v4713_v52 = vpop.f32.mrf.mxu3 }
 0x415   : > { %v1323_v1 = vsel %vm1319_vm13, %v4713_v52, -inf }
 0x416   : > { %v1217_v53 = vpop.f32.mrf.mxu0 }
 0x417   : > { %v1267_v54 = vpop.f32.mrf.mxu1  ;;  %v1576_v53 = vunpack.c.l.b16 %v1113_v43 }
 0x418   : > { %1340 = vmax.xlane.f32.xlu1 %v1339_v55 }
 0x41c   : > { %v4717_v56 = vpop.f32.mrf.mxu3 }
 0x420   : > { %1352 = vmax.xlane.f32.xlu1 %v1351_v57 }
 0x424   : > { %v1167_v58 = vpop.f32.mrf.mxu3 }
 0x430   : > { %1321 = vmax.xlane.f32.xlu2 %v1320_v0  ;;  %1324 = vmax.xlane.f32.xlu0 %v1323_v1 }
 0x438   : > { %1349 = vmax.xlane.f32.xlu2 %v1348_v6  ;;  %1331 = vmax.xlane.f32.xlu0 %v1330_v8 }
 0x439   : > { %1628 = vrot.lane.b32.xlu1 %v1626_v5, %s4293_s26 }
 0x440   : > { %1334 = vmax.xlane.f32.xlu2 %v1333_v12  ;;  %1343 = vmax.xlane.f32.xlu0 %v1342_v15 }
 0x448   : > { %1337 = vmax.xlane.f32.xlu2 %v1336_v16 }
 0x450   : > { %1346 = vmax.xlane.f32.xlu2 %v1345_v10 }
 0x460   : > { %v1631_v23 = vpop.permute.xlu1 %1630 }
 0x461   : > { %v1640_v26 = vand.u32 %v1631_v23, %v4738_v19  ;;  %v1535_v27 = vpop.permute.xlu2 %1534 }
 0x462   : > { %v1544_v20 = vand.u32 %v1535_v27, %v4738_v19  ;;  %v4020_v27 = vunpack.i.h.bf16 %v4690_v33 }
 0x463   : > { %1355 = vmax.xlane.f32.xlu1 %v1354_v21  ;;  %1648 = vmatpush.bf16.msra.mxu2 %v1640_v26  ;;  %v1327_v26 = vsel %vm1326_vm14, %v4717_v56, -inf }
 0x464   : > { %1552 = vmatpush.bf16.msrb.mxu0 %v1544_v20  ;;  %v1110_v20 = vpack.c.bf16 %v4744_v24, %v4744_v24  ;;  %v1109_v21 = vpack.c.bf16 %v4020_v27, %v4020_v27 }
 0x478   : > { %v1583_v25 = vpop.permute.xlu0 %1582 }
 0x479   : > { %v1592_v28 = vand.u32 %v1583_v25, %v4738_v19  ;;  %v1528_v25 = vunpack.c.l.b16 %v1110_v20 }
 0x47b   : > { %1600 = vmatpush.bf16.msrb.mxu1 %v1592_v28 }
 0x48b   : > { %v1341_v29 = vpop.xlane.xlu1 %1340 }
 0x48c   : > { %v1363_v30 = vsub.f32 %v4695_v36, %v1341_v29  ;;  %v1575_v36 = vunpack.c.l.b16 %v1112_v51  ;;  %v1527_v29 = vunpack.c.l.b16 %v1109_v21 }
 0x48e   : > { %v1381_v32 = vmul.f32 1.442695, %v1363_v30  ;;  %v1578_v61 = vpack.c.b16 %v1576_v53, %v1575_v36  ;;  %v1530_v30 = vpack.c.b16 %v1528_v25, %v1527_v29 }
 0x490   : > { %4135 = vpow2.f32 %v1381_v32  ;;  %v1108_v32 = vpack.c.bf16 %v4660_v11, %v4660_v11 }
 0x493   : > { %v1353_v42 = vpop.xlane.xlu1 %1352 }
 0x494   : > { %v1367_v3 = vsub.f32 %v4697_v37, %v1353_v42 }
 0x496   : > { %v4748_v35 = vpop.eup %4135  ;;  %v1389_v6 = vmul.f32 1.442695, %v1367_v3 }
 0x497   : > { %v1411_v38 = vsel %vm1319_vm13, %v4748_v35, 0.0 }
 0x498   : > { %1412 = vadd.xlane.f32.xlu2 %v1411_v38  ;;  %v1478_v38 = vunpack.c.l.b16 %v1108_v32 }
 0x49a   : > { %v1480_v33 = vpack.c.b16 %v1478_v38, %v1478_v38 }
 0x4a3   : > { %v4752_v39 = vpop.xlane.xlu2 %1321  ;;  %v1325_v40 = vpop.xlane.xlu0 %1324 }
 0x4a4   : > { %v1358_v10 = vsub.f32 %v4713_v52, %v1325_v40  ;;  %v1357_v24 = vsub.f32 %v4707_v47, %v4752_v39 }
 0x4a6   : > { %v1371_v23 = vmul.f32 1.442695, %v1358_v10  ;;  %v1369_v40 = vmul.f32 1.442695, %v1357_v24 }
 0x4ab   : > { %v1350_v54 = vpop.xlane.xlu2 %1349  ;;  %v1332_v55 = vpop.xlane.xlu0 %1331 }
 0x4ac   : > { %v1360_v57 = vsub.f32 %v4692_v34, %v1332_v55  ;;  %v1629_v58 = vpop.permute.xlu1 %1628  ;;  %v1366_v63 = vsub.f32 %v4685_v13, %v1350_v54 }
 0x4ad   : > { %1649 = vmatpush.bf16.msra.mxu2 %v1629_v58 }
 0x4ae   : > { %v1375_v62 = vmul.f32 1.442695, %v1360_v57  ;;  %v1387_v0 = vmul.f32 1.442695, %v1366_v63 }
 0x4b0   : > { %1580 = vrot.lane.b32.xlu2 %v1578_v61, %s4293_s26  ;;  %4137 = vpow2.f32 %v1375_v62 }
 0x4b1   : > { %4139 = vpow2.f32 %v1387_v0 }
 0x4b3   : > { %v1335_v31 = vpop.xlane.xlu2 %1334  ;;  %v1344_v2 = vpop.xlane.xlu0 %1343 }
 0x4b4   : > { %v1361_v1 = vsub.f32 %v4700_v44, %v1335_v31  ;;  %v1364_v34 = vsub.f32 %v4702_v45, %v1344_v2 }
 0x4b6   : > { %v1377_v4 = vmul.f32 1.442695, %v1361_v1  ;;  %v4760_v5 = vpop.eup %4137  ;;  %v1383_v8 = vmul.f32 1.442695, %v1364_v34 }
 0x4b7   : > { %v1402_v13 = vsel %vm1319_vm13, %v4760_v5, 0.0  ;;  %v4765_v12 = vpop.eup %4139 }
 0x4b8   : > { %4141 = vpow2.f32 %v1377_v4  ;;  %1403 = vadd.xlane.f32.xlu0 %v1402_v13  ;;  %v1420_v44 = vsel %vm1319_vm13, %v4765_v12, 0.0 }
 0x4b9   : > { %4143 = vpow2.f32 %v1389_v6 }
 0x4ba   : > { %4145 = vpow2.f32 %v1383_v8 }
 0x4bb   : > { %4147 = vpow2.f32 %v1371_v23  ;;  %v1338_v41 = vpop.xlane.xlu2 %1337 }
 0x4bc   : > { %4149 = vpow2.f32 %v1369_v40  ;;  %v1362_v42 = vsub.f32 %v4709_v48, %v1338_v41 }
 0x4be   : > { %v4767_v15 = vpop.eup %4141  ;;  %v1379_v43 = vmul.f32 1.442695, %v1362_v42 }
 0x4bf   : > { %v1405_v37 = vsel %vm1319_vm13, %v4767_v15, 0.0  ;;  %v4773_v45 = vpop.eup %4143 }
 0x4c0   : > { %1406 = vadd.xlane.f32.xlu1 %v1405_v37  ;;  %1421 = vadd.xlane.f32.xlu0 %v1420_v44  ;;  %v4775_v16 = vpop.eup %4145  ;;  %v1423_v17 = vsel %vm1319_vm13, %v4773_v45, 0.0  ;;  %4151 = vpow2.f32 %v1379_v43 }
 0x4c1   : > { %v1414_v18 = vsel %vm1319_vm13, %v4775_v16, 0.0  ;;  %v4787_v52 = vpop.eup %4147 }
 0x4c2   : > { %v1396_v28 = vsel %vm1319_vm13, %v4787_v52, 0.0  ;;  %v4802_v11 = vpop.eup %4149 }
 0x4c3   : > { %v1347_v53 = vpop.xlane.xlu2 %1346  ;;  %v1393_v9 = vsel %vm1319_vm13, %v4802_v11, 0.0 }
 0x4c4   : > { %v1365_v39 = vsub.f32 %v4711_v50, %v1347_v53 }
 0x4c6   : > { %v1385_v55 = vmul.f32 1.442695, %v1365_v39 }
 0x4c8   : > { %1424 = vadd.xlane.f32.xlu1 %v1423_v17  ;;  %1415 = vadd.xlane.f32.xlu0 %v1414_v18 }
 0x4d0   : > { %1328 = vmax.xlane.f32.xlu1 %v1327_v26 }
 0x4d6   : > { %v1356_v51 = vpop.xlane.xlu1 %1355 }
 0x4d7   : > { %v1368_v54 = vsub.f32 %v4705_v46, %v1356_v51 }
 0x4d9   : > { %1397 = vadd.xlane.f32.xlu2 %v1396_v28  ;;  %v1391_v14 = vmul.f32 1.442695, %v1368_v54 }
 0x4db   : > { %4153 = vpow2.f32 %v1391_v14 }
 0x4dc   : > { %1532 = vrot.lane.b32.xlu0 %v1530_v30, %s4293_s26  ;;  %4155 = vpow2.f32 %v1385_v55 }
 0x4e9   : > { %1483 = vrot.lane.b32.xlu1 %v1480_v33, %s4293_s26 }
 0x4f1   : > { %1481 = vrot.lane.b32.xlu2 %v1479_v22, %s4293_s26  ;;  %v4807_v22 = vpop.eup %4151 }
 0x4f2   : > { %v1408_v48 = vsel %vm1326_vm14, %v4807_v22, 0.0  ;;  %v4812_v36 = vpop.eup %4153 }
 0x4f3   : > { %v1426_v46 = vsel %vm1326_vm14, %v4812_v36, 0.0  ;;  %v4816_v58 = vpop.eup %4155 }
 0x4f4   : > { %v1417_v50 = vsel %vm1326_vm14, %v4816_v58, 0.0 }
 0x506   : > { %1394 = vadd.xlane.f32.xlu0 %v1393_v9 }
 0x50b   : > { %v1413_v47 = vpop.xlane.xlu2 %1412 }
 0x50e   : > { %1409 = vadd.xlane.f32.xlu0 %v1408_v48 }
 0x513   : > { %v1581_v57 = vpop.permute.xlu2 %1580 }
 0x514   : > { %1601 = vmatpush.bf16.msrb.mxu1 %v1581_v57 }
 0x516   : > { %1427 = vadd.xlane.f32.xlu0 %v1426_v46 }
 0x51e   : > { %1418 = vadd.xlane.f32.xlu0 %v1417_v50 }
 0x52b   : > { %v1404_v61 = vpop.xlane.xlu0 %1403 }
 0x533   : > { %v1407_v62 = vpop.xlane.xlu1 %1406  ;;  %v1422_v63 = vpop.xlane.xlu0 %1421 }
 0x534   : > { %4157 = vrcp.f32 %v1422_v63 }
 0x535   : > { %4159 = vrcp.f32 %v1413_v47 }
 0x536   : > { %4161 = vrcp.f32 %v1407_v62 }
 0x53a   : > { %v4158_v31 = vpop.eup %4157 }
 0x53b   : > { %v1425_v0 = vpop.xlane.xlu1 %1424  ;;  %v1416_v1 = vpop.xlane.xlu0 %1415  ;;  %v1450_v3 = vmul.f32 %v4158_v31, %v4765_v12 }
 0x53c   : > { %4163 = vrcp.f32 %v1425_v0  ;;  %v4160_v2 = vpop.eup %4159 }
 0x53d   : > { %4165 = vrcp.f32 %v1416_v1  ;;  %v1447_v4 = vmul.f32 %v4160_v2, %v4748_v35  ;;  %v4162_v34 = vpop.eup %4161  ;;  %v1462_v8 = vpack.c.bf16 %v1450_v3, %v1450_v3 }
 0x53e   : > { %4167 = vrcp.f32 %v1404_v61  ;;  %v1445_v26 = vmul.f32 %v4162_v34, %v4767_v15 }
 0x53f   : > { %v1459_v17 = vpack.c.bf16 %v1447_v4, %v1447_v4  ;;  %v1615_v21 = vunpack.c.l.b16 %v1462_v8 }
 0x541   : > { %v1567_v28 = vunpack.c.l.b16 %v1459_v17 }
 0x542   : > { %v4164_v13 = vpop.eup %4163 }
 0x543   : > { %v4166_v6 = vpop.eup %4165  ;;  %v1451_v37 = vmul.f32 %v4164_v13, %v4773_v45  ;;  %v1329_v44 = vpop.xlane.xlu1 %1328  ;;  %v1457_v45 = vpack.c.bf16 %v1445_v26, %v1445_v26 }
 0x544   : > { %v4168_v10 = vpop.eup %4167  ;;  %v1448_v18 = vmul.f32 %v4166_v6, %v4775_v16  ;;  %v1359_v23 = vsub.f32 %v4717_v56, %v1329_v44 }
 0x545   : > { %v1463_v27 = vpack.c.bf16 %v1451_v37, %v1451_v37  ;;  %v1444_v35 = vmul.f32 %v4168_v10, %v4760_v5  ;;  %v1520_v56 = vunpack.c.l.b16 %v1457_v45 }
 0x546   : > { %v1460_v20 = vpack.c.bf16 %v1448_v18, %v1448_v18  ;;  %v1373_v12 = vmul.f32 1.442695, %v1359_v23 }
 0x547   : > { %v1616_v25 = vunpack.c.l.b16 %v1463_v27  ;;  %v1456_v38 = vpack.c.bf16 %v1444_v35, %v1444_v35 }
 0x548   : > { %v1568_v29 = vunpack.c.l.b16 %v1460_v20  ;;  %4169 = vpow2.f32 %v1373_v12 }
 0x549   : > { %v1618_v30 = vpack.c.b16 %v1616_v25, %v1615_v21  ;;  %v1519_v16 = vunpack.c.l.b16 %v1456_v38 }
 0x54a   : > { %v1570_v32 = vpack.c.b16 %v1568_v29, %v1567_v28 }
 0x54b   : > { %3699 = vmatmul.msk.bf16.vlgmr.msra.gmra.mxu2 %vm1319_vm13, %v1618_v30  ;;  %v1522_v5 = vpack.c.b16 %v1520_v56, %v1519_v16  ;;  %v3918_v56 = vld [vmem:[%s5445_s3 + $0x8] sm:$0xff] }
 0x54c   : > { %3697 = vmatmul.msk.bf16.vlgmr.msrb.gmra.mxu1 %vm1319_vm13, %v1570_v32  ;;  %v1398_v40 = vpop.xlane.xlu2 %1397 }
 0x54d   : > { %4171 = vrcp.f32 %v1398_v40 }
 0x54e   : > { %v4170_v15 = vpop.eup %4169  ;;  %v1533_v33 = vpop.permute.xlu0 %1532 }
 0x54f   : > { %v1399_v24 = vsel %vm1326_vm14, %v4170_v15, 0.0  ;;  %1553 = vmatpush.bf16.msrb.mxu0 %v1533_v33 }
 0x550   : > { %1400 = vadd.xlane.f32.xlu0 %v1399_v24 }
 0x552   : > { %3695 = vmatmul.msk.bf16.vlgmr.msrb.gmra.mxu0 %vm1319_vm13, %v1522_v5 }
 0x553   : > { %v4172_v53 = vpop.eup %4171 }
 0x554   : > { %v1482_v43 = vpop.permute.xlu2 %1481  ;;  %v1442_v54 = vmul.f32 %v4172_v53, %v4787_v52 }
 0x556   : > { %v1454_v14 = vpack.c.bf16 %v1442_v54, %v1442_v54 }
 0x558   : > { %v1469_v55 = vunpack.c.l.b16 %v1454_v14 }
 0x55b   : > { %v1484_v41 = vpop.permute.xlu1 %1483 }
 0x55c   : > { %v1496_v42 = vand.u32 %v4738_v19, %v1484_v41 }
 0x55e   : > { %1504 = vmatpush.bf16.msrb.mxu3 %v1496_v42 }
 0x562   : > { %1505 = vmatpush.bf16.msrb.mxu3 %v1482_v43 }
 0x566   : > { %1738 = vmatpush.bf16.msra.mxu3 %v3918_v56  ;;  %v3920_v56 = vld [vmem:[%s5446_s4 + $0x8] sm:$0xff] }
 0x567   : > { %1862 = vmatpush.bf16.msra.mxu0 %v3920_v56  ;;  %v3925_v56 = vld [vmem:[%s5447_s5 + $0x20] sm:$0xff] }
 0x579   : > { %v1395_v51 = vpop.xlane.xlu0 %1394 }
 0x57a   : > { %4173 = vrcp.f32 %v1395_v51 }
 0x580   : > { %v4174_v9 = vpop.eup %4173 }
 0x581   : > { %v1441_v47 = vmul.f32 %v4174_v9, %v4802_v11  ;;  %v1410_v39 = vpop.xlane.xlu0 %1409 }
 0x582   : > { %4175 = vrcp.f32 %v1410_v39 }
 0x583   : > { %v1453_v48 = vpack.c.bf16 %v1441_v47, %v1441_v47 }
 0x585   : > { %v1468_v57 = vunpack.c.l.b16 %v1453_v48 }
 0x587   : > { %v1471_v46 = vpack.c.b16 %v1469_v55, %v1468_v57 }
 0x588   : > { %v4176_v50 = vpop.eup %4175 }
 0x589   : > { %v1428_v61 = vpop.xlane.xlu0 %1427  ;;  %3693 = vmatmul.msk.bf16.vlgmr.msrb.gmra.mxu3 %vm1319_vm13, %v1471_v46  ;;  %v1446_v62 = vmul.f32 %v4176_v50, %v4807_v22 }
 0x58a   : > { %4177 = vrcp.f32 %v1428_v61 }
 0x58b   : > { %v1458_v63 = vpack.c.bf16 %v1446_v62, %v1446_v62 }
 0x58d   : > { %v1521_v0 = vunpack.c.l.b16 %v1458_v63 }
 0x58f   : > { %v1523_v52 = vpack.c.b16 %v1521_v0, %v1521_v0 }
 0x590   : > { %v4178_v31 = vpop.eup %4177 }
 0x591   : > { %3696 = vmatmul.msk.bf16.gmra.mxu0 %vm1319_vm13, %v1523_v52  ;;  %v1419_v11 = vpop.xlane.xlu0 %1418  ;;  %v1452_v1 = vmul.f32 %v4178_v31, %v4812_v36 }
 0x592   : > { %4179 = vrcp.f32 %v1419_v11 }
 0x593   : > { %v1464_v2 = vpack.c.bf16 %v1452_v1, %v1452_v1  ;;  %v4106_v1 = vld [vmem:[%s5448_s6 + $0x18] ss:$0 sm:$0xff] }
 0x595   : > { %v1617_v3 = vunpack.c.l.b16 %v1464_v2  ;;  %v4107_v2 = vld [vmem:[%s5448_s6 + $0x19] ss:$0 sm:$0xff] }
 0x597   : > { %v1619_v4 = vpack.c.b16 %v1617_v3, %v1617_v3 }
 0x598   : > { %v4180_v34 = vpop.eup %4179 }
 0x599   : > { %3700 = vmatmul.msk.bf16.gmra.mxu2 %vm1319_vm13, %v1619_v4  ;;  %v1449_v13 = vmul.f32 %v4180_v34, %v4816_v58 }
 0x59b   : > { %v1461_v22 = vpack.c.bf16 %v1449_v13, %v1449_v13 }
 0x59d   : > { %v1569_v6 = vunpack.c.l.b16 %v1461_v22 }
 0x59f   : > { %v1571_v8 = vpack.c.b16 %v1569_v6, %v1569_v6 }
 0x5a1   : > { %3698 = vmatmul.msk.bf16.gmra.mxu1 %vm1319_vm13, %v1571_v8 }
 0x5c3   : > { %v1401_v37 = vpop.xlane.xlu0 %1400 }
 0x5c4   : > { %4181 = vrcp.f32 %v1401_v37 }
 0x5c9   : > { %v1603_v44 = vpop.f32.mrf.mxu1 }
 0x5ca   : > { %v4182_v10 = vpop.eup %4181 }
 0x5cb   : > { %v1443_v17 = vmul.f32 %v4182_v10, %v4170_v15  ;;  %v3917_v15 = vld [vmem:[%s5445_s3] sm:$0xff] }
 0x5cc   : > { %1739 = vmatpush.bf16.msra.mxu3 %v3917_v15 }
 0x5cd   : > { %v1455_v36 = vpack.c.bf16 %v1443_v17, %v1443_v17 }
 0x5ce   : > { %v1651_v18 = vpop.f32.mrf.mxu2 }
 0x5cf   : > { %v1470_v23 = vunpack.c.l.b16 %v1455_v36  ;;  %v1555_v26 = vpop.f32.mrf.mxu0 }
 0x5d1   : > { %v1605_v27 = vpop.f32.mrf.mxu1  ;;  %v1472_v20 = vpack.c.b16 %v1470_v23, %v1470_v23 }
 0x5d2   : > { %v4031_v12 = vpack.i.bf16 %v1605_v27, %v1603_v44 }
 0x5d3   : > { %3694 = vmatmul.msk.bf16.gmra.mxu3 %vm1319_vm13, %v1472_v20 }
 0x5d4   : > { %4032 = vrot.lane.b32.xlu2 %v4031_v12, %s4295_s27 }
 0x5d6   : > { %v1653_v58 = vpop.f32.mrf.mxu2 }
 0x5d7   : > { %v4036_v35 = vpack.i.bf16 %v1653_v58, %v1651_v18  ;;  %v1557_v21 = vpop.f32.mrf.mxu0 }
 0x5d8   : > { %v4026_v25 = vpack.i.bf16 %v1557_v21, %v1555_v26 }
 0x5d9   : > { %4037 = vrot.lane.b32.xlu0 %v4036_v35, %s4296_s28 }
 0x5da   : > { %4027 = vrot.lane.b32.xlu1 %v4026_v25, %s4297_s29 }
 0x60c   : > { %v1507_v16 = vpop.f32.mrf.mxu3 }
 0x60e   : > { %v1560_v28 = vpop.f32.mrf.mxu0 }
 0x60f   : > { %1667 = vrot.lane.b32.xlu1 %v1560_v28, %s4297_s29 }
 0x614   : > { %v1509_v40 = vpop.f32.mrf.mxu3 }
 0x616   : > { %v1562_v29 = vpop.f32.mrf.mxu0 }
 0x61c   : > { %v1656_v45 = vpop.f32.mrf.mxu2 }
 0x61d   : > { %1691 = vrot.lane.b32.xlu1 %v1656_v45, %s4296_s28 }
 0x61e   : > { %v1608_v30 = vpop.f32.mrf.mxu1 }
 0x61f   : > { %1679 = vrot.lane.b32.xlu2 %v1608_v30, %s4295_s27 }
 0x624   : > { %v1658_v32 = vpop.f32.mrf.mxu2 }
 0x626   : > { %v1610_v38 = vpop.f32.mrf.mxu1 }
 0x62e   : > { %v4033_v33 = vpop.permute.xlu2 %4032 }
 0x62f   : > { %v4035_v43 = vunpack.i.h.bf16 %v4033_v33  ;;  %v4034_v51 = vunpack.i.l.bf16 %v4033_v33  ;;  %v3919_v33 = vld [vmem:[%s5446_s4] sm:$0xff] }
 0x630   : > { %1863 = vmatpush.bf16.msra.mxu0 %v3919_v33 }
 0x64b   : > { %v4038_v24 = vpop.permute.xlu0 %4037 }
 0x64c   : > { %v4028_v5 = vpop.permute.xlu1 %4027  ;;  %v4040_v53 = vunpack.i.h.bf16 %v4038_v24  ;;  %v4039_v54 = vunpack.i.l.bf16 %v4038_v24 }
 0x64d   : > { %v4030_v41 = vunpack.i.h.bf16 %v4028_v5  ;;  %v4029_v42 = vunpack.i.l.bf16 %v4028_v5 }
 0x64f   : > { %v1696_v9 = vsel %vm1138_vm12, %v1507_v16, %v4029_v42  ;;  %v1697_v14 = vsel %vm1138_vm12, %v1509_v40, %v4030_v41 }
 0x650   : > { %v1700_v47 = vsel %vm1699_vm2, %v1696_v9, %v4034_v51  ;;  %v1701_v39 = vsel %vm1699_vm2, %v1697_v14, %v4035_v43 }
 0x651   : > { %v1704_v48 = vsel %vm1703_vm3, %v1700_v47, %v4039_v54  ;;  %v1705_v55 = vsel %vm1703_vm3, %v1701_v39, %v4040_v53 }
 0x652   : > { %v1707_v57 = vpack.c.bf16 %v1705_v55, %v1704_v48 }
 0x654   : > { %3709 = vmatmul.msk.bf16.vlgmr.msra.gmra.mxu3 %vm847_vm0, %v1707_v57 }
 0x656   : > { %v1512_v46 = vpop.f32.mrf.mxu3 }
 0x65e   : > { %v1514_v50 = vpop.f32.mrf.mxu3 }
 0x679   : > { %v1680_v63 = vpop.permute.xlu2 %1679 }
 0x681   : > { %v1668_v61 = vpop.permute.xlu1 %1667 }
 0x682   : > { %v1698_v62 = vsel %vm1138_vm12, %v1512_v46, %v1668_v61  ;;  %v4108_v46 = vld [vmem:[%s5448_s6 + $0x1a] ss:$0 sm:$0xff] }
 0x683   : > { %v1702_v52 = vsel %vm1699_vm2, %v1698_v62, %v1680_v63  ;;  %v4109_v63 = vld [vmem:[%s5448_s6 + $0x1b] ss:$0 sm:$0xff] }
 0x68f   : > { %v1692_v0 = vpop.permute.xlu1 %1691 }
 0x690   : > { %v1706_v31 = vsel %vm1703_vm3, %v1702_v52, %v1692_v0 }
 0x691   : > { %v1708_v11 = vpack.c.bf16 %v1706_v31, %v1706_v31 }
 0x693   : > { %3710 = vmatmul.msk.bf16.gmra.mxu3 %vm847_vm0, %v1708_v11 }
 0x6d7   : > { %v1741_v3 = vpop.f32.mrf.mxu3 }
 0x6d8   : > { %v1742_v4 = vadd.f32 %v4106_v1, %v1741_v3 }
 0x6da   : > { %v1751_v34 = vmul.f32 %v4107_v2, %v1742_v4 }
 0x6dc   : > { %v4872_v13 = vadd.f32 %v1751_v34, %v4527_v49 }
 0x6de   : > { %v1757_v22 = vsel %vm847_vm0, %v4872_v13, 0.0 }
 0x6df   : > { %v1743_v6 = vpop.f32.mrf.mxu3  ;;  %1758 = vadd.xlane.f32.xlu2 %v1757_v22 }
 0x6e0   : > { %v1744_v8 = vadd.f32 %v4106_v1, %v1743_v6 }
 0x6e2   : > { %v1752_v37 = vmul.f32 %v4107_v2, %v1744_v8 }
 0x6e4   : > { %v4877_v44 = vadd.f32 %v1752_v37, %v4533_v60 }
 0x6e6   : > { %v1760_v10 = vsel %vm847_vm0, %v4877_v44, 0.0 }
 0x6e7   : > { %1761 = vadd.xlane.f32.xlu1 %v1760_v10 }
 0x716   : > { %v1746_v17 = vpop.f32.mrf.mxu3 }
 0x717   : > { %v1747_v36 = vadd.f32 %v4106_v1, %v1746_v17 }
 0x719   : > { %v1753_v18 = vmul.f32 %v4107_v2, %v1747_v36 }
 0x71b   : > { %v4882_v49 = vadd.f32 %v1753_v18, %v4531_v59 }
 0x71d   : > { %v1763_v23 = vsel %vm854_vm1, %v4882_v49, 0.0 }
 0x71e   : > { %v1748_v26 = vpop.f32.mrf.mxu3  ;;  %1764 = vadd.xlane.f32.xlu0 %v1763_v23 }
 0x752   : > { %v1759_v27 = vpop.xlane.xlu2 %1758 }
 0x753   : > { %v1766_v20 = vmul.f32 %v1759_v27, %v4539_v7 }
 0x755   : > { %v1769_v60 = vsub.f32 %v4872_v13, %v1766_v20  ;;  %v4915_v20 = vld [vmem:[%s5448_s6 + $0x1c] ss:$0 sm:$0xff] }
 0x757   : > { %v1772_v12 = vmul.f32 %v1769_v60, %v1769_v60 }
 0x759   : > { %v1775_v58 = vsel %vm847_vm0, %v1772_v12, 0.0 }
 0x75a   : > { %v1762_v35 = vpop.xlane.xlu1 %1761  ;;  %1776 = vadd.xlane.f32.xlu2 %v1775_v58 }
 0x75b   : > { %v1767_v21 = vmul.f32 %v1762_v35, %v4539_v7  ;;  %v3928_v35 = vld [vmem:[%s5447_s5 + $0x38] sm:$0xff] }
 0x75c   : > { %2058 = vmatpush.bf16.msra.mxu1 %v3928_v35 }
 0x75d   : > { %v1770_v59 = vsub.f32 %v4877_v44, %v1767_v21 }
 0x75f   : > { %v1773_v25 = vmul.f32 %v1770_v59, %v1770_v59 }
 0x761   : > { %v1778_v28 = vsel %vm847_vm0, %v1773_v25, 0.0  ;;  %v3927_v25 = vld [vmem:[%s5447_s5 + $0x30] sm:$0xff] }
 0x762   : > { %1779 = vadd.xlane.f32.xlu1 %v1778_v28  ;;  %2059 = vmatpush.bf16.msra.mxu1 %v3927_v25 }
 0x791   : > { %v1765_v29 = vpop.xlane.xlu0 %1764 }
 0x792   : > { %v1768_v45 = vmul.f32 %v1765_v29, %v4539_v7 }
 0x794   : > { %v1771_v30 = vsub.f32 %v4882_v49, %v1768_v45 }
 0x796   : > { %v1774_v32 = vmul.f32 %v1771_v30, %v1771_v30 }
 0x798   : > { %v1781_v38 = vsel %vm854_vm1, %v1774_v32, 0.0 }
 0x799   : > { %1782 = vadd.xlane.f32.xlu2 %v1781_v38 }
 0x7cd   : > { %v1777_v15 = vpop.xlane.xlu2 %1776 }
 0x7ce   : > { %v1784_v16 = vmul.f32 %v1777_v15, %v4539_v7 }
 0x7d0   : > { %v1787_v24 = vadd.f32 1e-06, %v1784_v16 }
 0x7d2   : > { %4183 = vrsqrt.f32 %v1787_v24  ;;  %vm1796_vm5 = vweird.f32 %v1787_v24 }
 0x7d5   : > { %v1780_v5 = vpop.xlane.xlu1 %1779 }
 0x7d6   : > { %v1785_v40 = vmul.f32 %v1780_v5, %v4539_v7  ;;  %v3924_v5 = vld [vmem:[%s5447_s5 + $0x18] sm:$0xff] }
 0x7d8   : > { %v4184_v41 = vpop.eup %4183  ;;  %v1788_v42 = vadd.f32 1e-06, %v1785_v40 }
 0x7d9   : > { %v1791_v43 = vmul.f32 %v4184_v41, %v1787_v24  ;;  %vm1797_vm4 = vweird.f32 %v4184_v41 }
 0x7da   : > { %4185 = vrsqrt.f32 %v1788_v42  ;;  %vm1798_vm6 = vmor %vm1796_vm5, %vm1797_vm4  ;;  %vm1806_vm8 = vweird.f32 %v1788_v42 }
 0x7db   : > { %v1792_v51 = vmul.f32 %v4184_v41, %v1791_v43 }
 0x7dd   : > { %v1793_v53 = vmul.f32 0.5, %v1792_v51  ;;  %v3923_v51 = vld [vmem:[%s5447_s5 + $0x10] sm:$0xff] }
 0x7df   : > { %v1794_v54 = vsub.f32 1.5, %v1793_v53 }
 0x7e0   : > { %v4186_v9 = vpop.eup %4185 }
 0x7e1   : > { %v1795_v14 = vmul.f32 %v4184_v41, %v1794_v54  ;;  %v1801_v47 = vmul.f32 %v4186_v9, %v1788_v42  ;;  %vm1807_vm7 = vweird.f32 %v4186_v9 }
 0x7e2   : > { %vm1808_vm9 = vmor %vm1806_vm8, %vm1807_vm7 }
 0x7e3   : > { %v1802_v39 = vmul.f32 %v4186_v9, %v1801_v47  ;;  %v1799_v48 = vsel %vm1798_vm6, %v4184_v41, %v1795_v14 }
 0x7e4   : > { %v1820_v50 = vmul.f32 %v1799_v48, %v1769_v60  ;;  %v3922_v48 = vld [vmem:[%s5447_s5 + $0x8] sm:$0xff] }
 0x7e5   : > { %v1803_v55 = vmul.f32 0.5, %v1802_v39 }
 0x7e6   : > { %v1824_v0 = vmul.f32 %v4108_v46, %v1820_v50 }
 0x7e7   : > { %v1804_v57 = vsub.f32 1.5, %v1803_v55 }
 0x7e8   : > { %v1828_v11 = vadd.f32 %v4109_v63, %v1824_v0  ;;  %v3921_v0 = vld [vmem:[%s5447_s5] sm:$0xff] }
 0x7e9   : > { %v1805_v61 = vmul.f32 %v4186_v9, %v1804_v57 }
 0x7eb   : > { %v1809_v62 = vsel %vm1808_vm9, %v4186_v9, %v1805_v61 }
 0x7ec   : > { %v1821_v52 = vmul.f32 %v1809_v62, %v1770_v59 }
 0x7ee   : > { %v1825_v31 = vmul.f32 %v4108_v46, %v1821_v52 }
 0x7f0   : > { %v1829_v1 = vadd.f32 %v4109_v63, %v1825_v31 }
 0x7f2   : > { %v1831_v2 = vpack.c.bf16 %v1829_v1, %v1828_v11 }
 0x7f4   : > { %3719 = vmatmul.msk.bf16.vlgmr.msra.gmra.mxu0 %vm847_vm0, %v1831_v2 }
 0x80c   : > { %v1783_v3 = vpop.xlane.xlu2 %1782 }
 0x80d   : > { %v1786_v4 = vmul.f32 %v1783_v3, %v4539_v7 }
 0x80f   : > { %v1789_v34 = vadd.f32 1e-06, %v1786_v4 }
 0x811   : > { %4187 = vrsqrt.f32 %v1789_v34  ;;  %vm1816_vm11 = vweird.f32 %v1789_v34 }
 0x817   : > { %v4188_v22 = vpop.eup %4187 }
 0x818   : > { %v1811_v6 = vmul.f32 %v4188_v22, %v1789_v34  ;;  %vm1817_vm10 = vweird.f32 %v4188_v22 }
 0x819   : > { %vm1818_vm15 = vmor %vm1816_vm11, %vm1817_vm10 }
 0x81a   : > { %v1812_v8 = vmul.f32 %v4188_v22, %v1811_v6 }
 0x81c   : > { %v1813_v37 = vmul.f32 0.5, %v1812_v8 }
 0x81e   : > { %v1814_v10 = vsub.f32 1.5, %v1813_v37 }
 0x820   : > { %v1815_v17 = vmul.f32 %v4188_v22, %v1814_v10 }
 0x822   : > { %v1819_v36 = vsel %vm1818_vm15, %v4188_v22, %v1815_v17 }
 0x823   : > { %v1822_v18 = vmul.f32 %v1819_v36, %v1771_v30  ;;  %v3926_v30 = vld [vmem:[%s5447_s5 + $0x28] sm:$0xff] }
 0x824   : > { %2060 = vmatpush.bf16.msra.mxu1 %v3926_v30 }
 0x825   : > { %v1826_v23 = vmul.f32 %v4108_v46, %v1822_v18 }
 0x827   : > { %v1830_v26 = vadd.f32 %v4109_v63, %v1826_v23 }
 0x828   : > { %2061 = vmatpush.bf16.msra.mxu1 %v3925_v56 }
 0x829   : > { %v1832_v27 = vpack.c.bf16 %v1830_v26, %v1830_v26 }
 0x82b   : > { %3720 = vmatmul.msk.bf16.gmra.mxu0 %vm847_vm0, %v1832_v27 }
 0x82c   : > { %2062 = vmatpush.bf16.msra.mxu1 %v3924_v5 }
 0x830   : > { %2063 = vmatpush.bf16.msra.mxu1 %v3923_v51 }
 0x834   : > { %2064 = vmatpush.bf16.msra.mxu1 %v3922_v48 }
 0x838   : > { %2065 = vmatpush.bf16.msra.mxu1 %v3921_v0 }
 0x871   : > { %v1865_v60 = vpop.f32.mrf.mxu0 }
 0x872   : > { %v4918_v12 = vadd.f32 %v4915_v20, %v1865_v60 }
 0x874   : > { %v4921_v58 = vmul.f32 0.70710677, %v4918_v12 }
 0x876   : > { %v1886_v21 = vand.u32 2147483647, %v4921_v58  ;;  %vm1880_vm15 = vcmp.ge.f32.partialorder %v4921_v58, 0.0 }
 0x878   : > { %v1889_v59 = vmul.f32 0.3275911, %v1886_v21  ;;  %v1964_v57 = vsub.f32 0.0, %v1886_v21 }
 0x879   : > { %v1867_v28 = vpop.f32.mrf.mxu0 }
 0x87a   : > { %v1892_v29 = vadd.f32 1.0, %v1889_v59  ;;  %v4931_v45 = vadd.f32 %v4915_v20, %v1867_v28  ;;  %v1967_v31 = vmul.f32 %v1964_v57, %v1886_v21 }
 0x87c   : > { %4189 = vrcp.f32 %v1892_v29  ;;  %v4937_v32 = vmul.f32 0.70710677, %v4931_v45  ;;  %v1906_v41 = vand.u32 2147483648, %v1892_v29  ;;  %v1904_v43 = vand.u32 2147483647, %v1892_v29 }
 0x87d   : > { %vm1900_vm5 = vweird.f32 %v1892_v29  ;;  %v1970_v34 = vmul.f32 1.442695, %v1967_v31 }
 0x87e   : > { %v1887_v38 = vand.u32 2147483647, %v4937_v32  ;;  %v1907_v54 = vor.u32 1.1754944e-38, %v1906_v41  ;;  %vm1905_vm7 = vcmp.eq.f32.partialorder %v1904_v43, 8.507059e+37 }
 0x880   : > { %v1890_v15 = vmul.f32 0.3275911, %v1887_v38  ;;  %v1965_v6 = vsub.f32 0.0, %v1887_v38 }
 0x882   : > { %v4190_v16 = vpop.eup %4189  ;;  %v1893_v24 = vadd.f32 1.0, %v1890_v15  ;;  %v1968_v36 = vmul.f32 %v1965_v6, %v1887_v38 }
 0x883   : > { %v1896_v33 = vmul.f32 %v4190_v16, %v1892_v29  ;;  %vm1901_vm4 = vweird.f32 %v4190_v16 }
 0x884   : > { %4191 = vrcp.f32 %v1893_v24  ;;  %vm1902_vm6 = vmor %vm1900_vm5, %vm1901_vm4  ;;  %v1920_v61 = vand.u32 2147483648, %v1893_v24  ;;  %v1918_v63 = vand.u32 2147483647, %v1893_v24  ;;  %vm1914_vm9 = vweird.f32 %v1893_v24 }
 0x885   : > { %v1897_v40 = vsub.f32 1.0, %v1896_v33  ;;  %4193 = vpow2.f32 %v1970_v34  ;;  %v1972_v60 = vmul.f32 1.442695, %v1968_v36  ;;  %vm1881_vm4 = vcmp.ge.f32.partialorder %v4937_v32, 0.0 }
 0x886   : > { %v1921_v2 = vor.u32 1.1754944e-38, %v1920_v61  ;;  %vm1919_vm11 = vcmp.eq.f32.partialorder %v1918_v63, 8.507059e+37 }
 0x887   : > { %v1898_v42 = vmul.f32 %v4190_v16, %v1897_v40  ;;  %4195 = vpow2.f32 %v1972_v60 }
 0x889   : > { %v1899_v53 = vadd.f32 %v4190_v16, %v1898_v42 }
 0x88a   : > { %v4192_v9 = vpop.eup %4191 }
 0x88b   : > { %v1903_v14 = vsel %vm1902_vm6, %v4190_v16, %v1899_v53  ;;  %v1910_v39 = vmul.f32 %v4192_v9, %v1893_v24  ;;  %vm1915_vm8 = vweird.f32 %v4192_v9  ;;  %v4194_v21 = vpop.eup %4193  ;;  %v4298_v16 = vmov -1.0  }
 0x88c   : > { %v1908_v47 = vsel %vm1905_vm7, %v1907_v54, %v1903_v14  ;;  %vm1916_vm10 = vmor %vm1914_vm9, %vm1915_vm8  ;;  %v1883_v38 = vsel %vm1880_vm15, 1.0, %v4298_v16  ;;  %v1884_v42 = vsel %vm1881_vm4, 1.0, %v4298_v16  ;;  %v1874_v54 = vmul.f32 0.5, %v4918_v12 }
 0x88d   : > { %v1937_v55 = vmul.f32 1.0614054, %v1908_v47  ;;  %v1911_v46 = vsub.f32 1.0, %v1910_v39  ;;  %v4196_v15 = vpop.eup %4195 }
 0x88f   : > { %v1940_v50 = vadd.f32 -1.4531521, %v1937_v55  ;;  %v1912_v62 = vmul.f32 %v4192_v9, %v1911_v46 }
 0x891   : > { %v1943_v52 = vmul.f32 %v1940_v50, %v1908_v47  ;;  %v1913_v11 = vadd.f32 %v4192_v9, %v1912_v62 }
 0x893   : > { %v1946_v1 = vadd.f32 1.4214138, %v1943_v52  ;;  %v1917_v3 = vsel %vm1916_vm10, %v4192_v9, %v1913_v11  ;;  %v1875_v9 = vmul.f32 0.5, %v4931_v45 }
 0x894   : > { %v1922_v22 = vsel %vm1919_vm11, %v1921_v2, %v1917_v3 }
 0x895   : > { %v1949_v4 = vmul.f32 %v1946_v1, %v1908_v47  ;;  %v1938_v8 = vmul.f32 1.0614054, %v1922_v22 }
 0x897   : > { %v1952_v37 = vadd.f32 -0.28449672, %v1949_v4  ;;  %v1941_v10 = vadd.f32 -1.4531521, %v1938_v8 }
 0x899   : > { %v1955_v17 = vmul.f32 %v1952_v37, %v1908_v47  ;;  %v1944_v18 = vmul.f32 %v1941_v10, %v1922_v22 }
 0x89b   : > { %v1958_v23 = vadd.f32 0.2548296, %v1955_v17  ;;  %v1947_v26 = vadd.f32 1.4214138, %v1944_v18 }
 0x89d   : > { %v1961_v27 = vmul.f32 %v1958_v23, %v1908_v47  ;;  %v1950_v35 = vmul.f32 %v1947_v26, %v1922_v22 }
 0x89f   : > { %v1976_v59 = vmul.f32 %v4194_v21, %v1961_v27  ;;  %v1953_v25 = vadd.f32 -0.28449672, %v1950_v35 }
 0x8a1   : > { %v1956_v28 = vmul.f32 %v1953_v25, %v1922_v22  ;;  %v1979_v29 = vsub.f32 1.0, %v1976_v59  ;;  %v4111_v59 = vld [vmem:[%s5448_s6 + $0x1d] ss:$0 sm:$0xff]  ;;  %v4112_v25 = vld [vmem:[%s5448_s6 + $0x1e] ss:$0 sm:$0xff] }
 0x8a3   : > { %v1959_v30 = vadd.f32 0.2548296, %v1956_v28  ;;  %v1982_v33 = vmul.f32 %v1979_v29, %v1883_v38 }
 0x8a5   : > { %v1962_v56 = vmul.f32 %v1959_v30, %v1922_v22  ;;  %v1985_v51 = vadd.f32 1.0, %v1982_v33 }
 0x8a7   : > { %v1977_v24 = vmul.f32 %v4196_v15, %v1962_v56  ;;  %v1988_v39 = vmul.f32 %v1985_v51, %v1874_v54 }
 0x8a8   : > { %v1870_v5 = vpop.f32.mrf.mxu0 }
 0x8a9   : > { %v1871_v40 = vadd.f32 %v4915_v20, %v1870_v5  ;;  %v1980_v41 = vsub.f32 1.0, %v1977_v24 }
 0x8ab   : > { %v1879_v43 = vmul.f32 0.70710677, %v1871_v40  ;;  %v1983_v58 = vmul.f32 %v1980_v41, %v1884_v42  ;;  %v1876_v27 = vmul.f32 0.5, %v1871_v40 }
 0x8ad   : > { %v1888_v53 = vand.u32 2147483647, %v1879_v43  ;;  %v1986_v14 = vadd.f32 1.0, %v1983_v58  ;;  %vm1882_vm9 = vcmp.ge.f32.partialorder %v1879_v43, 0.0 }
 0x8ae   : > { %v1885_v23 = vsel %vm1882_vm9, 1.0, %v4298_v16 }
 0x8af   : > { %v1891_v47 = vmul.f32 0.3275911, %v1888_v53  ;;  %v1989_v48 = vmul.f32 %v1986_v14, %v1875_v9  ;;  %v1966_v52 = vsub.f32 0.0, %v1888_v53 }
 0x8b0   : > { %v1872_v32 = vpop.f32.mrf.mxu0 }
 0x8b1   : > { %v1894_v55 = vadd.f32 1.0, %v1891_v47  ;;  %v1991_v57 = vpack.c.bf16 %v1989_v48, %v1988_v39  ;;  %v1969_v2 = vmul.f32 %v1966_v52, %v1888_v53 }
 0x8b3   : > { %4197 = vrcp.f32 %v1894_v55  ;;  %2066 = vmatmul.bf16.vlgmr.msra.gmra.mxu1 %v1991_v57  ;;  %v1934_v61 = vand.u32 2147483648, %v1894_v55  ;;  %v1932_v63 = vand.u32 2147483647, %v1894_v55  ;;  %vm1928_vm6 = vweird.f32 %v1894_v55 }
 0x8b4   : > { %v1974_v34 = vmul.f32 1.442695, %v1969_v2 }
 0x8b5   : > { %v1935_v12 = vor.u32 1.1754944e-38, %v1934_v61  ;;  %vm1933_vm8 = vcmp.eq.f32.partialorder %v1932_v63, 8.507059e+37  ;;  %v3930_v61 = vld [vmem:[%s5444_s2 + $0x18] sm:$0xff] }
 0x8b6   : > { %4199 = vpow2.f32 %v1974_v34  ;;  %2200 = vmatpush.bf16.msrb.mxu2 %v3930_v61 }
 0x8b9   : > { %v4198_v20 = vpop.eup %4197 }
 0x8ba   : > { %v1924_v46 = vmul.f32 %v4198_v20, %v1894_v55  ;;  %vm1929_vm5 = vweird.f32 %v4198_v20 }
 0x8bb   : > { %vm1930_vm7 = vmor %vm1928_vm6, %vm1929_vm5 }
 0x8bc   : > { %v1925_v50 = vsub.f32 1.0, %v1924_v46  ;;  %v4200_v17 = vpop.eup %4199 }
 0x8be   : > { %v1926_v62 = vmul.f32 %v4198_v20, %v1925_v50 }
 0x8c0   : > { %v1927_v0 = vadd.f32 %v4198_v20, %v1926_v62 }
 0x8c2   : > { %v1931_v45 = vsel %vm1930_vm7, %v4198_v20, %v1927_v0 }
 0x8c3   : > { %v1936_v31 = vsel %vm1933_vm8, %v1935_v12, %v1931_v45  ;;  %v3929_v12 = vld [vmem:[%s5444_s2 + $0x10] sm:$0xff] }
 0x8c4   : > { %v1939_v11 = vmul.f32 1.0614054, %v1936_v31  ;;  %2201 = vmatpush.bf16.msrb.mxu2 %v3929_v12 }
 0x8c6   : > { %v1942_v1 = vadd.f32 -1.4531521, %v1939_v11 }
 0x8c8   : > { %v1945_v3 = vmul.f32 %v1942_v1, %v1936_v31 }
 0x8ca   : > { %v1948_v4 = vadd.f32 1.4214138, %v1945_v3 }
 0x8cc   : > { %v1951_v22 = vmul.f32 %v1948_v4, %v1936_v31 }
 0x8ce   : > { %v1954_v6 = vadd.f32 -0.28449672, %v1951_v22 }
 0x8d0   : > { %v1957_v8 = vmul.f32 %v1954_v6, %v1936_v31 }
 0x8d2   : > { %v1960_v37 = vadd.f32 0.2548296, %v1957_v8 }
 0x8d4   : > { %v1963_v10 = vmul.f32 %v1960_v37, %v1936_v31  ;;  %v4115_v37 = vld [vmem:[%s5448_s6 + $0x22] ss:$0 sm:$0xff] }
 0x8d6   : > { %v1978_v36 = vmul.f32 %v4200_v17, %v1963_v10 }
 0x8d8   : > { %v1981_v18 = vsub.f32 1.0, %v1978_v36 }
 0x8da   : > { %v1984_v26 = vmul.f32 %v1981_v18, %v1885_v23  ;;  %v4113_v18 = vld [vmem:[%s5448_s6 + $0x1f] ss:$0 sm:$0xff] }
 0x8dc   : > { %v1987_v60 = vadd.f32 1.0, %v1984_v26 }
 0x8de   : > { %v1990_v35 = vmul.f32 %v1987_v60, %v1876_v27  ;;  %v4114_v60 = vld [vmem:[%s5448_s6 + $0x20] ss:$0 sm:$0xff] }
 0x8e0   : > { %v1992_v21 = vpack.c.bf16 %v1990_v35, %v1990_v35 }
 0x8e2   : > { %2071 = vmatmul.bf16.gmra.mxu1 %v1992_v21 }
 0x930   : > { %v2067_v28 = vpop.f32.mrf.mxu1 }
 0x931   : > { %v2068_v29 = vadd.f32 %v4111_v59, %v2067_v28 }
 0x933   : > { %v2077_v30 = vmul.f32 %v4112_v25, %v2068_v29 }
 0x935   : > { %v4970_v56 = vadd.f32 %v2077_v30, %v4872_v13 }
 0x937   : > { %v2095_v15 = vsel %vm847_vm0, %v4970_v56, 0.0 }
 0x938   : > { %v2069_v38 = vpop.f32.mrf.mxu1  ;;  %2096 = vadd.xlane.f32.xlu0 %v2095_v15 }
 0x939   : > { %v2070_v33 = vadd.f32 %v4111_v59, %v2069_v38 }
 0x93b   : > { %v2078_v24 = vmul.f32 %v4112_v25, %v2070_v33 }
 0x93d   : > { %v4975_v5 = vadd.f32 %v2078_v24, %v4877_v44 }
 0x93f   : > { %v2098_v40 = vsel %vm847_vm0, %v4975_v5, 0.0 }
 0x940   : > { %2099 = vadd.xlane.f32.xlu1 %v2098_v40 }
 0x95f   : > { %v2072_v41 = vpop.f32.mrf.mxu1 }
 0x960   : > { %v2073_v42 = vadd.f32 %v4111_v59, %v2072_v41 }
 0x962   : > { %v2079_v43 = vmul.f32 %v4112_v25, %v2073_v42 }
 0x964   : > { %v4980_v13 = vadd.f32 %v2079_v43, %v4882_v49 }
 0x966   : > { %v2101_v51 = vsel %vm854_vm1, %v4980_v13, 0.0 }
 0x967   : > { %v2074_v58 = vpop.f32.mrf.mxu1  ;;  %2102 = vadd.xlane.f32.xlu2 %v2101_v51 }
 0x9ab   : > { %v2097_v53 = vpop.xlane.xlu0 %2096 }
 0x9ac   : > { %v2104_v54 = vmul.f32 %v2097_v53, %v4539_v7 }
 0x9ae   : > { %v2107_v44 = vsub.f32 %v4970_v56, %v2104_v54 }
 0x9b0   : > { %v2110_v9 = vmul.f32 %v2107_v44, %v2107_v44 }
 0x9b2   : > { %v2113_v14 = vsel %vm847_vm0, %v2110_v9, 0.0 }
 0x9b3   : > { %v2100_v47 = vpop.xlane.xlu1 %2099  ;;  %2114 = vadd.xlane.f32.xlu0 %v2113_v14  ;;  %v5024_v14 = vld [vmem:[%s5448_s6 + $0x21] ss:$0 sm:$0xff] }
 0x9b4   : > { %v2105_v39 = vmul.f32 %v2100_v47, %v4539_v7 }
 0x9b6   : > { %v2108_v49 = vsub.f32 %v4975_v5, %v2105_v39 }
 0x9b8   : > { %v2111_v48 = vmul.f32 %v2108_v49, %v2108_v49 }
 0x9ba   : > { %v2116_v32 = vsel %vm847_vm0, %v2111_v48, 0.0 }
 0x9bb   : > { %2117 = vadd.xlane.f32.xlu1 %v2116_v32 }
 0x9c7   : > { %2218 = vrot.lane.b32.xlu0 %v4115_v37, %s4288_s11 }
 0x9da   : > { %v2103_v55 = vpop.xlane.xlu2 %2102 }
 0x9db   : > { %v2106_v57 = vmul.f32 %v2103_v55, %v4539_v7 }
 0x9dd   : > { %v4992_v20 = vsub.f32 %v4980_v13, %v2106_v57 }
 0x9df   : > { %v2112_v46 = vmul.f32 %v4992_v20, %v4992_v20 }
 0x9e1   : > { %v2119_v50 = vsel %vm854_vm1, %v2112_v46, 0.0 }
 0x9e2   : > { %2120 = vadd.xlane.f32.xlu2 %v2119_v50 }
 0xa26   : > { %v2115_v62 = vpop.xlane.xlu0 %2114 }
 0xa27   : > { %v2122_v63 = vmul.f32 %v2115_v62, %v4539_v7 }
 0xa29   : > { %v2125_v0 = vadd.f32 1e-06, %v2122_v63 }
 0xa2b   : > { %4201 = vrsqrt.f32 %v2125_v0  ;;  %vm2134_vm11 = vweird.f32 %v2125_v0 }
 0xa2e   : > { %v2118_v45 = vpop.xlane.xlu1 %2117 }
 0xa2f   : > { %v2123_v52 = vmul.f32 %v2118_v45, %v4539_v7 }
 0xa31   : > { %v4202_v31 = vpop.eup %4201  ;;  %v2126_v11 = vadd.f32 1e-06, %v2123_v52 }
 0xa32   : > { %v2129_v1 = vmul.f32 %v4202_v31, %v2125_v0  ;;  %vm2135_vm10 = vweird.f32 %v4202_v31 }
 0xa33   : > { %4203 = vrsqrt.f32 %v2126_v11  ;;  %vm2136_vm15 = vmor %vm2134_vm11, %vm2135_vm10  ;;  %vm2144_vm5 = vweird.f32 %v2126_v11 }
 0xa34   : > { %v2130_v2 = vmul.f32 %v4202_v31, %v2129_v1 }
 0xa36   : > { %v2131_v3 = vmul.f32 0.5, %v2130_v2 }
 0xa38   : > { %v2132_v4 = vsub.f32 1.5, %v2131_v3 }
 0xa39   : > { %v4204_v34 = vpop.eup %4203  ;;  %v2219_v47 = vpop.permute.xlu0 %2218 }
 0xa3a   : > { %v2133_v22 = vmul.f32 %v4202_v31, %v2132_v4  ;;  %v2139_v6 = vmul.f32 %v4204_v34, %v2126_v11  ;;  %vm2145_vm4 = vweird.f32 %v4204_v34 }
 0xa3b   : > { %vm2146_vm6 = vmor %vm2144_vm5, %vm2145_vm4 }
 0xa3c   : > { %v2140_v8 = vmul.f32 %v4204_v34, %v2139_v6  ;;  %v2137_v10 = vsel %vm2136_vm15, %v4202_v31, %v2133_v22 }
 0xa3d   : > { %v2158_v23 = vmul.f32 %v2137_v10, %v2107_v44 }
 0xa3e   : > { %v2141_v17 = vmul.f32 0.5, %v2140_v8 }
 0xa3f   : > { %v2162_v35 = vmul.f32 %v4113_v18, %v2158_v23 }
 0xa40   : > { %v2142_v36 = vsub.f32 1.5, %v2141_v17 }
 0xa41   : > { %v2166_v25 = vadd.f32 %v4114_v60, %v2162_v35 }
 0xa42   : > { %v2143_v26 = vmul.f32 %v4204_v34, %v2142_v36 }
 0xa44   : > { %v2147_v27 = vsel %vm2146_vm6, %v4204_v34, %v2143_v26 }
 0xa45   : > { %v2159_v21 = vmul.f32 %v2147_v27, %v2108_v49 }
 0xa47   : > { %v2163_v59 = vmul.f32 %v4113_v18, %v2159_v21 }
 0xa49   : > { %v2167_v28 = vadd.f32 %v4114_v60, %v2163_v59 }
 0xa4b   : > { %v2169_v29 = vpack.c.bf16 %v2167_v28, %v2166_v25 }
 0xa4d   : > { %3765 = vmatmul.msk.bf16.vlgmr.msrb.gmra.mxu2 %vm847_vm0, %v2169_v29 }
 0xa55   : > { %v2121_v30 = vpop.xlane.xlu2 %2120 }
 0xa56   : > { %v2124_v15 = vmul.f32 %v2121_v30, %v4539_v7 }
 0xa58   : > { %v2127_v38 = vadd.f32 1e-06, %v2124_v15 }
 0xa5a   : > { %4205 = vrsqrt.f32 %v2127_v38  ;;  %vm2154_vm8 = vweird.f32 %v2127_v38 }
 0xa60   : > { %v4206_v33 = vpop.eup %4205 }
 0xa61   : > { %v2149_v24 = vmul.f32 %v4206_v33, %v2127_v38  ;;  %vm2155_vm7 = vweird.f32 %v4206_v33 }
 0xa62   : > { %vm2156_vm9 = vmor %vm2154_vm8, %vm2155_vm7 }
 0xa63   : > { %v2150_v40 = vmul.f32 %v4206_v33, %v2149_v24 }
 0xa65   : > { %v2151_v41 = vmul.f32 0.5, %v2150_v40 }
 0xa67   : > { %v2152_v42 = vsub.f32 1.5, %v2151_v41 }
 0xa69   : > { %v2153_v43 = vmul.f32 %v4206_v33, %v2152_v42 }
 0xa6b   : > { %v2157_v51 = vsel %vm2156_vm9, %v4206_v33, %v2153_v43 }
 0xa6c   : > { %v2160_v58 = vmul.f32 %v2157_v51, %v4992_v20 }
 0xa6e   : > { %v2164_v53 = vmul.f32 %v4113_v18, %v2160_v58 }
 0xa70   : > { %v2168_v54 = vadd.f32 %v4114_v60, %v2164_v53 }
 0xa72   : > { %v2170_v44 = vpack.c.bf16 %v2168_v54, %v2168_v54 }
 0xa74   : > { %3766 = vmatmul.msk.bf16.gmra.mxu2 %vm847_vm0, %v2170_v44 }
 0xad0   : > { %v5019_v9 = vpop.f32.mrf.mxu2 }
 0xad1   : > { %v2213_v39 = vadd.f32 %v5024_v14, %v5019_v9  ;;  %v2221_v49 = vadd.f32 %v2219_v47, %v5019_v9 }
 0xad3   : > { %v2262_v32 = vpack.c.bf16 %v2213_v39, %v2213_v39  ;;  %v2304_v20 = vpack.c.bf16 %v2221_v49, %v2221_v49 }
 0xad5   : > { %v5037_v62 = vunpack.c.l.b16 %v2262_v32  ;;  %v5041_v0 = vunpack.c.l.b16 %v2304_v20 }
 0xad8   : > { %v5029_v48 = vpop.f32.mrf.mxu2 }
 0xad9   : > { %v2214_v55 = vadd.f32 %v5024_v14, %v5029_v48  ;;  %v2222_v57 = vadd.f32 %v2219_v47, %v5029_v48 }
 0xadb   : > { %v2263_v46 = vpack.c.bf16 %v2214_v55, %v2214_v55  ;;  %2297 = vrot.lane.b32.xlu2 %v2222_v57, %s4289_s18  ;;  %v5035_v50 = vpack.i.bf16 %v2214_v55, %v2213_v39  ;;  %v2305_v61 = vpack.c.bf16 %v2222_v57, %v2222_v57  ;;  %v4051_v3 = vpack.i.bf16 %v2222_v57, %v2221_v49 }
 0xadd   : > { %v5039_v63 = vunpack.c.l.b16 %v2263_v46  ;;  %v5043_v12 = vunpack.c.l.b16 %v2305_v61 }
 0xadf   : > { %v2364_v45 = vpack.c.b16 %v5039_v63, %v5037_v62  ;;  %v2372_v52 = vpack.c.b16 %v5043_v12, %v5041_v0 }
 0xae3   : > { %2279 = vrot.lane.b32.xlu2 %v2222_v57, %s4291_s20  ;;  %v4117_v57 = vld [vmem:[%s5448_s6 + $0x23] ss:$0 sm:$0xff] }
 0xaf7   : > { %v5050_v31 = vpop.f32.mrf.mxu2 }
 0xaf8   : > { %v2223_v11 = vadd.f32 %v2219_v47, %v5050_v31  ;;  %v5068_v32 = vadd.f32 %v5024_v14, %v5050_v31 }
 0xafa   : > { %v4046_v1 = vpack.i.bf16 %v2221_v49, %v2223_v11  ;;  %v2306_v49 = vpack.c.bf16 %v2223_v11, %v2223_v11 }
 0xafc   : > { %4047 = vrot.lane.b32.xlu0 %v4046_v1, %s4291_s20  ;;  %4042 = vrot.lane.b32.xlu1 %v4046_v1, %s4289_s18  ;;  %v2371_v55 = vunpack.c.l.b16 %v2306_v49 }
 0xafe   : > { %v2373_v20 = vpack.c.b16 %v2371_v55, %v2371_v55 }
 0xaff   : > { %v2210_v2 = vpop.f32.mrf.mxu2 }
 0xb04   : > { %2290 = vrot.lane.b32.xlu0 %v2223_v11, %s4290_s19  ;;  %4052 = vrot.lane.b32.xlu1 %v4051_v3, %s4290_s19 }
 0xb0c   : > { %4057 = vrot.lane.b32.xlu1 %v5035_v50, %s4289_s18 }
 0xb35   : > { %v2298_v4 = vpop.permute.xlu2 %2297 }
 0xb36   : > { %v2314_v22 = vpack.c.bf16 %v2298_v4, %v2298_v4 }
 0xb38   : > { %v2520_v60 = vunpack.c.l.b16 %v2314_v22 }
 0xb3d   : > { %v2280_v34 = vpop.permute.xlu2 %2279 }
 0xb3e   : > { %v2308_v37 = vpack.c.bf16 %v2280_v34, %v2280_v34 }
 0xb40   : > { %v2420_v35 = vunpack.c.l.b16 %v2308_v37 }
 0xb6e   : > { %v4048_v6 = vpop.permute.xlu0 %4047  ;;  %v4043_v8 = vpop.permute.xlu1 %4042 }
 0xb6f   : > { %v4050_v10 = vunpack.i.h.bf16 %v4048_v6  ;;  %v4045_v17 = vunpack.i.h.bf16 %v4043_v8  ;;  %v4044_v36 = vunpack.i.l.bf16 %v4043_v8  ;;  %v4049_v23 = vunpack.i.l.bf16 %v4048_v6 }
 0xb71   : > { %v2307_v18 = vpack.c.bf16 %v4050_v10, %v4050_v10  ;;  %v2313_v26 = vpack.c.bf16 %v4045_v17, %v4045_v17  ;;  %v2315_v27 = vpack.c.bf16 %v4044_v36, %v4044_v36  ;;  %v2309_v28 = vpack.c.bf16 %v4049_v23, %v4049_v23 }
 0xb73   : > { %v2419_v21 = vunpack.c.l.b16 %v2307_v18  ;;  %v2519_v59 = vunpack.c.l.b16 %v2313_v26  ;;  %v2521_v25 = vunpack.c.l.b16 %v2315_v27  ;;  %v2421_v40 = vunpack.c.l.b16 %v2309_v28 }
 0xb75   : > { %v2523_v29 = vpack.c.b16 %v2521_v25, %v2521_v25  ;;  %v2522_v30 = vpack.c.b16 %v2520_v60, %v2519_v59  ;;  %v2422_v15 = vpack.c.b16 %v2420_v35, %v2419_v21  ;;  %v2423_v51 = vpack.c.b16 %v2421_v40, %v2421_v40 }
 0xb76   : > { %v2291_v38 = vpop.permute.xlu0 %2290  ;;  %v4053_v33 = vpop.permute.xlu1 %4052 }
 0xb77   : > { %v2312_v24 = vpack.c.bf16 %v2291_v38, %v2291_v38  ;;  %2526 = vrot.lane.b32.xlu0 %v2523_v29, %s4292_s21  ;;  %2524 = vrot.lane.b32.xlu2 %v2522_v30, %s4292_s21  ;;  %v4055_v42 = vunpack.i.h.bf16 %v4053_v33  ;;  %v4054_v43 = vunpack.i.l.bf16 %v4053_v33 }
 0xb78   : > { %2424 = vrot.lane.b32.xlu1 %v2422_v15, %s4292_s21 }
 0xb79   : > { %v2471_v41 = vunpack.c.l.b16 %v2312_v24  ;;  %v2311_v53 = vpack.c.bf16 %v4055_v42, %v4055_v42  ;;  %v2310_v54 = vpack.c.bf16 %v4054_v43, %v4054_v43 }
 0xb7b   : > { %v2473_v58 = vpack.c.b16 %v2471_v41, %v2471_v41  ;;  %v2470_v44 = vunpack.c.l.b16 %v2311_v53  ;;  %v2469_v47 = vunpack.c.l.b16 %v2310_v54 }
 0xb7d   : > { %v2472_v39 = vpack.c.b16 %v2470_v44, %v2469_v47 }
 0xb7e   : > { %v4058_v61 = vpop.permute.xlu1 %4057 }
 0xb7f   : > { %2426 = vrot.lane.b32.xlu0 %v2423_v51, %s4292_s21  ;;  %2476 = vrot.lane.b32.xlu2 %v2473_v58, %s4292_s21  ;;  %v4060_v1 = vunpack.i.h.bf16 %v4058_v61 }
 0xb80   : > { %4067 = vrot.lane.b32.xlu1 %v5035_v50, %s4290_s19 }
 0xb81   : > { %v2272_v2 = vpack.c.bf16 %v4060_v1, %v4060_v1 }
 0xb83   : > { %v2512_v37 = vunpack.c.l.b16 %v2272_v2 }
 0xb87   : > { %2474 = vrot.lane.b32.xlu0 %v2472_v39, %s4292_s21  ;;  %4062 = vrot.lane.b32.xlu2 %v5035_v50, %s4291_s20 }
 0xb88   : > { %2257 = vrot.lane.b32.xlu1 %v5068_v32, %s4289_s18 }
 0xb8f   : > { %2376 = vrot.lane.b32.xlu0 %v2373_v20, %s4292_s21  ;;  %2374 = vrot.lane.b32.xlu2 %v2372_v52, %s4292_s21  ;;  %v4059_v52 = vunpack.i.l.bf16 %v4058_v61  ;;  %s278_s21 = scalar_lea.vmem %s5449_s7, %s3960_s8 }
 0xb90   : > { %2226 = vrot.lane.b32.xlu1 %v4117_v57, %s4293_s26 }
 0xb91   : > { %v2271_v3 = vpack.c.bf16 %v4059_v52, %v4059_v52  ;;  %v2264_v52 = vpack.c.bf16 %v5068_v32, %v5068_v32 }
 0xb93   : > { %v2511_v10 = vunpack.c.l.b16 %v2271_v3  ;;  %v2363_v2 = vunpack.c.l.b16 %v2264_v52 }
 0xb95   : > { %v2514_v26 = vpack.c.b16 %v2512_v37, %v2511_v10  ;;  %v2365_v3 = vpack.c.b16 %v2363_v2, %v2363_v2 }
 0xb97   : > { %2239 = vrot.lane.b32.xlu0 %v5068_v32, %s4291_s20  ;;  %2248 = vrot.lane.b32.xlu2 %v5068_v32, %s4290_s19 }
 0xbd1   : > { %v2525_v14 = vpop.permute.xlu2 %2524 }
 0xbd2   : > { %v2535_v22 = vsel %vm1138_vm12, %v2525_v14, 0 }
 0xbd9   : > { %v2477_v46 = vpop.permute.xlu2 %2476 }
 0xbda   : > { %v2488_v50 = vsel %vm1138_vm12, %v2477_v46, 0 }
 0xbdb   : > { %2496 = vmatpush.bf16.xpose.msrb.mxu1 %v2488_v50 }
 0xbe1   : > { %v4063_v4 = vpop.permute.xlu2 %4062 }
 0xbe2   : > { %v4065_v17 = vunpack.i.h.bf16 %v4063_v4  ;;  %v4064_v36 = vunpack.i.l.bf16 %v4063_v4 }
 0xbe4   : > { %v2266_v27 = vpack.c.bf16 %v4065_v17, %v4065_v17  ;;  %v2265_v60 = vpack.c.bf16 %v4064_v36, %v4064_v36 }
 0xbe6   : > { %v2412_v30 = vunpack.c.l.b16 %v2266_v27  ;;  %v2411_v15 = vunpack.c.l.b16 %v2265_v60 }
 0xbe8   : > { %v2414_v40 = vpack.c.b16 %v2412_v30, %v2411_v15 }
 0xbe9   : > { %v2527_v0 = vpop.permute.xlu0 %2526  ;;  %v2375_v38 = vpop.permute.xlu2 %2374 }
 0xbea   : > { %v2538_v12 = vsel %vm1138_vm12, %v2527_v0, 0  ;;  %v2425_v11 = vpop.permute.xlu1 %2424  ;;  %v2385_v46 = vsel %vm1138_vm12, %v2375_v38, 0 }
 0xbeb   : > { %2546 = vmatpush.bf16.xpose.msra.mxu2 %v2538_v12  ;;  %v2435_v25 = vsel %vm1138_vm12, %v2425_v11, 0 }
 0xbf1   : > { %v2427_v34 = vpop.permute.xlu0 %2426  ;;  %v2249_v49 = vpop.permute.xlu2 %2248 }
 0xbf2   : > { %v2438_v6 = vsel %vm1138_vm12, %v2427_v34, 0  ;;  %v4068_v8 = vpop.permute.xlu1 %4067 }
 0xbf3   : > { %2446 = vmatpush.bf16.xpose.msrb.mxu0 %v2438_v6  ;;  %2547 = vmatpush.bf16.xpose.msra.mxu2 %v2535_v22  ;;  %v4070_v18 = vunpack.i.h.bf16 %v4068_v8  ;;  %v4069_v23 = vunpack.i.l.bf16 %v4068_v8 }
 0xbf5   : > { %v2269_v35 = vpack.c.bf16 %v4070_v18, %v4070_v18  ;;  %v2268_v21 = vpack.c.bf16 %v4069_v23, %v4069_v23 }
 0xbf7   : > { %v2462_v33 = vunpack.c.l.b16 %v2269_v35  ;;  %v2461_v24 = vunpack.c.l.b16 %v2268_v21 }
 0xbf9   : > { %v2475_v59 = vpop.permute.xlu0 %2474  ;;  %v2464_v41 = vpack.c.b16 %v2462_v33, %v2461_v24 }
 0xbfa   : > { %v2485_v28 = vsel %vm1138_vm12, %v2475_v59, 0  ;;  %v2258_v29 = vpop.permute.xlu1 %2257  ;;  %3773 = vmatmul.msk.bf16.vlgmr.msra.gmra.mxu2 %vm1138_vm12, %v2514_v26 }
 0xbfb   : > { %2447 = vmatpush.bf16.xpose.msrb.mxu0 %v2435_v25  ;;  %2497 = vmatpush.bf16.xpose.msrb.mxu1 %v2485_v28  ;;  %v2273_v42 = vpack.c.bf16 %v2258_v29, %v2258_v29 }
 0xbfd   : > { %v2513_v47 = vunpack.c.l.b16 %v2273_v42 }
 0xbff   : > { %v2515_v20 = vpack.c.b16 %v2513_v47, %v2513_v47 }
 0xc01   : > { %v2377_v43 = vpop.permute.xlu0 %2376 }
 0xc02   : > { %v2388_v51 = vsel %vm1138_vm12, %v2377_v43, 0  ;;  %v2227_v58 = vpop.permute.xlu1 %2226  ;;  %3769 = vmatmul.msk.bf16.vlgmr.msrb.gmra.mxu0 %vm1138_vm12, %v2414_v40  ;;  %3771 = vmatmul.msk.bf16.vlgmr.msrb.gmra.mxu1 %vm1138_vm12, %v2464_v41 }
 0xc03   : > { %v2229_v53 = vadd.f32 %v2227_v58, %v5019_v9  ;;  %v2230_v54 = vadd.f32 %v2227_v58, %v5029_v48  ;;  %v5098_v44 = vadd.f32 %v2227_v58, %v5050_v31  ;;  %2396 = vmatpush.bf16.xpose.msrb.mxu3 %v2388_v51  ;;  %v2270_v31 = vpack.c.bf16 %v2249_v49, %v2249_v49 }
 0xc05   : > { %v4081_v39 = vpack.i.bf16 %v2229_v53, %v5098_v44  ;;  %v2346_v55 = vpack.c.bf16 %v2229_v53, %v2229_v53  ;;  %v2347_v57 = vpack.c.bf16 %v2230_v54, %v2230_v54  ;;  %v2463_v12 = vunpack.c.l.b16 %v2270_v31 }
 0xc07   : > { %4082 = vrot.lane.b32.xlu1 %v4081_v39, %s4290_s19  ;;  %4077 = vrot.lane.b32.xlu0 %v4081_v39, %s4291_s20  ;;  %v5104_v9 = vunpack.c.l.b16 %v2346_v55  ;;  %v5106_v48 = vunpack.c.l.b16 %v2347_v57  ;;  %v2465_v1 = vpack.c.b16 %v2463_v12, %v2463_v12 }
 0xc08   : > { %4072 = vrot.lane.b32.xlu2 %v4081_v39, %s4289_s18 }
 0xc09   : > { %v2240_v14 = vpop.permute.xlu0 %2239  ;;  %v2716_v61 = vpack.c.b16 %v5106_v48, %v5104_v9 }
 0xc0a   : > { %v2267_v50 = vpack.c.bf16 %v2240_v14, %v2240_v14  ;;  %3774 = vmatmul.msk.bf16.gmra.mxu2 %vm1138_vm12, %v2515_v20 }
 0xc0b   : > { %2397 = vmatpush.bf16.xpose.msrb.mxu3 %v2385_v46 }
 0xc0c   : > { %v2413_v0 = vunpack.c.l.b16 %v2267_v50 }
 0xc0e   : > { %v2415_v11 = vpack.c.b16 %v2413_v0, %v2413_v0 }
 0xc0f   : > { %2330 = vrot.lane.b32.xlu1 %v2230_v54, %s4290_s19  ;;  %2339 = vrot.lane.b32.xlu0 %v2230_v54, %s4289_s18 }
 0xc10   : > { %2321 = vrot.lane.b32.xlu2 %v2230_v54, %s4291_s20 }
 0xc12   : > { %3767 = vmatmul.msk.bf16.vlgmr.msrb.gmra.mxu3 %vm1138_vm12, %v2364_v45  ;;  %3770 = vmatmul.msk.bf16.gmra.mxu0 %vm1138_vm12, %v2415_v11 }
 0xc13   : > { %3772 = vmatmul.msk.bf16.gmra.mxu1 %vm1138_vm12, %v2465_v1 }
 0xc22   : > { %3768 = vmatmul.msk.bf16.gmra.mxu3 %vm1138_vm12, %v2365_v3 }
 0xc62   : > { %v5124_v4 = vpop.permute.xlu2 %4072 }
 0xc63   : > { %v4074_v34 = vunpack.i.l.bf16 %v5124_v4 }
 0xc65   : > { %v2357_v22 = vpack.c.bf16 %v4074_v34, %v4074_v34 }
 0xc67   : > { %v2859_v6 = vunpack.c.l.b16 %v2357_v22 }
 0xc69   : > { %v2861_v62 = vpack.c.b16 %v2859_v6, %v2859_v6 }
 0xc6a   : > { %v5176_v20 = vpop.permute.xlu2 %2321 }
 0xc6b   : > { %2864 = vrot.lane.b32.xlu1 %v2861_v62, %s4293_s26 }
 0xc79   : > { %v5128_v63 = vpop.permute.xlu1 %4082  ;;  %v5130_v45 = vpop.permute.xlu0 %4077 }
 0xc7a   : > { %v4084_v8 = vunpack.i.l.bf16 %v5128_v63  ;;  %v4079_v32 = vunpack.i.l.bf16 %v5130_v45 }
 0xc7c   : > { %v2354_v37 = vpack.c.bf16 %v4084_v8, %v4084_v8  ;;  %v2351_v10 = vpack.c.bf16 %v4079_v32, %v4079_v32 }
 0xc7d   : > { %v5134_v17 = vpop.f32.mrf.mxu2 }
 0xc7e   : > { %v2811_v36 = vunpack.c.l.b16 %v2354_v37  ;;  %v2763_v18 = vunpack.c.l.b16 %v2351_v10  ;;  %v2585_v49 = vsel %vm1319_vm13, %v5134_v17, -inf }
 0xc7f   : > { %v2449_v23 = vpop.f32.mrf.mxu0  ;;  %v5136_v26 = vpop.f32.mrf.mxu1 }
 0xc80   : > { %v2813_v27 = vpack.c.b16 %v2811_v36, %v2811_v36  ;;  %v2765_v60 = vpack.c.b16 %v2763_v18, %v2763_v18  ;;  %v2567_v30 = vsel %vm1319_vm13, %v2449_v23, -inf  ;;  %v2576_v47 = vsel %vm1319_vm13, %v5136_v26, -inf }
 0xc81   : > { %v2331_v31 = vpop.permute.xlu1 %2330  ;;  %v2340_v12 = vpop.permute.xlu0 %2339 }
 0xc82   : > { %2768 = vrot.lane.b32.xlu0 %v2765_v60, %s4293_s26  ;;  %2816 = vrot.lane.b32.xlu2 %v2813_v27, %s4293_s26  ;;  %v4085_v60 = vunpack.i.h.bf16 %v5128_v63 }
 0xc85   : > { %v5140_v35 = vpop.f32.mrf.mxu2 }
 0xc86   : > { %v2588_v39 = vsel %vm1319_vm13, %v5140_v35, -inf }
 0xc87   : > { %v5142_v21 = vpop.f32.mrf.mxu0  ;;  %v2501_v59 = vpop.f32.mrf.mxu1 }
 0xc88   : > { %v2579_v40 = vsel %vm1319_vm13, %v2501_v59, -inf  ;;  %v2570_v54 = vsel %vm1319_vm13, %v5142_v21, -inf }
 0xc8d   : > { %v5144_v25 = vpop.f32.mrf.mxu2 }
 0xc8e   : > { %v2591_v42 = vsel %vm1326_vm14, %v5144_v25, -inf }
 0xc8f   : > { %v5146_v28 = vpop.f32.mrf.mxu0 }
 0xc90   : > { %v5148_v29 = vpop.f32.mrf.mxu1  ;;  %v2573_v57 = vsel %vm1326_vm14, %v5146_v28, -inf }
 0xc91   : > { %v2582_v55 = vsel %vm1326_vm14, %v5148_v29, -inf }
 0xc95   : > { %2568 = vmax.xlane.f32.xlu1 %v2567_v30  ;;  %v5151_v15 = vpop.f32.mrf.mxu3  ;;  %v2556_v38 = vpop.f32.mrf.mxu2  ;;  %v2353_v30 = vpack.c.bf16 %v2331_v31, %v2331_v31 }
 0xc96   : > { %v2558_v58 = vsel %vm1319_vm13, %v5151_v15, -inf  ;;  %v2352_v38 = vpack.c.bf16 %v4085_v60, %v4085_v60 }
 0xc97   : > { %v2456_v33 = vpop.f32.mrf.mxu0 }
 0xc98   : > { %v2506_v24 = vpop.f32.mrf.mxu1 }
 0xc99   : > { %v2810_v24 = vunpack.c.l.b16 %v2353_v30 }
 0xc9d   : > { %2580 = vmax.xlane.f32.xlu1 %v2579_v40  ;;  %v5154_v41 = vpop.f32.mrf.mxu3 }
 0xc9e   : > { %v2561_v51 = vsel %vm1319_vm13, %v5154_v41, -inf }
 0xca5   : > { %2592 = vmax.xlane.f32.xlu1 %v2591_v42  ;;  %v5158_v43 = vpop.f32.mrf.mxu3 }
 0xcab   : > { %2562 = vmax.xlane.f32.xlu2 %v2561_v51 }
 0xcac   : > { %2559 = vmax.xlane.f32.xlu0 %v2558_v58  ;;  %v2809_v58 = vunpack.c.l.b16 %v2352_v38  ;;  %v2564_v38 = vsel %vm1326_vm14, %v5158_v43, -inf }
 0xcad   : > { %v2406_v53 = vpop.f32.mrf.mxu3 }
 0xcb3   : > { %2571 = vmax.xlane.f32.xlu2 %v2570_v54 }
 0xcb4   : > { %2577 = vmax.xlane.f32.xlu0 %v2576_v47 }
 0xcbb   : > { %2589 = vmax.xlane.f32.xlu2 %v2588_v39  ;;  %v2812_v39 = vpack.c.b16 %v2810_v24, %v2809_v58 }
 0xcbc   : > { %2586 = vmax.xlane.f32.xlu0 %v2585_v49 }
 0xcc3   : > { %2583 = vmax.xlane.f32.xlu2 %v2582_v55 }
 0xcc4   : > { %2574 = vmax.xlane.f32.xlu0 %v2573_v57 }
 0xcdc   : > { %v2817_v14 = vpop.permute.xlu2 %2816 }
 0xcdd   : > { %v2826_v46 = vand.u32 %v2817_v14, %v4738_v19  ;;  %v2865_v50 = vpop.permute.xlu1 %2864  ;;  %v4075_v14 = vunpack.i.h.bf16 %v5124_v4 }
 0xcde   : > { %v2874_v0 = vand.u32 %v2865_v50, %v4738_v19 }
 0xcdf   : > { %2834 = vmatpush.bf16.msra.mxu1 %v2826_v46  ;;  %v2356_v46 = vpack.c.bf16 %v2340_v12, %v2340_v12  ;;  %v2355_v50 = vpack.c.bf16 %v4075_v14, %v4075_v14 }
 0xce0   : > { %2882 = vmatpush.bf16.msrb.mxu2 %v2874_v0 }
 0xce1   : > { %v2858_v0 = vunpack.c.l.b16 %v2356_v46 }
 0xcf4   : > { %v2769_v11 = vpop.permute.xlu0 %2768 }
 0xcf5   : > { %v2778_v1 = vand.u32 %v2769_v11, %v4738_v19  ;;  %v2857_v11 = vunpack.c.l.b16 %v2355_v50 }
 0xcf7   : > { %2786 = vmatpush.bf16.msra.mxu0 %v2778_v1 }
 0xd08   : > { %v2569_v52 = vpop.xlane.xlu1 %2568 }
 0xd09   : > { %v2597_v2 = vsub.f32 %v2449_v23, %v2569_v52  ;;  %v2860_v52 = vpack.c.b16 %v2858_v0, %v2857_v11 }
 0xd0b   : > { %v2612_v3 = vmul.f32 1.442695, %v2597_v2  ;;  %v4080_v2 = vunpack.i.h.bf16 %v5130_v45  ;;  %v2348_v45 = vpack.c.bf16 %v5098_v44, %v5098_v44 }
 0xd0d   : > { %4207 = vpow2.f32 %v2612_v3 }
 0xd10   : > { %v2581_v34 = vpop.xlane.xlu1 %2580 }
 0xd11   : > { %v2601_v22 = vsub.f32 %v2501_v59, %v2581_v34  ;;  %v2349_v34 = vpack.c.bf16 %v4080_v2, %v4080_v2 }
 0xd13   : > { %v5181_v6 = vpop.eup %4207  ;;  %v2620_v62 = vmul.f32 1.442695, %v2601_v22  ;;  %v2350_v22 = vpack.c.bf16 %v5176_v20, %v5176_v20 }
 0xd14   : > { %v2639_v8 = vsel %vm1319_vm13, %v5181_v6, 0.0 }
 0xd15   : > { %4209 = vpow2.f32 %v2620_v62  ;;  %2640 = vadd.xlane.f32.xlu2 %v2639_v8  ;;  %v2761_v62 = vunpack.c.l.b16 %v2349_v34  ;;  %v2762_v4 = vunpack.c.l.b16 %v2350_v22 }
 0xd17   : > { %v2764_v12 = vpack.c.b16 %v2762_v4, %v2761_v62 }
 0xd1b   : > { %v5185_v32 = vpop.eup %4209 }
 0xd1c   : > { %v2651_v37 = vsel %vm1319_vm13, %v5185_v32, 0.0 }
 0xd1d   : > { %2652 = vadd.xlane.f32.xlu2 %v2651_v37 }
 0xd1e   : > { %v2563_v10 = vpop.xlane.xlu2 %2562 }
 0xd1f   : > { %v5189_v36 = vpop.xlane.xlu0 %2559  ;;  %v2595_v1 = vsub.f32 %v5154_v41, %v2563_v10  ;;  %v2593_v41 = vpop.xlane.xlu1 %2592 }
 0xd20   : > { %v2605_v10 = vsub.f32 %v5144_v25, %v2593_v41 }
 0xd21   : > { %v2608_v3 = vmul.f32 1.442695, %v2595_v1 }
 0xd26   : > { %v2572_v18 = vpop.xlane.xlu2 %2571 }
 0xd27   : > { %v2578_v23 = vpop.xlane.xlu0 %2577  ;;  %v2598_v47 = vsub.f32 %v5142_v21, %v2572_v18  ;;  %v2715_v18 = vunpack.c.l.b16 %v2348_v45 }
 0xd28   : > { %v2600_v27 = vsub.f32 %v5136_v26, %v2578_v23  ;;  %v2628_v23 = vmul.f32 1.442695, %v2605_v10 }
 0xd29   : > { %v2717_v20 = vpack.c.b16 %v2715_v18, %v2715_v18 }
 0xd2a   : > { %v2618_v59 = vmul.f32 1.442695, %v2600_v27  ;;  %v2594_v27 = vsub.f32 %v5151_v15, %v5189_v36 }
 0xd2c   : > { %4211 = vpow2.f32 %v2618_v59  ;;  %v2606_v30 = vmul.f32 1.442695, %v2594_v27 }
 0xd2e   : > { %v2590_v33 = vpop.xlane.xlu2 %2589 }
 0xd2f   : > { %v2604_v40 = vsub.f32 %v5140_v35, %v2590_v33  ;;  %v2587_v42 = vpop.xlane.xlu0 %2586  ;;  %v2614_v35 = vmul.f32 1.442695, %v2598_v47 }
 0xd30   : > { %v2603_v51 = vsub.f32 %v5134_v17, %v2587_v42 }
 0xd31   : > { %v2626_v53 = vmul.f32 1.442695, %v2604_v40 }
 0xd32   : > { %v5195_v54 = vpop.eup %4211  ;;  %v2624_v26 = vmul.f32 1.442695, %v2603_v51 }
 0xd33   : > { %4213 = vpow2.f32 %v2626_v53  ;;  %v2648_v63 = vsel %vm1319_vm13, %v5195_v54, 0.0 }
 0xd34   : > { %4215 = vpow2.f32 %v2624_v26  ;;  %2649 = vadd.xlane.f32.xlu0 %v2648_v63 }
 0xd35   : > { %2814 = vrot.lane.b32.xlu2 %v2812_v39, %s4293_s26  ;;  %4217 = vpow2.f32 %v2614_v35 }
 0xd36   : > { %4219 = vpow2.f32 %v2608_v3  ;;  %v2584_v60 = vpop.xlane.xlu2 %2583 }
 0xd37   : > { %4221 = vpow2.f32 %v2628_v23  ;;  %v2602_v59 = vsub.f32 %v5148_v29, %v2584_v60  ;;  %v2575_v44 = vpop.xlane.xlu0 %2574 }
 0xd38   : > { %4223 = vpow2.f32 %v2606_v30  ;;  %v2599_v25 = vsub.f32 %v5146_v28, %v2575_v44 }
 0xd39   : > { %v5201_v49 = vpop.eup %4213  ;;  %v2622_v33 = vmul.f32 1.442695, %v2602_v59 }
 0xd3a   : > { %v5203_v17 = vpop.eup %4215  ;;  %v2660_v55 = vsel %vm1319_vm13, %v5201_v49, 0.0  ;;  %v2616_v15 = vmul.f32 1.442695, %v2599_v25 }
 0xd3b   : > { %v2657_v21 = vsel %vm1319_vm13, %v5203_v17, 0.0  ;;  %v5209_v57 = vpop.eup %4217  ;;  %4225 = vpow2.f32 %v2622_v33 }
 0xd3c   : > { %2658 = vadd.xlane.f32.xlu1 %v2657_v21  ;;  %2661 = vadd.xlane.f32.xlu0 %v2660_v55  ;;  %v2642_v31 = vsel %vm1319_vm13, %v5209_v57, 0.0  ;;  %v5219_v8 = vpop.eup %4219  ;;  %4227 = vpow2.f32 %v2616_v15 }
 0xd3d   : > { %v2633_v37 = vsel %vm1319_vm13, %v5219_v8, 0.0  ;;  %v5234_v24 = vpop.eup %4221 }
 0xd3e   : > { %v2663_v36 = vsel %vm1326_vm14, %v5234_v24, 0.0  ;;  %v5238_v40 = vpop.eup %4223 }
 0xd3f   : > { %v2630_v42 = vsel %vm1319_vm13, %v5238_v40, 0.0 }
 0xd41   : > { %v5240_v29 = vpop.eup %4225 }
 0xd42   : > { %v2654_v28 = vsel %vm1326_vm14, %v5240_v29, 0.0  ;;  %v5246_v58 = vpop.eup %4227 }
 0xd43   : > { %v2645_v53 = vsel %vm1326_vm14, %v5246_v58, 0.0 }
 0xd44   : > { %2643 = vadd.xlane.f32.xlu1 %v2642_v31 }
 0xd50   : > { %2862 = vrot.lane.b32.xlu0 %v2860_v52, %s4293_s26 }
 0xd5d   : > { %2766 = vrot.lane.b32.xlu1 %v2764_v12, %s4293_s26 }
 0xd5e   : > { %2634 = vadd.xlane.f32.xlu2 %v2633_v37 }
 0xd76   : > { %2720 = vrot.lane.b32.xlu2 %v2717_v20, %s4293_s26 }
 0xd7a   : > { %2565 = vmax.xlane.f32.xlu0 %v2564_v38 }
 0xd82   : > { %2664 = vadd.xlane.f32.xlu0 %v2663_v36 }
 0xd87   : > { %2631 = vadd.xlane.f32.xlu1 %v2630_v42 }
 0xd88   : > { %v2641_v51 = vpop.xlane.xlu2 %2640 }
 0xd8a   : > { %2655 = vadd.xlane.f32.xlu0 %v2654_v28 }
 0xd8f   : > { %2646 = vadd.xlane.f32.xlu1 %v2645_v53 }
 0xd90   : > { %v2653_v47 = vpop.xlane.xlu2 %2652 }
 0xd91   : > { %4229 = vrcp.f32 %v2653_v47 }
 0xd97   : > { %v4230_v63 = vpop.eup %4229 }
 0xd98   : > { %v2815_v26 = vpop.permute.xlu2 %2814  ;;  %v2685_v35 = vmul.f32 %v4230_v63, %v5185_v32 }
 0xd99   : > { %2835 = vmatpush.bf16.msra.mxu1 %v2815_v26 }
 0xd9a   : > { %v2697_v21 = vpack.c.bf16 %v2685_v35, %v2685_v35 }
 0xd9c   : > { %v2802_v0 = vunpack.c.l.b16 %v2697_v21 }
 0xda7   : > { %v2650_v39 = vpop.xlane.xlu0 %2649 }
 0xda8   : > { %4231 = vrcp.f32 %v2650_v39  ;;  %2718 = vrot.lane.b32.xlu1 %v2716_v61, %s4293_s26 }
 0xdae   : > { %v4232_v55 = vpop.eup %4231 }
 0xdaf   : > { %v2684_v31 = vmul.f32 %v4232_v55, %v5195_v54  ;;  %v2659_v14 = vpop.xlane.xlu1 %2658  ;;  %v2662_v46 = vpop.xlane.xlu0 %2661 }
 0xdb0   : > { %4233 = vrcp.f32 %v2659_v14 }
 0xdb1   : > { %v2696_v50 = vpack.c.bf16 %v2684_v31, %v2684_v31  ;;  %4235 = vrcp.f32 %v2662_v46 }
 0xdb3   : > { %v2801_v11 = vunpack.c.l.b16 %v2696_v50 }
 0xdb5   : > { %v2804_v1 = vpack.c.b16 %v2802_v0, %v2801_v11 }
 0xdb6   : > { %v4234_v52 = vpop.eup %4233 }
 0xdb7   : > { %v4236_v2 = vpop.eup %4235  ;;  %3779 = vmatmul.msk.bf16.vlgmr.msra.gmra.mxu1 %vm1319_vm13, %v2804_v1  ;;  %v2687_v9 = vmul.f32 %v4234_v52, %v5203_v17  ;;  %v2644_v61 = vpop.xlane.xlu1 %2643 }
 0xdb8   : > { %v2688_v48 = vmul.f32 %v4236_v2, %v5201_v49  ;;  %4237 = vrcp.f32 %v2644_v61 }
 0xdb9   : > { %v2699_v32 = vpack.c.bf16 %v2687_v9, %v2687_v9  ;;  %4239 = vrcp.f32 %v2641_v51 }
 0xdba   : > { %v2700_v3 = vpack.c.bf16 %v2688_v48, %v2688_v48 }
 0xdbb   : > { %v2849_v54 = vunpack.c.l.b16 %v2699_v32 }
 0xdbc   : > { %v2850_v34 = vunpack.c.l.b16 %v2700_v3 }
 0xdbe   : > { %v4238_v22 = vpop.eup %4237  ;;  %v2852_v12 = vpack.c.b16 %v2850_v34, %v2849_v54 }
 0xdbf   : > { %v4240_v4 = vpop.eup %4239  ;;  %v2682_v37 = vmul.f32 %v4238_v22, %v5209_v57 }
 0xdc0   : > { %v2681_v17 = vmul.f32 %v4240_v4, %v5181_v6 }
 0xdc1   : > { %v2694_v45 = vpack.c.bf16 %v2682_v37, %v2682_v37 }
 0xdc2   : > { %v2863_v62 = vpop.permute.xlu0 %2862  ;;  %v2693_v49 = vpack.c.bf16 %v2681_v17, %v2681_v17 }
 0xdc3   : > { %2883 = vmatpush.bf16.msrb.mxu2 %v2863_v62  ;;  %v2754_v41 = vunpack.c.l.b16 %v2694_v45 }
 0xdc4   : > { %v2753_v10 = vunpack.c.l.b16 %v2693_v49 }
 0xdc6   : > { %3781 = vmatmul.msk.bf16.vlgmr.msrb.gmra.mxu2 %vm1319_vm13, %v2852_v12  ;;  %v2756_v23 = vpack.c.b16 %v2754_v41, %v2753_v10 }
 0xdcf   : > { %v2767_v18 = vpop.permute.xlu1 %2766 }
 0xdd0   : > { %2787 = vmatpush.bf16.msra.mxu0 %v2767_v18 }
 0xdd1   : > { %v2635_v20 = vpop.xlane.xlu2 %2634 }
 0xdd3   : > { %3777 = vmatmul.msk.bf16.vlgmr.msra.gmra.mxu0 %vm1319_vm13, %v2756_v23  ;;  %v3932_v23 = vld [vmem:[%s5445_s3 + $0x18] sm:$0xff] }
 0xdd9   : > { %v2721_v27 = vpop.permute.xlu2 %2720 }
 0xdda   : > { %v2730_v60 = vand.u32 %v2721_v27, %v4738_v19 }
 0xddc   : > { %2738 = vmatpush.bf16.msra.mxu3 %v2730_v60 }
 0xded   : > { %v2566_v59 = vpop.xlane.xlu0 %2565 }
 0xdee   : > { %v2596_v57 = vsub.f32 %v5158_v43, %v2566_v59 }
 0xdf0   : > { %v2610_v30 = vmul.f32 1.442695, %v2596_v57 }
 0xdf2   : > { %4241 = vpow2.f32 %v2610_v30 }
 0xdf5   : > { %v2665_v6 = vpop.xlane.xlu0 %2664 }
 0xdf6   : > { %4243 = vrcp.f32 %v2665_v6 }
 0xdf8   : > { %v4242_v38 = vpop.eup %4241 }
 0xdf9   : > { %v2636_v44 = vsel %vm1326_vm14, %v4242_v38, 0.0 }
 0xdfa   : > { %v2632_v33 = vpop.xlane.xlu1 %2631  ;;  %2637 = vadd.xlane.f32.xlu0 %v2636_v44 }
 0xdfc   : > { %v4244_v25 = vpop.eup %4243 }
 0xdfd   : > { %v2689_v15 = vmul.f32 %v4244_v25, %v5234_v24  ;;  %v2656_v36 = vpop.xlane.xlu0 %2655 }
 0xdfe   : > { %4245 = vrcp.f32 %v2656_v36 }
 0xdff   : > { %v2701_v42 = vpack.c.bf16 %v2689_v15, %v2689_v15 }
 0xe01   : > { %v2851_v19 = vunpack.c.l.b16 %v2701_v42 }
 0xe02   : > { %v2647_v51 = vpop.xlane.xlu1 %2646 }
 0xe03   : > { %4247 = vrcp.f32 %v2647_v51  ;;  %v2853_v28 = vpack.c.b16 %v2851_v19, %v2851_v19 }
 0xe04   : > { %v4246_v43 = vpop.eup %4245  ;;  %4249 = vrcp.f32 %v2632_v33 }
 0xe05   : > { %v2686_v53 = vmul.f32 %v4246_v43, %v5240_v29  ;;  %3782 = vmatmul.msk.bf16.gmra.mxu2 %vm1319_vm13, %v2853_v28  ;;  %4251 = vrcp.f32 %v2635_v20  ;;  %v3931_v20 = vld [vmem:[%s5445_s3 + $0x10] sm:$0xff] }
 0xe07   : > { %v2698_v47 = vpack.c.bf16 %v2686_v53, %v2686_v53 }
 0xe09   : > { %v4248_v26 = vpop.eup %4247  ;;  %v2803_v39 = vunpack.c.l.b16 %v2698_v47 }
 0xe0a   : > { %v2683_v63 = vmul.f32 %v4248_v26, %v5246_v58  ;;  %v4250_v55 = vpop.eup %4249 }
 0xe0b   : > { %v2805_v24 = vpack.c.b16 %v2803_v39, %v2803_v39  ;;  %v4252_v31 = vpop.eup %4251  ;;  %v2678_v14 = vmul.f32 %v4250_v55, %v5238_v40 }
 0xe0c   : > { %v2695_v35 = vpack.c.bf16 %v2683_v63, %v2683_v63  ;;  %v2679_v29 = vmul.f32 %v4252_v31, %v5219_v8 }
 0xe0d   : > { %3780 = vmatmul.msk.bf16.gmra.mxu1 %vm1319_vm13, %v2805_v24  ;;  %v2690_v50 = vpack.c.bf16 %v2678_v14, %v2678_v14  ;;  %v4118_v14 = vld [vmem:[%s5448_s6 + $0x24] ss:$0 sm:$0xff] }
 0xe0e   : > { %v2755_v21 = vunpack.c.l.b16 %v2695_v35  ;;  %v2691_v0 = vpack.c.bf16 %v2679_v29, %v2679_v29 }
 0xe0f   : > { %v2705_v11 = vunpack.c.l.b16 %v2690_v50 }
 0xe10   : > { %v2757_v46 = vpack.c.b16 %v2755_v21, %v2755_v21  ;;  %v2706_v1 = vunpack.c.l.b16 %v2691_v0 }
 0xe12   : > { %3778 = vmatmul.msk.bf16.gmra.mxu0 %vm1319_vm13, %v2757_v46  ;;  %v2708_v58 = vpack.c.b16 %v2706_v1, %v2705_v11  ;;  %v4119_v46 = vld [vmem:[%s5448_s6 + $0x25] ss:$0 sm:$0xff] }
 0xe1a   : > { %v2719_v52 = vpop.permute.xlu1 %2718 }
 0xe1b   : > { %2739 = vmatpush.bf16.msra.mxu3 %v2719_v52 }
 0xe1e   : > { %3775 = vmatmul.msk.bf16.vlgmr.msra.gmra.mxu3 %vm1319_vm13, %v2708_v58 }
 0xe1f   : > { %2971 = vmatpush.bf16.msrb.mxu3 %v3932_v23  ;;  %v3934_v23 = vld [vmem:[%s5446_s4 + $0x18] sm:$0xff] }
 0xe20   : > { %3096 = vmatpush.bf16.msrb.mxu0 %v3934_v23  ;;  %v3939_v23 = vld [vmem:[%s5447_s5 + $0x60] sm:$0xff] }
 0xe23   : > { %2972 = vmatpush.bf16.msrb.mxu3 %v3931_v20 }
 0xe34   : > { %v2837_v2 = vpop.f32.mrf.mxu1 }
 0xe3c   : > { %v2839_v9 = vpop.f32.mrf.mxu1 }
 0xe3d   : > { %v4091_v48 = vpack.i.bf16 %v2839_v9, %v2837_v2 }
 0xe3f   : > { %4092 = vrot.lane.b32.xlu2 %v4091_v48, %s4295_s27 }
 0xe49   : > { %v2885_v40 = vpop.f32.mrf.mxu2 }
 0xe50   : > { %v2789_v61 = vpop.f32.mrf.mxu0 }
 0xe51   : > { %v2887_v32 = vpop.f32.mrf.mxu2 }
 0xe52   : > { %v4096_v8 = vpack.i.bf16 %v2887_v32, %v2885_v40 }
 0xe54   : > { %4097 = vrot.lane.b32.xlu1 %v4096_v8, %s4296_s28 }
 0xe58   : > { %v2791_v3 = vpop.f32.mrf.mxu0 }
 0xe59   : > { %v4086_v54 = vpack.i.bf16 %v2791_v3, %v2789_v61 }
 0xe5b   : > { %4087 = vrot.lane.b32.xlu0 %v4086_v54, %s4297_s29 }
 0xe6d   : > { %v2638_v34 = vpop.xlane.xlu0 %2637 }
 0xe6e   : > { %4253 = vrcp.f32 %v2638_v34 }
 0xe74   : > { %v4254_v22 = vpop.eup %4253 }
 0xe75   : > { %v2680_v62 = vmul.f32 %v4254_v22, %v4242_v38 }
 0xe77   : > { %v2692_v4 = vpack.c.bf16 %v2680_v62, %v2680_v62 }
 0xe79   : > { %v2707_v12 = vunpack.c.l.b16 %v2692_v4 }
 0xe7b   : > { %v2709_v37 = vpack.c.b16 %v2707_v12, %v2707_v12 }
 0xe7d   : > { %3776 = vmatmul.msk.bf16.gmra.mxu3 %vm1319_vm13, %v2709_v37 }
 0xe88   : > { %v2890_v17 = vpop.f32.mrf.mxu2 }
 0xe89   : > { %2925 = vrot.lane.b32.xlu1 %v2890_v17, %s4296_s28 }
 0xe8a   : > { %v2842_v45 = vpop.f32.mrf.mxu1 }
 0xe8b   : > { %2913 = vrot.lane.b32.xlu0 %v2842_v45, %s4295_s27 }
 0xe8f   : > { %v2794_v49 = vpop.f32.mrf.mxu0 }
 0xe90   : > { %v2892_v41 = vpop.f32.mrf.mxu2  ;;  %2901 = vrot.lane.b32.xlu2 %v2794_v49, %s4297_s29 }
 0xe92   : > { %v2844_v10 = vpop.f32.mrf.mxu1 }
 0xe97   : > { %v2796_v18 = vpop.f32.mrf.mxu0 }
 0xe99   : > { %v4093_v60 = vpop.permute.xlu2 %4092 }
 0xe9a   : > { %v4095_v38 = vunpack.i.h.bf16 %v4093_v60  ;;  %v4094_v44 = vunpack.i.l.bf16 %v4093_v60 }
 0xea1   : > { %v2741_v27 = vpop.f32.mrf.mxu3 }
 0xea9   : > { %v2743_v33 = vpop.f32.mrf.mxu3 }
 0xec6   : > { %v4098_v59 = vpop.permute.xlu1 %4097 }
 0xec7   : > { %v4100_v25 = vunpack.i.h.bf16 %v4098_v59  ;;  %v4099_v15 = vunpack.i.l.bf16 %v4098_v59  ;;  %v3933_v59 = vld [vmem:[%s5446_s4 + $0x10] sm:$0xff] }
 0xec8   : > { %3097 = vmatpush.bf16.msrb.mxu0 %v3933_v59 }
 0xecd   : > { %v4088_v57 = vpop.permute.xlu0 %4087 }
 0xece   : > { %v4090_v30 = vunpack.i.h.bf16 %v4088_v57  ;;  %v4089_v6 = vunpack.i.l.bf16 %v4088_v57 }
 0xed0   : > { %v2931_v36 = vsel %vm1138_vm12, %v2743_v33, %v4090_v30  ;;  %v2930_v42 = vsel %vm1138_vm12, %v2741_v27, %v4089_v6 }
 0xed1   : > { %v2934_v19 = vsel %vm1699_vm2, %v2931_v36, %v4095_v38  ;;  %v2933_v51 = vsel %vm1699_vm2, %v2930_v42, %v4094_v44 }
 0xed2   : > { %v2937_v28 = vsel %vm1703_vm3, %v2934_v19, %v4100_v25  ;;  %v2936_v43 = vsel %vm1703_vm3, %v2933_v51, %v4099_v15 }
 0xed3   : > { %v2939_v53 = vpack.c.bf16 %v2937_v28, %v2936_v43 }
 0xed5   : > { %3795 = vmatmul.msk.bf16.vlgmr.msrb.gmra.mxu3 %vm847_vm0, %v2939_v53 }
 0xeea   : > { %v2902_v47 = vpop.permute.xlu2 %2901 }
 0xefb   : > { %v2926_v24 = vpop.permute.xlu1 %2925 }
 0xefd   : > { %v2914_v39 = vpop.permute.xlu0 %2913 }
 0xf00   : > { %v2746_v26 = vpop.f32.mrf.mxu3 }
 0xf01   : > { %v2932_v63 = vsel %vm1138_vm12, %v2746_v26, %v2902_v47  ;;  %v4120_v47 = vld [vmem:[%s5448_s6 + $0x26] ss:$0 sm:$0xff] }
 0xf02   : > { %v2935_v35 = vsel %vm1699_vm2, %v2932_v63, %v2914_v39 }
 0xf03   : > { %v2938_v55 = vsel %vm1703_vm3, %v2935_v35, %v2926_v24  ;;  %v4121_v24 = vld [vmem:[%s5448_s6 + $0x27] ss:$0 sm:$0xff] }
 0xf04   : > { %v2940_v21 = vpack.c.bf16 %v2938_v55, %v2938_v55 }
 0xf06   : > { %3796 = vmatmul.msk.bf16.gmra.mxu3 %vm847_vm0, %v2940_v21 }
 0xf08   : > { %v2748_v31 = vpop.f32.mrf.mxu3 }
 0xf58   : > { %v2974_v29 = vpop.f32.mrf.mxu3 }
 0xf59   : > { %v2975_v50 = vadd.f32 %v4118_v14, %v2974_v29 }
 0xf5b   : > { %v2984_v0 = vmul.f32 %v4119_v46, %v2975_v50 }
 0xf5d   : > { %v5306_v11 = vadd.f32 %v2984_v0, %v4970_v56 }
 0xf5f   : > { %v2990_v1 = vsel %vm847_vm0, %v5306_v11, 0.0 }
 0xf60   : > { %v2976_v52 = vpop.f32.mrf.mxu3  ;;  %2991 = vadd.xlane.f32.xlu2 %v2990_v1 }
 0xf61   : > { %v2977_v58 = vadd.f32 %v4118_v14, %v2976_v52 }
 0xf63   : > { %v2985_v2 = vmul.f32 %v4119_v46, %v2977_v58 }
 0xf65   : > { %v5311_v9 = vadd.f32 %v2985_v2, %v4975_v5 }
 0xf67   : > { %v2993_v48 = vsel %vm847_vm0, %v5311_v9, 0.0 }
 0xf68   : > { %2994 = vadd.xlane.f32.xlu0 %v2993_v48 }
 0xf89   : > { %v2979_v40 = vpop.f32.mrf.mxu3 }
 0xf8a   : > { %v2980_v61 = vadd.f32 %v4118_v14, %v2979_v40 }
 0xf8c   : > { %v2986_v32 = vmul.f32 %v4119_v46, %v2980_v61 }
 0xf8e   : > { %v5316_v56 = vadd.f32 %v2986_v32, %v4980_v13 }
 0xf90   : > { %v2996_v8 = vsel %vm854_vm1, %v5316_v56, 0.0 }
 0xf91   : > { %v2981_v3 = vpop.f32.mrf.mxu3  ;;  %2997 = vadd.xlane.f32.xlu1 %v2996_v8 }
 0xfd3   : > { %v2992_v54 = vpop.xlane.xlu2 %2991 }
 0xfd4   : > { %v2999_v34 = vmul.f32 %v2992_v54, %v4539_v7 }
 0xfd6   : > { %v3002_v5 = vsub.f32 %v5306_v11, %v2999_v34  ;;  %v5349_v34 = vld [vmem:[%s5448_s6 + $0x28] ss:$0 sm:$0xff] }
 0xfd8   : > { %v3005_v22 = vmul.f32 %v3002_v5, %v3002_v5 }
 0xfda   : > { %v3008_v62 = vsel %vm847_vm0, %v3005_v22, 0.0 }
 0xfdb   : > { %v2995_v4 = vpop.xlane.xlu0 %2994  ;;  %3009 = vadd.xlane.f32.xlu2 %v3008_v62 }
 0xfdc   : > { %v3000_v12 = vmul.f32 %v2995_v4, %v4539_v7  ;;  %v3942_v4 = vld [vmem:[%s5447_s5 + $0x78] sm:$0xff] }
 0xfdd   : > { %3293 = vmatpush.bf16.msrb.mxu1 %v3942_v4 }
 0xfde   : > { %v3003_v13 = vsub.f32 %v5311_v9, %v3000_v12 }
 0xfe0   : > { %v3006_v37 = vmul.f32 %v3003_v13, %v3003_v13 }
 0xfe2   : > { %v3011_v17 = vsel %vm847_vm0, %v3006_v37, 0.0  ;;  %v3941_v37 = vld [vmem:[%s5447_s5 + $0x70] sm:$0xff] }
 0xfe3   : > { %3012 = vadd.xlane.f32.xlu0 %v3011_v17  ;;  %3294 = vmatpush.bf16.msrb.mxu1 %v3941_v37 }
0x1004   : > { %v2998_v45 = vpop.xlane.xlu1 %2997 }
0x1005   : > { %v3001_v49 = vmul.f32 %v2998_v45, %v4539_v7 }
0x1007   : > { %v3004_v41 = vsub.f32 %v5316_v56, %v3001_v49 }
0x1009   : > { %v3007_v10 = vmul.f32 %v3004_v41, %v3004_v41 }
0x100b   : > { %v3014_v18 = vsel %vm854_vm1, %v3007_v10, 0.0 }
0x100c   : > { %3015 = vadd.xlane.f32.xlu1 %v3014_v18 }
0x104e   : > { %v3010_v20 = vpop.xlane.xlu2 %3009 }
0x104f   : > { %v3017_v27 = vmul.f32 %v3010_v20, %v4539_v7 }
0x1051   : > { %v3020_v60 = vadd.f32 1e-06, %v3017_v27 }
0x1053   : > { %4255 = vrsqrt.f32 %v3020_v60  ;;  %vm3029_vm13 = vweird.f32 %v3020_v60 }
0x1056   : > { %v3013_v57 = vpop.xlane.xlu0 %3012 }
0x1057   : > { %v3018_v30 = vmul.f32 %v3013_v57, %v4539_v7  ;;  %v3938_v57 = vld [vmem:[%s5447_s5 + $0x58] sm:$0xff] }
0x1059   : > { %v4256_v6 = vpop.eup %4255  ;;  %v3021_v38 = vadd.f32 1e-06, %v3018_v30 }
0x105a   : > { %v3024_v44 = vmul.f32 %v4256_v6, %v3020_v60  ;;  %vm3030_vm12 = vweird.f32 %v4256_v6 }
0x105b   : > { %4257 = vrsqrt.f32 %v3021_v38  ;;  %vm3031_vm14 = vmor %vm3029_vm13, %vm3030_vm12  ;;  %vm3039_vm3 = vweird.f32 %v3021_v38 }
0x105c   : > { %v3025_v33 = vmul.f32 %v4256_v6, %v3024_v44 }
0x105e   : > { %v3026_v25 = vmul.f32 0.5, %v3025_v33  ;;  %v3937_v33 = vld [vmem:[%s5447_s5 + $0x50] sm:$0xff] }
0x1060   : > { %v3027_v15 = vsub.f32 1.5, %v3026_v25 }
0x1061   : > { %v4258_v36 = vpop.eup %4257 }
0x1062   : > { %v3028_v42 = vmul.f32 %v4256_v6, %v3027_v15  ;;  %v3034_v19 = vmul.f32 %v4258_v36, %v3021_v38  ;;  %vm3040_vm2 = vweird.f32 %v4258_v36 }
0x1063   : > { %vm3041_vm10 = vmor %vm3039_vm3, %vm3040_vm2 }
0x1064   : > { %v3035_v51 = vmul.f32 %v4258_v36, %v3034_v19  ;;  %v3032_v28 = vsel %vm3031_vm14, %v4256_v6, %v3028_v42 }
0x1065   : > { %v3053_v26 = vmul.f32 %v3032_v28, %v3002_v5  ;;  %v3936_v28 = vld [vmem:[%s5447_s5 + $0x48] sm:$0xff] }
0x1066   : > { %v3036_v43 = vmul.f32 0.5, %v3035_v51 }
0x1067   : > { %v3057_v35 = vmul.f32 %v4120_v47, %v3053_v26 }
0x1068   : > { %v3037_v53 = vsub.f32 1.5, %v3036_v43 }
0x1069   : > { %v3061_v31 = vadd.f32 %v4121_v24, %v3057_v35  ;;  %v3935_v35 = vld [vmem:[%s5447_s5 + $0x40] sm:$0xff] }
0x106a   : > { %v3038_v39 = vmul.f32 %v4258_v36, %v3037_v53 }
0x106c   : > { %v3042_v63 = vsel %vm3041_vm10, %v4258_v36, %v3038_v39 }
0x106d   : > { %v3054_v55 = vmul.f32 %v3042_v63, %v3003_v13 }
0x106f   : > { %v3058_v21 = vmul.f32 %v4120_v47, %v3054_v55 }
0x1071   : > { %v3062_v14 = vadd.f32 %v4121_v24, %v3058_v21 }
0x1073   : > { %v3064_v46 = vpack.c.bf16 %v3062_v14, %v3061_v31 }
0x1075   : > { %3809 = vmatmul.msk.bf16.vlgmr.msrb.gmra.mxu0 %vm847_vm0, %v3064_v46 }
0x107f   : > { %v3016_v29 = vpop.xlane.xlu1 %3015 }
0x1080   : > { %v3019_v50 = vmul.f32 %v3016_v29, %v4539_v7 }
0x1082   : > { %v3022_v0 = vadd.f32 1e-06, %v3019_v50 }
0x1084   : > { %4259 = vrsqrt.f32 %v3022_v0  ;;  %vm3049_vm15 = vweird.f32 %v3022_v0 }
0x108a   : > { %v4260_v1 = vpop.eup %4259 }
0x108b   : > { %v3044_v52 = vmul.f32 %v4260_v1, %v3022_v0  ;;  %vm3050_vm11 = vweird.f32 %v4260_v1 }
0x108c   : > { %vm3051_vm4 = vmor %vm3049_vm15, %vm3050_vm11 }
0x108d   : > { %v3045_v58 = vmul.f32 %v4260_v1, %v3044_v52 }
0x108f   : > { %v3046_v2 = vmul.f32 0.5, %v3045_v58 }
0x1091   : > { %v3047_v48 = vsub.f32 1.5, %v3046_v2 }
0x1093   : > { %v3048_v40 = vmul.f32 %v4260_v1, %v3047_v48 }
0x1095   : > { %v3052_v61 = vsel %vm3051_vm4, %v4260_v1, %v3048_v40 }
0x1096   : > { %v3055_v32 = vmul.f32 %v3052_v61, %v3004_v41  ;;  %v3940_v41 = vld [vmem:[%s5447_s5 + $0x68] sm:$0xff] }
0x1097   : > { %3295 = vmatpush.bf16.msrb.mxu1 %v3940_v41 }
0x1098   : > { %v3059_v8 = vmul.f32 %v4120_v47, %v3055_v32 }
0x109a   : > { %v3063_v3 = vadd.f32 %v4121_v24, %v3059_v8 }
0x109b   : > { %3296 = vmatpush.bf16.msrb.mxu1 %v3939_v23 }
0x109c   : > { %v3065_v54 = vpack.c.bf16 %v3063_v3, %v3063_v3 }
0x109e   : > { %3810 = vmatmul.msk.bf16.gmra.mxu0 %vm847_vm0, %v3065_v54 }
0x109f   : > { %3297 = vmatpush.bf16.msrb.mxu1 %v3938_v57 }
0x10a3   : > { %3298 = vmatpush.bf16.msrb.mxu1 %v3937_v33 }
0x10a7   : > { %3299 = vmatpush.bf16.msrb.mxu1 %v3936_v28 }
0x10ab   : > { %3300 = vmatpush.bf16.msrb.mxu1 %v3935_v35 }
0x10f2   : > { %v3099_v5 = vpop.f32.mrf.mxu0 }
0x10f3   : > { %v5352_v22 = vadd.f32 %v5349_v34, %v3099_v5 }
0x10f5   : > { %v5355_v62 = vmul.f32 0.70710677, %v5352_v22 }
0x10f7   : > { %v3120_v12 = vand.u32 2147483647, %v5355_v62  ;;  %vm3114_vm2 = vcmp.ge.f32.partialorder %v5355_v62, 0.0  ;;  %v3108_v62 = vmul.f32 0.5, %v5352_v22 }
0x10f9   : > { %v3123_v13 = vmul.f32 0.3275911, %v3120_v12  ;;  %v3198_v53 = vsub.f32 0.0, %v3120_v12 }
0x10fa   : > { %v3101_v17 = vpop.f32.mrf.mxu0 }
0x10fb   : > { %v3126_v45 = vadd.f32 1.0, %v3123_v13  ;;  %v5365_v49 = vadd.f32 %v5349_v34, %v3101_v17  ;;  %v3201_v21 = vmul.f32 %v3198_v53, %v3120_v12 }
0x10fd   : > { %4261 = vrcp.f32 %v3126_v45  ;;  %v5371_v10 = vmul.f32 0.70710677, %v5365_v49  ;;  %v3140_v6 = vand.u32 2147483648, %v3126_v45  ;;  %v3138_v44 = vand.u32 2147483647, %v3126_v45 }
0x10fe   : > { %vm3134_vm6 = vweird.f32 %v3126_v45  ;;  %v3204_v0 = vmul.f32 1.442695, %v3201_v21 }
0x10ff   : > { %v3121_v18 = vand.u32 2147483647, %v5371_v10  ;;  %v3141_v15 = vor.u32 1.1754944e-38, %v3140_v6  ;;  %vm3139_vm8 = vcmp.eq.f32.partialorder %v3138_v44, 8.507059e+37  ;;  %v3117_v6 = vsel %vm3114_vm2, 1.0, %v4298_v16 }
0x1100   : > { %vm3115_vm3 = vcmp.ge.f32.partialorder %v5371_v10, 0.0 }
0x1101   : > { %v3124_v20 = vmul.f32 0.3275911, %v3121_v18  ;;  %v3199_v52 = vsub.f32 0.0, %v3121_v18 }
0x1103   : > { %v4262_v27 = vpop.eup %4261  ;;  %v3127_v59 = vadd.f32 1.0, %v3124_v20  ;;  %v3202_v61 = vmul.f32 %v3199_v52, %v3121_v18 }
0x1104   : > { %v3130_v60 = vmul.f32 %v4262_v27, %v3126_v45  ;;  %vm3135_vm5 = vweird.f32 %v4262_v27 }
0x1105   : > { %4263 = vrcp.f32 %v3127_v59  ;;  %vm3136_vm7 = vmor %vm3134_vm6, %vm3135_vm5  ;;  %v3154_v39 = vand.u32 2147483648, %v3127_v59  ;;  %v3152_v24 = vand.u32 2147483647, %v3127_v59  ;;  %vm3148_vm12 = vweird.f32 %v3127_v59 }
0x1106   : > { %v3131_v30 = vsub.f32 1.0, %v3130_v60  ;;  %4265 = vpow2.f32 %v3204_v0  ;;  %v3206_v12 = vmul.f32 1.442695, %v3202_v61 }
0x1107   : > { %v3155_v46 = vor.u32 1.1754944e-38, %v3154_v39  ;;  %vm3153_vm14 = vcmp.eq.f32.partialorder %v3152_v24, 8.507059e+37 }
0x1108   : > { %v3132_v38 = vmul.f32 %v4262_v27, %v3131_v30  ;;  %4267 = vpow2.f32 %v3206_v12 }
0x110a   : > { %v3133_v25 = vadd.f32 %v4262_v27, %v3132_v38 }
0x110b   : > { %v4264_v36 = vpop.eup %4263 }
0x110c   : > { %v3137_v42 = vsel %vm3136_vm7, %v4262_v27, %v3133_v25  ;;  %v3144_v51 = vmul.f32 %v4264_v36, %v3127_v59  ;;  %vm3149_vm9 = vweird.f32 %v4264_v36  ;;  %v4266_v17 = vpop.eup %4265 }
0x110d   : > { %v3142_v19 = vsel %vm3139_vm8, %v3141_v15, %v3137_v42  ;;  %vm3150_vm13 = vmor %vm3148_vm12, %vm3149_vm9  ;;  %v3118_v15 = vsel %vm3115_vm3, 1.0, %v4298_v16 }
0x110e   : > { %v3171_v43 = vmul.f32 1.0614054, %v3142_v19  ;;  %v3145_v47 = vsub.f32 1.0, %v3144_v51  ;;  %v4268_v30 = vpop.eup %4267  ;;  %v3109_v51 = vmul.f32 0.5, %v5365_v49 }
0x1110   : > { %v3174_v26 = vadd.f32 -1.4531521, %v3171_v43  ;;  %v3146_v63 = vmul.f32 %v4264_v36, %v3145_v47 }
0x1112   : > { %v3177_v55 = vmul.f32 %v3174_v26, %v3142_v19  ;;  %v3147_v31 = vadd.f32 %v4264_v36, %v3146_v63 }
0x1114   : > { %v3180_v14 = vadd.f32 1.4214138, %v3177_v55  ;;  %v3151_v29 = vsel %vm3150_vm13, %v4264_v36, %v3147_v31 }
0x1115   : > { %v3156_v1 = vsel %vm3153_vm14, %v3155_v46, %v3151_v29 }
0x1116   : > { %v3183_v50 = vmul.f32 %v3180_v14, %v3142_v19  ;;  %v3172_v58 = vmul.f32 1.0614054, %v3156_v1 }
0x1118   : > { %v3186_v2 = vadd.f32 -0.28449672, %v3183_v50  ;;  %v3175_v48 = vadd.f32 -1.4531521, %v3172_v58 }
0x111a   : > { %v3189_v40 = vmul.f32 %v3186_v2, %v3142_v19  ;;  %v3178_v32 = vmul.f32 %v3175_v48, %v3156_v1 }
0x111b   : > { %v3104_v8 = vpop.f32.mrf.mxu0 }
0x111c   : > { %v3192_v3 = vadd.f32 0.2548296, %v3189_v40  ;;  %v5390_v54 = vadd.f32 %v5349_v34, %v3104_v8  ;;  %v3181_v5 = vadd.f32 1.4214138, %v3178_v32 }
0x111e   : > { %v3195_v4 = vmul.f32 %v3192_v3, %v3142_v19  ;;  %v5393_v13 = vmul.f32 0.70710677, %v5390_v54  ;;  %v3184_v37 = vmul.f32 %v3181_v5, %v3156_v1  ;;  %v3110_v3 = vmul.f32 0.5, %v5390_v54 }
0x1120   : > { %v3122_v45 = vand.u32 2147483647, %v5393_v13  ;;  %v3210_v41 = vmul.f32 %v4266_v17, %v3195_v4  ;;  %v3187_v23 = vadd.f32 -0.28449672, %v3184_v37  ;;  %vm3116_vm5 = vcmp.ge.f32.partialorder %v5393_v13, 0.0 }
0x1121   : > { %v3119_v32 = vsel %vm3116_vm5, 1.0, %v4298_v16  ;;  %v4123_v37 = vld [vmem:[%s5448_s6 + $0x29] ss:$0 sm:$0xff]  ;;  %v4124_v17 = vld [vmem:[%s5448_s6 + $0x2a] ss:$0 sm:$0xff] }
0x1122   : > { %v3125_v18 = vmul.f32 0.3275911, %v3122_v45  ;;  %v3190_v20 = vmul.f32 %v3187_v23, %v3156_v1  ;;  %v3213_v34 = vsub.f32 1.0, %v3210_v41  ;;  %v3200_v22 = vsub.f32 0.0, %v3122_v45 }
0x1123   : > { %v3106_v27 = vpop.f32.mrf.mxu0 }
0x1124   : > { %v3128_v60 = vadd.f32 1.0, %v3125_v18  ;;  %v3193_v59 = vadd.f32 0.2548296, %v3190_v20  ;;  %v3216_v38 = vmul.f32 %v3213_v34, %v3117_v6  ;;  %v3203_v14 = vmul.f32 %v3200_v22, %v3122_v45 }
0x1126   : > { %4269 = vrcp.f32 %v3128_v60  ;;  %v3196_v57 = vmul.f32 %v3193_v59, %v3156_v1  ;;  %v3219_v36 = vadd.f32 1.0, %v3216_v38  ;;  %v3166_v53 = vand.u32 2147483647, %v3128_v60 }
0x1127   : > { %v3168_v47 = vand.u32 2147483648, %v3128_v60  ;;  %vm3162_vm11 = vweird.f32 %v3128_v60  ;;  %v3208_v50 = vmul.f32 1.442695, %v3203_v14 }
0x1128   : > { %v3211_v44 = vmul.f32 %v4268_v30, %v3196_v57  ;;  %v3222_v26 = vmul.f32 %v3219_v36, %v3108_v62  ;;  %vm3167_vm4 = vcmp.eq.f32.partialorder %v3166_v53, 8.507059e+37 }
0x1129   : > { %v3169_v35 = vor.u32 1.1754944e-38, %v3168_v47  ;;  %4271 = vpow2.f32 %v3208_v50 }
0x112a   : > { %v3214_v33 = vsub.f32 1.0, %v3211_v44 }
0x112c   : > { %v4270_v25 = vpop.eup %4269  ;;  %v3217_v42 = vmul.f32 %v3214_v33, %v3118_v15 }
0x112d   : > { %v3158_v19 = vmul.f32 %v4270_v25, %v3128_v60  ;;  %vm3163_vm10 = vweird.f32 %v4270_v25 }
0x112e   : > { %v3220_v28 = vadd.f32 1.0, %v3217_v42  ;;  %vm3164_vm15 = vmor %vm3162_vm11, %vm3163_vm10 }
0x112f   : > { %v3159_v43 = vsub.f32 1.0, %v3158_v19  ;;  %v4272_v48 = vpop.eup %4271 }
0x1130   : > { %v3223_v39 = vmul.f32 %v3220_v28, %v3109_v51 }
0x1131   : > { %v3160_v63 = vmul.f32 %v4270_v25, %v3159_v43 }
0x1132   : > { %v3225_v10 = vpack.c.bf16 %v3223_v39, %v3222_v26 }
0x1133   : > { %v3161_v24 = vadd.f32 %v4270_v25, %v3160_v63 }
0x1134   : > { %3301 = vmatmul.bf16.vlgmr.msrb.gmra.mxu1 %v3225_v10 }
0x1135   : > { %v3165_v55 = vsel %vm3164_vm15, %v4270_v25, %v3161_v24 }
0x1136   : > { %v3170_v21 = vsel %vm3167_vm4, %v3169_v35, %v3165_v55 }
0x1137   : > { %v3173_v31 = vmul.f32 1.0614054, %v3170_v21 }
0x1139   : > { %v3176_v49 = vadd.f32 -1.4531521, %v3173_v31 }
0x113b   : > { %v3179_v46 = vmul.f32 %v3176_v49, %v3170_v21 }
0x113d   : > { %v3182_v29 = vadd.f32 1.4214138, %v3179_v46 }
0x113f   : > { %v3185_v0 = vmul.f32 %v3182_v29, %v3170_v21  ;;  %v4125_v29 = vld [vmem:[%s5448_s6 + $0x11] ss:$0 sm:$0xff] }
0x1141   : > { %v3188_v1 = vadd.f32 -0.28449672, %v3185_v0 }
0x1143   : > { %v3191_v52 = vmul.f32 %v3188_v1, %v3170_v21  ;;  %v4126_v1 = vld [vmem:[%s5448_s6 + $0x12] ss:$0 sm:$0xff] }
0x1145   : > { %v3194_v58 = vadd.f32 0.2548296, %v3191_v52 }
0x1147   : > { %v3197_v2 = vmul.f32 %v3194_v58, %v3170_v21 }
0x1149   : > { %v3212_v40 = vmul.f32 %v4272_v48, %v3197_v2 }
0x114b   : > { %v3215_v61 = vsub.f32 1.0, %v3212_v40 }
0x114d   : > { %v3218_v8 = vmul.f32 %v3215_v61, %v3119_v32 }
0x114f   : > { %v3221_v5 = vadd.f32 1.0, %v3218_v8 }
0x1151   : > { %v3224_v4 = vmul.f32 %v3221_v5, %v3110_v3 }
0x1153   : > { %v3226_v12 = vpack.c.bf16 %v3224_v4, %v3224_v4 }
0x1155   : > { %3306 = vmatmul.bf16.gmra.mxu1 %v3226_v12 }
0x11b1   : > { %v3302_v13 = vpop.f32.mrf.mxu1 }
0x11b2   : > { %v3303_v45 = vadd.f32 %v4123_v37, %v3302_v13 }
0x11b4   : > { %v3312_v41 = vmul.f32 %v4124_v17, %v3303_v45 }
0x11b6   : > { %v3315_v16 = vadd.f32 %v3312_v41, %v5306_v11 }
0x11b8   : > { %v3320_v23 = vsel %vm847_vm0, %v3315_v16, 0.0 }
0x11b9   : > { %v3304_v54 = vpop.f32.mrf.mxu1  ;;  %3321 = vadd.xlane.f32.xlu2 %v3320_v23 }
0x11ba   : > { %v3305_v18 = vadd.f32 %v4123_v37, %v3304_v54 }
0x11bc   : > { %v3313_v20 = vmul.f32 %v4124_v17, %v3305_v18 }
0x11be   : > { %v3316_v27 = vadd.f32 %v3313_v20, %v5311_v9 }
0x11c0   : > { %v3323_v60 = vsel %vm847_vm0, %v3316_v27, 0.0 }
0x11c1   : > { %3324 = vadd.xlane.f32.xlu0 %v3323_v60 }
0x11d2   : > { %v3307_v34 = vpop.f32.mrf.mxu1 }
0x11d3   : > { %v3308_v59 = vadd.f32 %v4123_v37, %v3307_v34 }
0x11d5   : > { %v3314_v57 = vmul.f32 %v4124_v17, %v3308_v59 }
0x11d7   : > { %v3317_v30 = vadd.f32 %v3314_v57, %v5316_v56 }
0x11d9   : > { %v3326_v6 = vsel %vm854_vm1, %v3317_v30, 0.0 }
0x11da   : > { %v3309_v38 = vpop.f32.mrf.mxu1  ;;  %3327 = vadd.xlane.f32.xlu1 %v3326_v6 }
0x122c   : > { %v3322_v11 = vpop.xlane.xlu2 %3321 }
0x122d   : > { %v3329_v44 = vmul.f32 %v3322_v11, %v4539_v7 }
0x122f   : > { %v3332_v33 = vsub.f32 %v3315_v16, %v3329_v44 }
0x1231   : > { %v3335_v25 = vmul.f32 %v3332_v33, %v3332_v33 }
0x1233   : > { %v3338_v15 = vsel %vm847_vm0, %v3335_v25, 0.0 }
0x1234   : > { %v3325_v9 = vpop.xlane.xlu0 %3324  ;;  %3339 = vadd.xlane.f32.xlu2 %v3338_v15 }
0x1235   : > { %v3330_v36 = vmul.f32 %v3325_v9, %v4539_v7 }
0x1237   : > { %v3333_v42 = vsub.f32 %v3316_v27, %v3330_v36 }
0x1239   : > { %v3336_v19 = vmul.f32 %v3333_v42, %v3333_v42 }
0x123b   : > { %v3341_v62 = vsel %vm847_vm0, %v3336_v19, 0.0 }
0x123c   : > { %3342 = vadd.xlane.f32.xlu0 %v3341_v62 }
0x124d   : > { %v3328_v56 = vpop.xlane.xlu1 %3327 }
0x124e   : > { %v3331_v51 = vmul.f32 %v3328_v56, %v4539_v7 }
0x1250   : > { %v3334_v28 = vsub.f32 %v3317_v30, %v3331_v51 }
0x1252   : > { %v3337_v43 = vmul.f32 %v3334_v28, %v3334_v28 }
0x1254   : > { %v3344_v53 = vsel %vm854_vm1, %v3337_v43, 0.0 }
0x1255   : > { %3345 = vadd.xlane.f32.xlu1 %v3344_v53 }
0x12a7   : > { %v3340_v47 = vpop.xlane.xlu2 %3339 }
0x12a8   : > { %v3347_v26 = vmul.f32 %v3340_v47, %v4539_v7 }
0x12aa   : > { %v3350_v39 = vadd.f32 1e-06, %v3347_v26 }
0x12ac   : > { %4273 = vrsqrt.f32 %v3350_v39  ;;  %vm3359_vm7 = vweird.f32 %v3350_v39 }
0x12af   : > { %v3343_v63 = vpop.xlane.xlu0 %3342 }
0x12b0   : > { %v3348_v10 = vmul.f32 %v3343_v63, %v4539_v7 }
0x12b2   : > { %v4274_v24 = vpop.eup %4273  ;;  %v3351_v35 = vadd.f32 1e-06, %v3348_v10 }
0x12b3   : > { %v3354_v55 = vmul.f32 %v4274_v24, %v3350_v39  ;;  %vm3360_vm6 = vweird.f32 %v4274_v24 }
0x12b4   : > { %4275 = vrsqrt.f32 %v3351_v35  ;;  %vm3361_vm8 = vmor %vm3359_vm7, %vm3360_vm6  ;;  %vm3369_vm12 = vweird.f32 %v3351_v35 }
0x12b5   : > { %v3355_v21 = vmul.f32 %v4274_v24, %v3354_v55 }
0x12b7   : > { %v3356_v22 = vmul.f32 0.5, %v3355_v21 }
0x12b9   : > { %v3357_v31 = vsub.f32 1.5, %v3356_v22 }
0x12ba   : > { %v4276_v49 = vpop.eup %4275 }
0x12bb   : > { %v3358_v14 = vmul.f32 %v4274_v24, %v3357_v31  ;;  %v3364_v46 = vmul.f32 %v4276_v49, %v3351_v35  ;;  %vm3370_vm9 = vweird.f32 %v4276_v49 }
0x12bc   : > { %vm3371_vm13 = vmor %vm3369_vm12, %vm3370_vm9 }
0x12bd   : > { %v3362_v50 = vsel %vm3361_vm8, %v4274_v24, %v3358_v14  ;;  %v3365_v0 = vmul.f32 %v4276_v49, %v3364_v46 }
0x12be   : > { %v3383_v52 = vmul.f32 %v3362_v50, %v3332_v33 }
0x12bf   : > { %v3366_v58 = vmul.f32 0.5, %v3365_v0 }
0x12c0   : > { %v3387_v2 = vmul.f32 %v4125_v29, %v3383_v52 }
0x12c1   : > { %v3367_v48 = vsub.f32 1.5, %v3366_v58 }
0x12c2   : > { %v3391_v40 = vadd.f32 %v4126_v1, %v3387_v2 }
0x12c3   : > { %v3368_v61 = vmul.f32 %v4276_v49, %v3367_v48 }
0x12c4   : > { %3394 = vst.msk [vmem:[%s278_s21] sm:$0xff] %vm847_vm0, %v3391_v40 }
0x12c5   : > { %v3372_v32 = vsel %vm3371_vm13, %v4276_v49, %v3368_v61 }
0x12c6   : > { %v3384_v8 = vmul.f32 %v3372_v32, %v3333_v42 }
0x12c8   : > { %v3346_v3 = vpop.xlane.xlu1 %3345  ;;  %v3388_v5 = vmul.f32 %v4125_v29, %v3384_v8 }
0x12c9   : > { %v3349_v4 = vmul.f32 %v3346_v3, %v4539_v7 }
0x12ca   : > { %v3392_v12 = vadd.f32 %v4126_v1, %v3388_v5 }
0x12cb   : > { %v3352_v37 = vadd.f32 1e-06, %v3349_v4 }
0x12cc   : > { %3395 = vst.msk [vmem:[%s278_s21 + $0x8] sm:$0xff] %vm847_vm0, %v3392_v12 }
0x12cd   : > { %4277 = vrsqrt.f32 %v3352_v37  ;;  %vm3379_vm2 = vweird.f32 %v3352_v37 }
0x12d3   : > { %v4278_v17 = vpop.eup %4277 }
0x12d4   : > { %v3374_v13 = vmul.f32 %v4278_v17, %v3352_v37  ;;  %vm3380_vm14 = vweird.f32 %v4278_v17 }
0x12d5   : > { %vm3381_vm3 = vmor %vm3379_vm2, %vm3380_vm14 }
0x12d6   : > { %v3375_v45 = vmul.f32 %v4278_v17, %v3374_v13 }
0x12d8   : > { %v3376_v41 = vmul.f32 0.5, %v3375_v45 }
0x12da   : > { %v3377_v16 = vsub.f32 1.5, %v3376_v41 }
0x12dc   : > { %v3378_v23 = vmul.f32 %v4278_v17, %v3377_v16 }
0x12de   : > { %v3382_v54 = vsel %vm3381_vm3, %v4278_v17, %v3378_v23 }
0x12df   : > { %v3385_v18 = vmul.f32 %v3382_v54, %v3334_v28 }
0x12e1   : > { %v3389_v20 = vmul.f32 %v4125_v29, %v3385_v18 }
0x12e3   : > { %v3393_v27 = vadd.f32 %v4126_v1, %v3389_v20 }
0x12e5   : > { %3396 = vst.msk [vmem:[%s278_s21 + $0x10] sm:$0x1] %vm854_vm1, %v3393_v27 }
0x12e6 PF: > { %s17_s24 = sadd.s32 1, %s4285_s24  }
0x12e7   : > { %p14_p4 = scmp.ge.s32.totalorder %s17_s24, 4  }
0x12e9   :  { %16 = sbr.rel (!%p14_p4) target bundleno = 1 (0x1), region = 82 }

</bundles_post_ra>
